<compile_context>
chip_gen: v5e
topology: v5e:2x2
jax: 0.10.0
libtpu: 0.0.40
codegen_flags: <defaults>
</compile_context>

<pallas_src>
import functools
import re

import jax
import jax.numpy as jnp
import numpy as np
from jax.experimental import pallas as pl
from jax.experimental.pallas import tpu as pltpu


# ----------------------------------------------------------------------------
# stack shorthand (same as the PyTorch module)
# ----------------------------------------------------------------------------
def expand_stack(stack):
    """Expand shorthand stack. For example, 4LC -> LCLCLCLC"""
    expanded, n = ("", 1)
    parts = re.findall(r"\d+|[^\d]+", stack)
    for part in parts:
        if part.isdigit():
            n = int(part)
        else:
            expanded += part * n
    return expanded


BLOCK_CODE = {"L": 0, "G": 1, "C": 2, "P": 3, "D": 4, "E": 5, "M": 6}


# ----------------------------------------------------------------------------
# shared numerics
# ----------------------------------------------------------------------------
def _layernorm(x, g, b, eps=1e-5):
    mu = jnp.mean(x, axis=-1, keepdims=True)
    xc = x - mu
    var = jnp.mean(xc * xc, axis=-1, keepdims=True)
    return xc * jax.lax.rsqrt(var + eps) * g + b


def embed_inputs(params, nodes_numerical, nodes_categorical):
    # TODO(synk): the categorical-embedding table gather has no clean Pallas
    # equivalent at this size; it is left to XLA.
    B, L, _ = nodes_categorical.shape
    E = params["num_embed"].shape[-1]
    x = jnp.zeros((B, L, E), jnp.float32)
    for i, table in enumerate(params["cat_embeds"]):
        x = x + table[nodes_categorical[:, :, i]]
    x = x + jnp.dot(nodes_numerical, params["num_embed"],
                    preferred_element_type=jnp.float32)
    return x


# ----------------------------------------------------------------------------
# fused transformer-stack + pooling kernel
# ----------------------------------------------------------------------------
def _fused_stack_kernel(codes_ref,                       # SMEM (n_blocks,) i32
                        x_ref, adj_ref, d_ref, padr_ref, padc_ref,
                        g1_ref, be1_ref, wqkv_ref, wo_ref,
                        g2_ref, be2_ref, w1_ref, b1_ref, w2_ref, b2_ref,
                        gout_ref, bout_ref,
                        pooled_ref,
                        act_sc, logd_sc, logd2_sc,
                        *, H, scale):
    Bp, L, E = act_sc.shape
    A = E // H
    layer = pl.program_id(1)
    n_layers = pl.num_programs(1)

    # ---- per batch-block init: activation carry + hoisted transcendentals ---
    @pl.when(layer == 0)
    def _():
        act_sc[...] = x_ref[...]
        logd_sc[...] = jnp.log(d_ref[...])
        logd2_sc[...] = jnp.log(d_ref[...] + 0.2)

    x = act_sc[...]                                      # (Bp, L, E) f32
    code = codes_ref[layer]

    # ---- masks / biases per head-group (never materialised as (H, L, L)) ---
    is_L = (code == 0).astype(jnp.float32)
    is_G = (code == 1).astype(jnp.float32)
    is_C = (code == 2).astype(jnp.float32)
    is_P = (code == 3).astype(jnp.float32)
    is_D = (code == 4).astype(jnp.float32)
    is_E = (code == 5).astype(jnp.float32)
    is_M = (code == 6).astype(jnp.float32)

    pad_c = ((padr_ref[...] + padc_ref[...]) > 0.5).astype(jnp.float32)  # (Bp,L,L)
    eye = (jax.lax.broadcasted_iota(jnp.int32, (L, L), 0)
           == jax.lax.broadcasted_iota(jnp.int32, (L, L), 1)).astype(jnp.float32)
    pad_diag = jnp.maximum(pad_c, eye[None])
    not_adj = (adj_ref[...] < 0.5).astype(jnp.float32)

    # masks: arithmetic one-hot blend of {0,1} float masks (all terms finite)
    w_padc = is_G + is_E
    mask_a = is_L * not_adj + w_padc * pad_c + (1.0 - is_L - w_padc) * pad_diag
    w_nb = is_L + is_M
    mask_b = w_nb * not_adj + w_padc * pad_c + (1.0 - w_nb - w_padc) * pad_diag

    # biases: where-selects so +/-inf log terms are never multiplied by zero
    dmat = d_ref[...]
    log_d = logd_sc[...]
    coulomb = -2.0 * log_d
    potential = -log_d
    electro = -2.0 * logd2_sc[...]
    zero = jnp.zeros_like(dmat)
    sel = lambda w: jnp.full_like(dmat, w) > 0.5
    bias_common = (is_D * dmat
                   + jnp.where(sel(is_P), potential, zero)
                   + jnp.where(sel(is_E), electro, zero))
    bias_a = bias_common + jnp.where(sel(is_C + is_M), coulomb, zero)
    bias_b = bias_common + jnp.where(sel(is_C), coulomb, zero)

    # ---- per-layer weights (resident in VMEM, indexed by the layer id) -----
    g1, be1 = g1_ref[layer], be1_ref[layer]              # (1, E)
    g2, be2 = g2_ref[layer], be2_ref[layer]
    wqkv = wqkv_ref[layer]                               # (E, 3E) bf16
    wo = wo_ref[layer]                                   # (E, E)  bf16
    w1, b1 = w1_ref[layer], b1_ref[layer]                # (E, 4E) bf16, (1, 4E)
    w2, b2 = w2_ref[layer], b2_ref[layer]                # (4E, E) bf16, (1, E)

    # ---- fused QKV projection: one lane-dense (Bp*L, E) @ (E, 3E) GEMM -----
    x0 = _layernorm(x, g1, be1)                          # (Bp, L, E)
    qkv = jnp.dot(x0.reshape(Bp * L, E).astype(jnp.bfloat16), wqkv,
                  preferred_element_type=jnp.float32).reshape(Bp, L, 3 * E)

    # ---- attention: per-head score/value matmuls, mask/bias per head-group -
    neg = jnp.finfo(jnp.float32).min
    vals = []
    for h in range(H):
        first = h < H // 2
        mask_h = mask_a if first else mask_b
        bias_h = bias_a if first else bias_b
        qh = qkv[:, :, h * A:(h + 1) * A].astype(jnp.bfloat16)
        kh = qkv[:, :, E + h * A:E + (h + 1) * A].astype(jnp.bfloat16)
        vh = qkv[:, :, 2 * E + h * A:2 * E + (h + 1) * A].astype(jnp.bfloat16)
        s = jnp.einsum("bqa,bka->bqk", qh, kh,
                       preferred_element_type=jnp.float32) * scale
        s = s + bias_h
        s = jnp.where(mask_h > 0.5, neg, s)
        s = s - jnp.max(s, axis=-1, keepdims=True)
        e = jnp.exp(s)
        p = e * pl.reciprocal(jnp.sum(e, axis=-1, keepdims=True), approx=True)
        vals.append(jnp.einsum("bqk,bka->bqa", p.astype(jnp.bfloat16), vh,
                               preferred_element_type=jnp.float32))
    vals = jnp.concatenate(vals, axis=-1)                # (Bp, L, E) f32

    # ---- output projection: one (Bp*L, E) @ (E, E) GEMM --------------------
    x1 = jnp.dot(vals.reshape(Bp * L, E).astype(jnp.bfloat16), wo,
                 preferred_element_type=jnp.float32).reshape(Bp, L, E)

    # ---- residual + MLP (lane-dense (Bp*L, .) GEMMs) ------------------------
    x2 = _layernorm(x1 + x0, g2, be2)
    h1 = jnp.dot(x2.reshape(Bp * L, E).astype(jnp.bfloat16), w1,
                 preferred_element_type=jnp.float32) + b1
    h1 = jnp.maximum(h1, 0.0)
    x3 = (jnp.dot(h1.astype(jnp.bfloat16), w2,
                  preferred_element_type=jnp.float32) + b2).reshape(Bp, L, E)
    x3 = jnp.where(padr_ref[...] > 0.5, 0.0, x3)         # zero padded rows
    x_new = x3 + x2
    act_sc[...] = x_new

    # ---- final LayerNorm + mean pool, folded into the last layer -----------
    @pl.when(layer == n_layers - 1)
    def _():
        xn = _layernorm(x_new, gout_ref[...], bout_ref[...])
        pooled_ref[...] = jnp.mean(xn, axis=1, keepdims=True)   # (Bp, 1, E)


# ----------------------------------------------------------------------------
# wrapper
# ----------------------------------------------------------------------------
def pack_stack_params(blocks):
    """Stack per-block params over a leading layer axis; fuse QKV weights."""
    wqkv = jnp.stack([jnp.concatenate([b["wq"], b["wk"], b["wv"]], axis=1)
                      for b in blocks])                  # (n, E, 3E) bf16
    stk = lambda key: jnp.stack([b[key] for b in blocks])
    return dict(
        ln1_g=stk("ln1_g"), ln1_b=stk("ln1_b"),
        wqkv=wqkv, wo=stk("wo"),
        ln2_g=stk("ln2_g"), ln2_b=stk("ln2_b"),
        w1=stk("w1"), b1=stk("b1"), w2=stk("w2"), b2=stk("b2"),
    )


def _choose_batch_block(B, max_block=8):
    # prefer >= 2 blocks on the (parallel) batch axis when possible (v7x has
    # two TensorCores per chip), otherwise take the whole batch.
    for cand in range(min(B // 2, max_block), 0, -1):
        if B % cand == 0:
            return cand
    return B


def transformer_stack_and_pool(x, adj, d, padding, stacked, out_norm_g,
                               out_norm_b, codes, H, batch_block=None):
    B, L, E = x.shape
    n_blocks = int(codes.shape[0])
    scale = float(E // H) ** -0.5

    Bp = batch_block if batch_block is not None else _choose_batch_block(B)
    assert B % Bp == 0

    adj_f = adj.astype(jnp.float32)
    pad_row = padding.astype(jnp.float32)[:, :, None]    # (B, L, 1)
    pad_col = padding.astype(jnp.float32)[:, None, :]    # (B, 1, L)

    kernel = functools.partial(_fused_stack_kernel, H=H, scale=scale)

    per_b = lambda b, l, c: (b, 0, 0)                    # batch-indexed tiles
    full3 = lambda b, l, c: (0, 0, 0)                    # VMEM-resident weights
    full2 = lambda b, l, c: (0, 0)

    grid_spec = pltpu.PrefetchScalarGridSpec(
        num_scalar_prefetch=1,
        grid=(B // Bp, n_blocks),
        in_specs=[
            pl.BlockSpec((Bp, L, E), per_b),             # embeddings
            pl.BlockSpec((Bp, L, L), per_b),             # adj
            pl.BlockSpec((Bp, L, L), per_b),             # d
            pl.BlockSpec((Bp, L, 1), per_b),             # padding (rows)
            pl.BlockSpec((Bp, 1, L), per_b),             # padding (cols)
            pl.BlockSpec((n_blocks, 1, E), full3),       # ln1_g
            pl.BlockSpec((n_blocks, 1, E), full3),       # ln1_b
            pl.BlockSpec((n_blocks, E, 3 * E), full3),   # fused QKV weight
            pl.BlockSpec((n_blocks, E, E), full3),       # wo
            pl.BlockSpec((n_blocks, 1, E), full3),       # ln2_g
            pl.BlockSpec((n_blocks, 1, E), full3),       # ln2_b
            pl.BlockSpec((n_blocks, E, 4 * E), full3),   # w1
            pl.BlockSpec((n_blocks, 1, 4 * E), full3),   # b1
            pl.BlockSpec((n_blocks, 4 * E, E), full3),   # w2
            pl.BlockSpec((n_blocks, 1, E), full3),       # b2
            pl.BlockSpec((1, E), full2),                 # out-norm gamma
            pl.BlockSpec((1, E), full2),                 # out-norm beta
        ],
        out_specs=pl.BlockSpec((Bp, 1, E), per_b),       # pooled, lane-dense
        scratch_shapes=[
            pltpu.VMEM((Bp, L, E), jnp.float32),         # activation carry
            pltpu.VMEM((Bp, L, L), jnp.float32),         # log(d)
            pltpu.VMEM((Bp, L, L), jnp.float32),         # log(d + 0.2)
        ],
    )

    pooled = pl.pallas_call(
        kernel,
        out_shape=jax.ShapeDtypeStruct((B, 1, E), jnp.float32),
        grid_spec=grid_spec,
        compiler_params=pltpu.CompilerParams(
            dimension_semantics=("parallel", "arbitrary"),
            vmem_limit_bytes=32 * 1024 * 1024,           # safe on v5e/v6e/v7x
        ),
    )(
        codes, x, adj_f, d, pad_row, pad_col,
        stacked["ln1_g"], stacked["ln1_b"], stacked["wqkv"], stacked["wo"],
        stacked["ln2_g"], stacked["ln2_b"],
        stacked["w1"], stacked["b1"], stacked["w2"], stacked["b2"],
        out_norm_g, out_norm_b,
    )
    return pooled[:, 0, :]                               # (B, E)


def graph_transformer_forward(params, stack, H, nodes_numerical,
                              nodes_categorical, d, adj, padding,
                              batch_block=None):
    x = embed_inputs(params, nodes_numerical, nodes_categorical)
    codes = jnp.array([BLOCK_CODE[c] for c in stack], jnp.int32)
    stacked = pack_stack_params(params["blocks"])
    pooled = transformer_stack_and_pool(
        x, adj, d, padding, stacked, params["out_norm_g"],
        params["out_norm_b"], codes, H, batch_block=batch_block)
    # tiny lane-sparse (E, out_features) head left to XLA
    return jnp.dot(pooled, params["out_w"],
                   preferred_element_type=jnp.float32) + params["out_b"]


# ----------------------------------------------------------------------------
# pure-JAX reference (same bf16 matmul quantisation as the kernel)
# ----------------------------------------------------------------------------
def reference_forward(params, stack, H, nodes_numerical, nodes_categorical,
                      d, adj, padding):
    B, L, _ = nodes_categorical.shape
    E = params["out_norm_g"].shape[-1]
    A = E // H
    scale = float(A) ** -0.5
    neg = jnp.finfo(jnp.float32).min

    pad_c = (padding[:, None, :] | padding[:, :, None])[:, None]   # (B,1,L,L)
    not_adj = jnp.logical_not(adj)[:, None]
    eye = jnp.eye(L, dtype=bool)[None, None]
    pad_diag = pad_c | eye
    coulomb = (-2.0 * jnp.log(d))[:, None]
    electro = (-2.0 * jnp.log(d + 0.2))[:, None]
    potential = (-jnp.log(d))[:, None]
    dd = d[:, None]
    zero = jnp.zeros_like(dd)

    def mb(bt):
        if bt == "L":
            return not_adj, zero
        if bt == "G":
            return pad_c, zero
        if bt == "C":
            return pad_diag, coulomb
        if bt == "P":
            return pad_diag, potential
        if bt == "D":
            return pad_diag, dd
        if bt == "E":
            return pad_c, electro
        if bt == "M":
            m = jnp.concatenate(
                [jnp.broadcast_to(pad_diag, (B, H // 2, L, L)),
                 jnp.broadcast_to(not_adj, (B, H // 2, L, L))], axis=1)
            bb = jnp.concatenate(
                [jnp.broadcast_to(coulomb, (B, H // 2, L, L)),
                 jnp.zeros((B, H // 2, L, L), jnp.float32)], axis=1)
            return m, bb
        raise ValueError(f"unknown block type {bt}")

    x = embed_inputs(params, nodes_numerical, nodes_categorical)
    for bt, blk in zip(stack, params["blocks"]):
        mask, bias = mb(bt)
        x0 = _layernorm(x, blk["ln1_g"], blk["ln1_b"])
        x0b = x0.astype(jnp.bfloat16)
        q = jnp.dot(x0b, blk["wq"], preferred_element_type=jnp.float32)
        k = jnp.dot(x0b, blk["wk"], preferred_element_type=jnp.float32)
        v = jnp.dot(x0b, blk["wv"], preferred_element_type=jnp.float32)
        qh = q.reshape(B, L, H, A).transpose(0, 2, 1, 3)
        kh = k.reshape(B, L, H, A).transpose(0, 2, 1, 3)
        vh = v.reshape(B, L, H, A).transpose(0, 2, 1, 3)
        att = jnp.einsum("bhqa,bhka->bhqk", qh.astype(jnp.bfloat16),
                         kh.astype(jnp.bfloat16),
                         preferred_element_type=jnp.float32) * scale
        att = att + bias
        att = jnp.where(mask, neg, att)
        att = att - jnp.max(att, axis=-1, keepdims=True)
        e = jnp.exp(att)
        p_att = e / jnp.sum(e, axis=-1, keepdims=True)
        vals = jnp.einsum("bhqk,bhka->bhqa", p_att.astype(jnp.bfloat16),
                          vh.astype(jnp.bfloat16),
                          preferred_element_type=jnp.float32)
        vals = vals.transpose(0, 2, 1, 3).reshape(B, L, E)
        x1 = jnp.dot(vals.astype(jnp.bfloat16), blk["wo"],
                     preferred_element_type=jnp.float32)
        x2 = _layernorm(x1 + x0, blk["ln2_g"], blk["ln2_b"])
        h1 = jnp.maximum(jnp.dot(x2.astype(jnp.bfloat16), blk["w1"],
                                 preferred_element_type=jnp.float32)
                         + blk["b1"], 0.0)
        x3 = jnp.dot(h1.astype(jnp.bfloat16), blk["w2"],
                     preferred_element_type=jnp.float32) + blk["b2"]
        x3 = jnp.where(padding[:, :, None], 0.0, x3)
        x = x3 + x2

    xn = _layernorm(x, params["out_norm_g"], params["out_norm_b"])
    pooled = jnp.mean(xn, axis=1)
    return jnp.dot(pooled, params["out_w"],
                   preferred_element_type=jnp.float32) + params["out_b"]


# ----------------------------------------------------------------------------
# deterministic parameter init (synthetic; matches the module's shapes)
# ----------------------------------------------------------------------------
def init_params(key, numerical_features, categorical_features, E, H, n_blocks,
                out_features):
    def dense(k, shape, scale=0.1, dtype=jnp.float32):
        return (scale * jax.random.normal(k, shape, jnp.float32)).astype(dtype)

    keys = jax.random.split(key, 8 + len(categorical_features) + 8 * n_blocks)
    it = iter(keys)

    params = {"num_embed": dense(next(it), (numerical_features, E))}
    cat_embeds = []
    for n_cat in categorical_features:
        t = dense(next(it), (n_cat, E))
        t = t.at[0].set(0.0)             # padding_idx=0 -> zero row
        cat_embeds.append(t)
    params["cat_embeds"] = cat_embeds

    blocks = []
    for _ in range(n_blocks):
        blocks.append({
            "ln1_g": jnp.ones((1, E), jnp.float32),
            "ln1_b": jnp.zeros((1, E), jnp.float32),
            "wq": dense(next(it), (E, E), dtype=jnp.bfloat16),
            "wk": dense(next(it), (E, E), dtype=jnp.bfloat16),
            "wv": dense(next(it), (E, E), dtype=jnp.bfloat16),
            "wo": dense(next(it), (E, E), dtype=jnp.bfloat16),
            "ln2_g": jnp.ones((1, E), jnp.float32),
            "ln2_b": jnp.zeros((1, E), jnp.float32),
            "w1": dense(next(it), (E, 4 * E), dtype=jnp.bfloat16),
            "b1": dense(next(it), (1, 4 * E)),
            "w2": dense(next(it), (4 * E, E), dtype=jnp.bfloat16),
            "b2": dense(next(it), (1, E)),
        })
    params["blocks"] = blocks

    params["out_norm_g"] = jnp.ones((1, E), jnp.float32)
    params["out_norm_b"] = jnp.zeros((1, E), jnp.float32)
    params["out_w"] = dense(next(it), (E, out_features))
    params["out_b"] = dense(next(it), (1, out_features))
    return params


# ----------------------------------------------------------------------------
if __name__ == "__main__":
    B, L = 8, 16
    E, H = 128, 4              # lane-dense embedding width (multiple of 128)
    numerical_features = 6
    categorical_features = [5, 7]
    out_features = 3
    stack = expand_stack("LGCPDEM")      # exercises every block type

    key = jax.random.PRNGKey(0)
    kp, k1, k2, k3, k4 = jax.random.split(key, 5)

    params = init_params(kp, numerical_features, categorical_features, E, H,
                         len(stack), out_features)

    nodes_numerical = jax.random.normal(k1, (B, L, numerical_features),
                                        jnp.float32)
    cat_keys = jax.random.split(k2, len(categorical_features))
    nodes_categorical = jnp.concatenate(
        [jax.random.randint(ck, (B, L, 1), 0, n) for ck, n in
         zip(cat_keys, categorical_features)], axis=-1).astype(jnp.int32)
    d = jax.random.uniform(k3, (B, L, L), jnp.float32, minval=0.1, maxval=2.0)
    adj = jax.random.bernoulli(k4, 0.5, (B, L, L))
    lengths = jnp.array([12, 16, 10, 16, 8, 16, 13, 16], jnp.int32)
    padding = jnp.arange(L)[None, :] >= lengths[:, None]

    out = graph_transformer_forward(params, stack, H, nodes_numerical,
                                    nodes_categorical, d, adj, padding,
                                    batch_block=4)
    out = jax.block_until_ready(out)

    ref = reference_forward(params, stack, H, nodes_numerical,
                            nodes_categorical, d, adj, padding)
    ref = jax.block_until_ready(ref)

    np.testing.assert_allclose(np.asarray(out), np.asarray(ref),
                               rtol=2e-2, atol=2e-2)
    assert out.shape == (B, out_features)
    print("KERNEL_OK")
</pallas_src>

<mosaic_0001>
module attributes {stable_mosaic.version = 11 : i64} {
  func.func @_fused_stack_kernel(%arg0: i32, %arg1: i32, %arg2: memref<7xi32, #tpu.memory_space<smem>>, %arg3: memref<4x16x128xf32, #tpu.memory_space<vmem>>, %arg4: memref<4x16x16xf32, #tpu.memory_space<vmem>>, %arg5: memref<4x16x16xf32, #tpu.memory_space<vmem>>, %arg6: memref<4x16x1xf32, #tpu.memory_space<vmem>>, %arg7: memref<4x1x16xf32, #tpu.memory_space<vmem>>, %arg8: memref<7x1x128xf32, #tpu.memory_space<vmem>>, %arg9: memref<7x1x128xf32, #tpu.memory_space<vmem>>, %arg10: memref<7x128x384xbf16, #tpu.memory_space<vmem>>, %arg11: memref<7x128x128xbf16, #tpu.memory_space<vmem>>, %arg12: memref<7x1x128xf32, #tpu.memory_space<vmem>>, %arg13: memref<7x1x128xf32, #tpu.memory_space<vmem>>, %arg14: memref<7x128x512xbf16, #tpu.memory_space<vmem>>, %arg15: memref<7x1x512xf32, #tpu.memory_space<vmem>>, %arg16: memref<7x512x128xbf16, #tpu.memory_space<vmem>>, %arg17: memref<7x1x128xf32, #tpu.memory_space<vmem>>, %arg18: memref<1x128xf32, #tpu.memory_space<vmem>>, %arg19: memref<1x128xf32, #tpu.memory_space<vmem>>, %arg20: memref<4x1x128xf32, #tpu.memory_space<vmem>>, %arg21: memref<4x16x128xf32, #tpu.memory_space<vmem>>, %arg22: memref<4x16x16xf32, #tpu.memory_space<vmem>>, %arg23: memref<4x16x16xf32, #tpu.memory_space<vmem>>) attributes {dimension_semantics = [#tpu.dimension_semantics<parallel>, #tpu.dimension_semantics<arbitrary>], iteration_bounds = array<i64: 2, 7>, scalar_prefetch = 1 : i64, scratch_operands = 3 : i64, tpu.core_type = #tpu.core_type<tc>, window_params = [{transform_indices = @transform_0, window_bounds = array<i64: 4, 16, 128>}, {transform_indices = @transform_1, window_bounds = array<i64: 4, 16, 16>}, {transform_indices = @transform_2, window_bounds = array<i64: 4, 16, 16>}, {transform_indices = @transform_3, window_bounds = array<i64: 4, 16, 1>}, {transform_indices = @transform_4, window_bounds = array<i64: 4, 1, 16>}, {pipeline_mode = #tpu.pipeline_mode<synchronous>, transform_indices = @transform_5, window_bounds = array<i64: 7, 1, 128>}, {pipeline_mode = #tpu.pipeline_mode<synchronous>, transform_indices = @transform_6, window_bounds = array<i64: 7, 1, 128>}, {pipeline_mode = #tpu.pipeline_mode<synchronous>, transform_indices = @transform_7, window_bounds = array<i64: 7, 128, 384>}, {pipeline_mode = #tpu.pipeline_mode<synchronous>, transform_indices = @transform_8, window_bounds = array<i64: 7, 128, 128>}, {pipeline_mode = #tpu.pipeline_mode<synchronous>, transform_indices = @transform_9, window_bounds = array<i64: 7, 1, 128>}, {pipeline_mode = #tpu.pipeline_mode<synchronous>, transform_indices = @transform_10, window_bounds = array<i64: 7, 1, 128>}, {pipeline_mode = #tpu.pipeline_mode<synchronous>, transform_indices = @transform_11, window_bounds = array<i64: 7, 128, 512>}, {pipeline_mode = #tpu.pipeline_mode<synchronous>, transform_indices = @transform_12, window_bounds = array<i64: 7, 1, 512>}, {pipeline_mode = #tpu.pipeline_mode<synchronous>, transform_indices = @transform_13, window_bounds = array<i64: 7, 512, 128>}, {pipeline_mode = #tpu.pipeline_mode<synchronous>, transform_indices = @transform_14, window_bounds = array<i64: 7, 1, 128>}, {pipeline_mode = #tpu.pipeline_mode<synchronous>, transform_indices = @transform_15, window_bounds = array<i64: 1, 128>}, {pipeline_mode = #tpu.pipeline_mode<synchronous>, transform_indices = @transform_16, window_bounds = array<i64: 1, 128>}, {transform_indices = @transform_17, window_bounds = array<i64: 4, 1, 128>}]} {
    %c0_i32 = arith.constant 0 : i32
    %0 = arith.cmpi eq, %arg1, %c0_i32 : i32
    %1 = arith.extui %0 : i1 to i32
    %c0_i32_0 = arith.constant 0 : i32
    %2 = arith.cmpi ne, %1, %c0_i32_0 : i32
    scf.if %2 {
      %c0_106 = arith.constant 0 : index
      %c0_107 = arith.constant 0 : index
      %c0_108 = arith.constant 0 : index
      %316 = vector.load %arg3[%c0_106, %c0_107, %c0_108] : memref<4x16x128xf32, #tpu.memory_space<vmem>>, vector<4x16x128xf32>
      %c0_109 = arith.constant 0 : index
      %c0_110 = arith.constant 0 : index
      %c0_111 = arith.constant 0 : index
      %317 = vector.load %arg21[%c0_109, %c0_110, %c0_111] : memref<4x16x128xf32, #tpu.memory_space<vmem>>, vector<4x16x128xf32>
      tpu.vector_store %arg21[%c0_109, %c0_110, %c0_111], %316 {strides = array<i32>} : memref<4x16x128xf32, #tpu.memory_space<vmem>>, vector<4x16x128xf32>,
      %c0_112 = arith.constant 0 : index
      %c0_113 = arith.constant 0 : index
      %c0_114 = arith.constant 0 : index
      %318 = vector.load %arg5[%c0_112, %c0_113, %c0_114] : memref<4x16x16xf32, #tpu.memory_space<vmem>>, vector<4x16x16xf32>
      %319 = math.log %318 : vector<4x16x16xf32>
      %c0_115 = arith.constant 0 : index
      %c0_116 = arith.constant 0 : index
      %c0_117 = arith.constant 0 : index
      %320 = vector.load %arg22[%c0_115, %c0_116, %c0_117] : memref<4x16x16xf32, #tpu.memory_space<vmem>>, vector<4x16x16xf32>
      tpu.vector_store %arg22[%c0_115, %c0_116, %c0_117], %319 {strides = array<i32>} : memref<4x16x16xf32, #tpu.memory_space<vmem>>, vector<4x16x16xf32>,
      %c0_118 = arith.constant 0 : index
      %c0_119 = arith.constant 0 : index
      %c0_120 = arith.constant 0 : index
      %321 = vector.load %arg5[%c0_118, %c0_119, %c0_120] : memref<4x16x16xf32, #tpu.memory_space<vmem>>, vector<4x16x16xf32>
      %cst_121 = arith.constant 2.000000e-01 : f32
      %322 = vector.broadcast %cst_121 : f32 to vector<4x16x16xf32>
      %323 = arith.addf %321, %322 : vector<4x16x16xf32>
      %324 = math.log %323 : vector<4x16x16xf32>
      %c0_122 = arith.constant 0 : index
      %c0_123 = arith.constant 0 : index
      %c0_124 = arith.constant 0 : index
      %325 = vector.load %arg23[%c0_122, %c0_123, %c0_124] : memref<4x16x16xf32, #tpu.memory_space<vmem>>, vector<4x16x16xf32>
      tpu.vector_store %arg23[%c0_122, %c0_123, %c0_124], %324 {strides = array<i32>} : memref<4x16x16xf32, #tpu.memory_space<vmem>>, vector<4x16x16xf32>,
    } else {
    }
    %c0 = arith.constant 0 : index
    %c0_1 = arith.constant 0 : index
    %c0_2 = arith.constant 0 : index
    %3 = vector.load %arg21[%c0, %c0_1, %c0_2] : memref<4x16x128xf32, #tpu.memory_space<vmem>>, vector<4x16x128xf32>
    %4 = arith.index_cast %arg1 : i32 to index
    %5 = memref.load %arg2[%4] : memref<7xi32, #tpu.memory_space<smem>>
    %c0_i32_3 = arith.constant 0 : i32
    %6 = arith.cmpi eq, %5, %c0_i32_3 : i32
    %7 = arith.extui %6 : i1 to i32
    %8 = arith.sitofp %7 : i32 to f32
    %c1_i32 = arith.constant 1 : i32
    %9 = arith.cmpi eq, %5, %c1_i32 : i32
    %10 = arith.extui %9 : i1 to i32
    %11 = arith.sitofp %10 : i32 to f32
    %c2_i32 = arith.constant 2 : i32
    %12 = arith.cmpi eq, %5, %c2_i32 : i32
    %13 = arith.extui %12 : i1 to i32
    %14 = arith.sitofp %13 : i32 to f32
    %c3_i32 = arith.constant 3 : i32
    %15 = arith.cmpi eq, %5, %c3_i32 : i32
    %16 = arith.extui %15 : i1 to i32
    %17 = arith.sitofp %16 : i32 to f32
    %c4_i32 = arith.constant 4 : i32
    %18 = arith.cmpi eq, %5, %c4_i32 : i32
    %19 = arith.extui %18 : i1 to i32
    %20 = arith.sitofp %19 : i32 to f32
    %c5_i32 = arith.constant 5 : i32
    %21 = arith.cmpi eq, %5, %c5_i32 : i32
    %22 = arith.extui %21 : i1 to i32
    %23 = arith.sitofp %22 : i32 to f32
    %c6_i32 = arith.constant 6 : i32
    %24 = arith.cmpi eq, %5, %c6_i32 : i32
    %25 = arith.extui %24 : i1 to i32
    %26 = arith.sitofp %25 : i32 to f32
    %c0_4 = arith.constant 0 : index
    %c0_5 = arith.constant 0 : index
    %c0_6 = arith.constant 0 : index
    %27 = vector.load %arg6[%c0_4, %c0_5, %c0_6] : memref<4x16x1xf32, #tpu.memory_space<vmem>>, vector<4x16x1xf32>
    %c0_7 = arith.constant 0 : index
    %c0_8 = arith.constant 0 : index
    %c0_9 = arith.constant 0 : index
    %28 = vector.load %arg7[%c0_7, %c0_8, %c0_9] : memref<4x1x16xf32, #tpu.memory_space<vmem>>, vector<4x1x16xf32>
    %29 = vector.broadcast %27 : vector<4x16x1xf32> to vector<4x16x16xf32>
    %30 = vector.broadcast %28 : vector<4x1x16xf32> to vector<4x16x16xf32>
    %31 = arith.addf %29, %30 : vector<4x16x16xf32>
    %cst = arith.constant 5.000000e-01 : f32
    %32 = vector.broadcast %cst : f32 to vector<4x16x16xf32>
    %33 = arith.cmpf ogt, %31, %32 : vector<4x16x16xf32>
    %34 = arith.extui %33 : vector<4x16x16xi1> to vector<4x16x16xi32>
    %35 = arith.sitofp %34 : vector<4x16x16xi32> to vector<4x16x16xf32>
    %36 = tpu.iota {dimensions = array<i32: 0>} : vector<16x16xi32>
    %37 = tpu.iota {dimensions = array<i32: 1>} : vector<16x16xi32>
    %38 = arith.cmpi eq, %36, %37 : vector<16x16xi32>
    %39 = arith.extui %38 : vector<16x16xi1> to vector<16x16xi32>
    %40 = arith.sitofp %39 : vector<16x16xi32> to vector<16x16xf32>
    %41 = vector.shape_cast %40 : vector<16x16xf32> to vector<1x16x16xf32>
    %42 = vector.broadcast %41 : vector<1x16x16xf32> to vector<4x16x16xf32>
    %43 = arith.maximumf %35, %42 : vector<4x16x16xf32>
    %c0_10 = arith.constant 0 : index
    %c0_11 = arith.constant 0 : index
    %c0_12 = arith.constant 0 : index
    %44 = vector.load %arg4[%c0_10, %c0_11, %c0_12] : memref<4x16x16xf32, #tpu.memory_space<vmem>>, vector<4x16x16xf32>
    %cst_13 = arith.constant 5.000000e-01 : f32
    %45 = vector.broadcast %cst_13 : f32 to vector<4x16x16xf32>
    %46 = arith.cmpf olt, %44, %45 : vector<4x16x16xf32>
    %47 = arith.extui %46 : vector<4x16x16xi1> to vector<4x16x16xi32>
    %48 = arith.sitofp %47 : vector<4x16x16xi32> to vector<4x16x16xf32>
    %49 = arith.addf %11, %23 : f32
    %50 = vector.broadcast %8 : f32 to vector<4x16x16xf32>
    %51 = arith.mulf %50, %48 : vector<4x16x16xf32>
    %52 = vector.broadcast %49 : f32 to vector<4x16x16xf32>
    %53 = arith.mulf %52, %35 : vector<4x16x16xf32>
    %54 = arith.addf %51, %53 : vector<4x16x16xf32>
    %cst_14 = arith.constant 1.000000e+00 : f32
    %55 = arith.subf %cst_14, %8 : f32
    %56 = arith.subf %55, %49 : f32
    %57 = vector.broadcast %56 : f32 to vector<4x16x16xf32>
    %58 = arith.mulf %57, %43 : vector<4x16x16xf32>
    %59 = arith.addf %54, %58 : vector<4x16x16xf32>
    %60 = arith.addf %8, %26 : f32
    %61 = vector.broadcast %60 : f32 to vector<4x16x16xf32>
    %62 = arith.mulf %61, %48 : vector<4x16x16xf32>
    %63 = vector.broadcast %49 : f32 to vector<4x16x16xf32>
    %64 = arith.mulf %63, %35 : vector<4x16x16xf32>
    %65 = arith.addf %62, %64 : vector<4x16x16xf32>
    %cst_15 = arith.constant 1.000000e+00 : f32
    %66 = arith.subf %cst_15, %60 : f32
    %67 = arith.subf %66, %49 : f32
    %68 = vector.broadcast %67 : f32 to vector<4x16x16xf32>
    %69 = arith.mulf %68, %43 : vector<4x16x16xf32>
    %70 = arith.addf %65, %69 : vector<4x16x16xf32>
    %c0_16 = arith.constant 0 : index
    %c0_17 = arith.constant 0 : index
    %c0_18 = arith.constant 0 : index
    %71 = vector.load %arg5[%c0_16, %c0_17, %c0_18] : memref<4x16x16xf32, #tpu.memory_space<vmem>>, vector<4x16x16xf32>
    %c0_19 = arith.constant 0 : index
    %c0_20 = arith.constant 0 : index
    %c0_21 = arith.constant 0 : index
    %72 = vector.load %arg22[%c0_19, %c0_20, %c0_21] : memref<4x16x16xf32, #tpu.memory_space<vmem>>, vector<4x16x16xf32>
    %cst_22 = arith.constant -2.000000e+00 : f32
    %73 = vector.broadcast %cst_22 : f32 to vector<4x16x16xf32>
    %74 = arith.mulf %73, %72 : vector<4x16x16xf32>
    %cst_23 = arith.constant 0.000000e+00 : f32
    %75 = vector.broadcast %cst_23 : f32 to vector<4x16x16xf32>
    %76 = arith.subf %75, %72 : vector<4x16x16xf32>
    %c0_24 = arith.constant 0 : index
    %c0_25 = arith.constant 0 : index
    %c0_26 = arith.constant 0 : index
    %77 = vector.load %arg23[%c0_24, %c0_25, %c0_26] : memref<4x16x16xf32, #tpu.memory_space<vmem>>, vector<4x16x16xf32>
    %cst_27 = arith.constant -2.000000e+00 : f32
    %78 = vector.broadcast %cst_27 : f32 to vector<4x16x16xf32>
    %79 = arith.mulf %78, %77 : vector<4x16x16xf32>
    %cst_28 = arith.constant 0.000000e+00 : f32
    %80 = vector.broadcast %cst_28 : f32 to vector<4x16x16xf32>
    %81 = vector.broadcast %20 : f32 to vector<4x16x16xf32>
    %82 = arith.mulf %81, %71 : vector<4x16x16xf32>
    %83 = vector.broadcast %17 : f32 to vector<4x16x16xf32>
    %cst_29 = arith.constant 5.000000e-01 : f32
    %84 = vector.broadcast %cst_29 : f32 to vector<4x16x16xf32>
    %85 = arith.cmpf ogt, %83, %84 : vector<4x16x16xf32>
    %86 = arith.select %85, %76, %80 : vector<4x16x16xi1>, vector<4x16x16xf32>
    %87 = arith.addf %82, %86 : vector<4x16x16xf32>
    %88 = vector.broadcast %23 : f32 to vector<4x16x16xf32>
    %cst_30 = arith.constant 5.000000e-01 : f32
    %89 = vector.broadcast %cst_30 : f32 to vector<4x16x16xf32>
    %90 = arith.cmpf ogt, %88, %89 : vector<4x16x16xf32>
    %91 = arith.select %90, %79, %80 : vector<4x16x16xi1>, vector<4x16x16xf32>
    %92 = arith.addf %87, %91 : vector<4x16x16xf32>
    %93 = arith.addf %14, %26 : f32
    %94 = vector.broadcast %93 : f32 to vector<4x16x16xf32>
    %cst_31 = arith.constant 5.000000e-01 : f32
    %95 = vector.broadcast %cst_31 : f32 to vector<4x16x16xf32>
    %96 = arith.cmpf ogt, %94, %95 : vector<4x16x16xf32>
    %97 = arith.select %96, %74, %80 : vector<4x16x16xi1>, vector<4x16x16xf32>
    %98 = arith.addf %92, %97 : vector<4x16x16xf32>
    %99 = vector.broadcast %14 : f32 to vector<4x16x16xf32>
    %cst_32 = arith.constant 5.000000e-01 : f32
    %100 = vector.broadcast %cst_32 : f32 to vector<4x16x16xf32>
    %101 = arith.cmpf ogt, %99, %100 : vector<4x16x16xf32>
    %102 = arith.select %101, %74, %80 : vector<4x16x16xi1>, vector<4x16x16xf32>
    %103 = arith.addf %92, %102 : vector<4x16x16xf32>
    %104 = arith.index_cast %arg1 : i32 to index
    %c0_33 = arith.constant 0 : index
    %c0_34 = arith.constant 0 : index
    %105 = vector.load %arg8[%104, %c0_33, %c0_34] : memref<7x1x128xf32, #tpu.memory_space<vmem>>, vector<1x1x128xf32>
    %106 = vector.shape_cast %105 : vector<1x1x128xf32> to vector<1x128xf32>
    %107 = arith.index_cast %arg1 : i32 to index
    %c0_35 = arith.constant 0 : index
    %c0_36 = arith.constant 0 : index
    %108 = vector.load %arg9[%107, %c0_35, %c0_36] : memref<7x1x128xf32, #tpu.memory_space<vmem>>, vector<1x1x128xf32>
    %109 = vector.shape_cast %108 : vector<1x1x128xf32> to vector<1x128xf32>
    %110 = arith.index_cast %arg1 : i32 to index
    %c0_37 = arith.constant 0 : index
    %c0_38 = arith.constant 0 : index
    %111 = vector.load %arg12[%110, %c0_37, %c0_38] : memref<7x1x128xf32, #tpu.memory_space<vmem>>, vector<1x1x128xf32>
    %112 = vector.shape_cast %111 : vector<1x1x128xf32> to vector<1x128xf32>
    %113 = arith.index_cast %arg1 : i32 to index
    %c0_39 = arith.constant 0 : index
    %c0_40 = arith.constant 0 : index
    %114 = vector.load %arg13[%113, %c0_39, %c0_40] : memref<7x1x128xf32, #tpu.memory_space<vmem>>, vector<1x1x128xf32>
    %115 = vector.shape_cast %114 : vector<1x1x128xf32> to vector<1x128xf32>
    %116 = arith.index_cast %arg1 : i32 to index
    %c0_41 = arith.constant 0 : index
    %c0_42 = arith.constant 0 : index
    %117 = vector.load %arg10[%116, %c0_41, %c0_42] : memref<7x128x384xbf16, #tpu.memory_space<vmem>>, vector<1x128x384xbf16>
    %118 = vector.shape_cast %117 : vector<1x128x384xbf16> to vector<128x384xbf16>
    %119 = arith.index_cast %arg1 : i32 to index
    %c0_43 = arith.constant 0 : index
    %c0_44 = arith.constant 0 : index
    %120 = vector.load %arg11[%119, %c0_43, %c0_44] : memref<7x128x128xbf16, #tpu.memory_space<vmem>>, vector<1x128x128xbf16>
    %121 = vector.shape_cast %120 : vector<1x128x128xbf16> to vector<128x128xbf16>
    %122 = arith.index_cast %arg1 : i32 to index
    %c0_45 = arith.constant 0 : index
    %c0_46 = arith.constant 0 : index
    %123 = vector.load %arg14[%122, %c0_45, %c0_46] : memref<7x128x512xbf16, #tpu.memory_space<vmem>>, vector<1x128x512xbf16>
    %124 = vector.shape_cast %123 : vector<1x128x512xbf16> to vector<128x512xbf16>
    %125 = arith.index_cast %arg1 : i32 to index
    %c0_47 = arith.constant 0 : index
    %c0_48 = arith.constant 0 : index
    %126 = vector.load %arg15[%125, %c0_47, %c0_48] : memref<7x1x512xf32, #tpu.memory_space<vmem>>, vector<1x1x512xf32>
    %127 = vector.shape_cast %126 : vector<1x1x512xf32> to vector<1x512xf32>
    %128 = arith.index_cast %arg1 : i32 to index
    %c0_49 = arith.constant 0 : index
    %c0_50 = arith.constant 0 : index
    %129 = vector.load %arg16[%128, %c0_49, %c0_50] : memref<7x512x128xbf16, #tpu.memory_space<vmem>>, vector<1x512x128xbf16>
    %130 = vector.shape_cast %129 : vector<1x512x128xbf16> to vector<512x128xbf16>
    %131 = arith.index_cast %arg1 : i32 to index
    %c0_51 = arith.constant 0 : index
    %c0_52 = arith.constant 0 : index
    %132 = vector.load %arg17[%131, %c0_51, %c0_52] : memref<7x1x128xf32, #tpu.memory_space<vmem>>, vector<1x1x128xf32>
    %133 = vector.shape_cast %132 : vector<1x1x128xf32> to vector<1x128xf32>
    %cst_53 = arith.constant dense<0.000000e+00> : vector<4x16xf32>
    %134 = vector.multi_reduction <add>, %3, %cst_53 [2] : vector<4x16x128xf32> to vector<4x16xf32>
    %135 = vector.shape_cast %134 : vector<4x16xf32> to vector<4x16x1xf32>
    %cst_54 = arith.constant 1.280000e+02 : f32
    %136 = vector.broadcast %cst_54 : f32 to vector<4x16x1xf32>
    %137 = arith.divf %135, %136 : vector<4x16x1xf32>
    %138 = vector.broadcast %137 : vector<4x16x1xf32> to vector<4x16x128xf32>
    %139 = arith.subf %3, %138 : vector<4x16x128xf32>
    %140 = arith.mulf %139, %139 : vector<4x16x128xf32>
    %cst_55 = arith.constant dense<0.000000e+00> : vector<4x16xf32>
    %141 = vector.multi_reduction <add>, %140, %cst_55 [2] : vector<4x16x128xf32> to vector<4x16xf32>
    %142 = vector.shape_cast %141 : vector<4x16xf32> to vector<4x16x1xf32>
    %cst_56 = arith.constant 1.280000e+02 : f32
    %143 = vector.broadcast %cst_56 : f32 to vector<4x16x1xf32>
    %144 = arith.divf %142, %143 : vector<4x16x1xf32>
    %cst_57 = arith.constant 9.99999974E-6 : f32
    %145 = vector.broadcast %cst_57 : f32 to vector<4x16x1xf32>
    %146 = arith.addf %144, %145 : vector<4x16x1xf32>
    %147 = math.rsqrt %146 : vector<4x16x1xf32>
    %148 = vector.broadcast %147 : vector<4x16x1xf32> to vector<4x16x128xf32>
    %149 = arith.mulf %139, %148 : vector<4x16x128xf32>
    %150 = vector.shape_cast %106 : vector<1x128xf32> to vector<1x1x128xf32>
    %151 = vector.broadcast %150 : vector<1x1x128xf32> to vector<4x16x128xf32>
    %152 = arith.mulf %149, %151 : vector<4x16x128xf32>
    %153 = vector.shape_cast %109 : vector<1x128xf32> to vector<1x1x128xf32>
    %154 = vector.broadcast %153 : vector<1x1x128xf32> to vector<4x16x128xf32>
    %155 = arith.addf %152, %154 : vector<4x16x128xf32>
    %156 = vector.shape_cast %155 : vector<4x16x128xf32> to vector<64x128xf32>
    %157 = arith.truncf %156 : vector<64x128xf32> to vector<64x128xbf16>
    %cst_58 = arith.constant dense<0.000000e+00> : vector<64x384xf32>
    %158 = tpu.matmul %157, %118, %cst_58 {dimension_numbers = #tpu.dot_dimension_numbers<[1], [0], [0], [1], [0, 0, 1, 1], [], []>} : vector<64x128xbf16>, vector<128x384xbf16>, vector<64x384xf32> -> vector<64x384xf32>
    %159 = vector.shape_cast %158 : vector<64x384xf32> to vector<4x16x384xf32>
    %160 = vector.extract_strided_slice %159 {offsets = [0, 0, 0], sizes = [4, 16, 32], strides = [1, 1, 1]} : vector<4x16x384xf32> to vector<4x16x32xf32>
    %161 = arith.truncf %160 : vector<4x16x32xf32> to vector<4x16x32xbf16>
    %162 = vector.extract_strided_slice %159 {offsets = [0, 0, 128], sizes = [4, 16, 32], strides = [1, 1, 1]} : vector<4x16x384xf32> to vector<4x16x32xf32>
    %163 = arith.truncf %162 : vector<4x16x32xf32> to vector<4x16x32xbf16>
    %164 = vector.extract_strided_slice %159 {offsets = [0, 0, 256], sizes = [4, 16, 32], strides = [1, 1, 1]} : vector<4x16x384xf32> to vector<4x16x32xf32>
    %165 = arith.truncf %164 : vector<4x16x32xf32> to vector<4x16x32xbf16>
    "tpu.trace_start"() <{level = 10 : i32, message = "bqa,bka->bqk"}> : () -> ()
    %cst_59 = arith.constant dense<0.000000e+00> : vector<4x16x16xf32>
    %166 = tpu.matmul %161, %163, %cst_59 {dimension_numbers = #tpu.dot_dimension_numbers<[2], [2], [1], [1], [0, 0, 0, 1, 1, 1], [0], [0]>} : vector<4x16x32xbf16>, vector<4x16x32xbf16>, vector<4x16x16xf32> -> vector<4x16x16xf32>
    "tpu.trace_stop"() : () -> ()
    %cst_60 = arith.constant 0.176776692 : f32
    %167 = vector.broadcast %cst_60 : f32 to vector<4x16x16xf32>
    %168 = arith.mulf %166, %167 : vector<4x16x16xf32>
    %169 = arith.addf %168, %98 : vector<4x16x16xf32>
    %cst_61 = arith.constant 5.000000e-01 : f32
    %170 = vector.broadcast %cst_61 : f32 to vector<4x16x16xf32>
    %171 = arith.cmpf ogt, %59, %170 : vector<4x16x16xf32>
    %cst_62 = arith.constant -3.40282347E+38 : f32
    %172 = vector.broadcast %cst_62 : f32 to vector<4x16x16xf32>
    %173 = arith.select %171, %172, %169 : vector<4x16x16xi1>, vector<4x16x16xf32>
    %cst_63 = arith.constant dense<0xFF800000> : vector<4x16xf32>
    %174 = vector.multi_reduction <maximumf>, %173, %cst_63 [2] : vector<4x16x16xf32> to vector<4x16xf32>
    %175 = vector.shape_cast %174 : vector<4x16xf32> to vector<4x16x1xf32>
    %176 = vector.broadcast %175 : vector<4x16x1xf32> to vector<4x16x16xf32>
    %177 = arith.subf %173, %176 : vector<4x16x16xf32>
    %178 = math.exp %177 : vector<4x16x16xf32>
    %cst_64 = arith.constant dense<0.000000e+00> : vector<4x16xf32>
    %179 = vector.multi_reduction <add>, %178, %cst_64 [2] : vector<4x16x16xf32> to vector<4x16xf32>
    %180 = vector.shape_cast %179 : vector<4x16xf32> to vector<4x16x1xf32>
    %181 = tpu.reciprocal %180 {approx = true} : vector<4x16x1xf32> -> vector<4x16x1xf32>
    %182 = vector.broadcast %181 : vector<4x16x1xf32> to vector<4x16x16xf32>
    %183 = arith.mulf %178, %182 : vector<4x16x16xf32>
    %184 = arith.truncf %183 : vector<4x16x16xf32> to vector<4x16x16xbf16>
    "tpu.trace_start"() <{level = 10 : i32, message = "bqk,bka->bqa"}> : () -> ()
    %cst_65 = arith.constant dense<0.000000e+00> : vector<4x16x32xf32>
    %185 = tpu.matmul %184, %165, %cst_65 {dimension_numbers = #tpu.dot_dimension_numbers<[2], [1], [1], [2], [0, 0, 0, 1, 1, 2], [0], [0]>} : vector<4x16x16xbf16>, vector<4x16x32xbf16>, vector<4x16x32xf32> -> vector<4x16x32xf32>
    "tpu.trace_stop"() : () -> ()
    %186 = vector.extract_strided_slice %159 {offsets = [0, 0, 32], sizes = [4, 16, 32], strides = [1, 1, 1]} : vector<4x16x384xf32> to vector<4x16x32xf32>
    %187 = arith.truncf %186 : vector<4x16x32xf32> to vector<4x16x32xbf16>
    %188 = vector.extract_strided_slice %159 {offsets = [0, 0, 160], sizes = [4, 16, 32], strides = [1, 1, 1]} : vector<4x16x384xf32> to vector<4x16x32xf32>
    %189 = arith.truncf %188 : vector<4x16x32xf32> to vector<4x16x32xbf16>
    %190 = vector.extract_strided_slice %159 {offsets = [0, 0, 288], sizes = [4, 16, 32], strides = [1, 1, 1]} : vector<4x16x384xf32> to vector<4x16x32xf32>
    %191 = arith.truncf %190 : vector<4x16x32xf32> to vector<4x16x32xbf16>
    "tpu.trace_start"() <{level = 10 : i32, message = "bqa,bka->bqk"}> : () -> ()
    %cst_66 = arith.constant dense<0.000000e+00> : vector<4x16x16xf32>
    %192 = tpu.matmul %187, %189, %cst_66 {dimension_numbers = #tpu.dot_dimension_numbers<[2], [2], [1], [1], [0, 0, 0, 1, 1, 1], [0], [0]>} : vector<4x16x32xbf16>, vector<4x16x32xbf16>, vector<4x16x16xf32> -> vector<4x16x16xf32>
    "tpu.trace_stop"() : () -> ()
    %cst_67 = arith.constant 0.176776692 : f32
    %193 = vector.broadcast %cst_67 : f32 to vector<4x16x16xf32>
    %194 = arith.mulf %192, %193 : vector<4x16x16xf32>
    %195 = arith.addf %194, %98 : vector<4x16x16xf32>
    %cst_68 = arith.constant 5.000000e-01 : f32
    %196 = vector.broadcast %cst_68 : f32 to vector<4x16x16xf32>
    %197 = arith.cmpf ogt, %59, %196 : vector<4x16x16xf32>
    %cst_69 = arith.constant -3.40282347E+38 : f32
    %198 = vector.broadcast %cst_69 : f32 to vector<4x16x16xf32>
    %199 = arith.select %197, %198, %195 : vector<4x16x16xi1>, vector<4x16x16xf32>
    %cst_70 = arith.constant dense<0xFF800000> : vector<4x16xf32>
    %200 = vector.multi_reduction <maximumf>, %199, %cst_70 [2] : vector<4x16x16xf32> to vector<4x16xf32>
    %201 = vector.shape_cast %200 : vector<4x16xf32> to vector<4x16x1xf32>
    %202 = vector.broadcast %201 : vector<4x16x1xf32> to vector<4x16x16xf32>
    %203 = arith.subf %199, %202 : vector<4x16x16xf32>
    %204 = math.exp %203 : vector<4x16x16xf32>
    %cst_71 = arith.constant dense<0.000000e+00> : vector<4x16xf32>
    %205 = vector.multi_reduction <add>, %204, %cst_71 [2] : vector<4x16x16xf32> to vector<4x16xf32>
    %206 = vector.shape_cast %205 : vector<4x16xf32> to vector<4x16x1xf32>
    %207 = tpu.reciprocal %206 {approx = true} : vector<4x16x1xf32> -> vector<4x16x1xf32>
    %208 = vector.broadcast %207 : vector<4x16x1xf32> to vector<4x16x16xf32>
    %209 = arith.mulf %204, %208 : vector<4x16x16xf32>
    %210 = arith.truncf %209 : vector<4x16x16xf32> to vector<4x16x16xbf16>
    "tpu.trace_start"() <{level = 10 : i32, message = "bqk,bka->bqa"}> : () -> ()
    %cst_72 = arith.constant dense<0.000000e+00> : vector<4x16x32xf32>
    %211 = tpu.matmul %210, %191, %cst_72 {dimension_numbers = #tpu.dot_dimension_numbers<[2], [1], [1], [2], [0, 0, 0, 1, 1, 2], [0], [0]>} : vector<4x16x16xbf16>, vector<4x16x32xbf16>, vector<4x16x32xf32> -> vector<4x16x32xf32>
    "tpu.trace_stop"() : () -> ()
    %212 = vector.extract_strided_slice %159 {offsets = [0, 0, 64], sizes = [4, 16, 32], strides = [1, 1, 1]} : vector<4x16x384xf32> to vector<4x16x32xf32>
    %213 = arith.truncf %212 : vector<4x16x32xf32> to vector<4x16x32xbf16>
    %214 = vector.extract_strided_slice %159 {offsets = [0, 0, 192], sizes = [4, 16, 32], strides = [1, 1, 1]} : vector<4x16x384xf32> to vector<4x16x32xf32>
    %215 = arith.truncf %214 : vector<4x16x32xf32> to vector<4x16x32xbf16>
    %216 = vector.extract_strided_slice %159 {offsets = [0, 0, 320], sizes = [4, 16, 32], strides = [1, 1, 1]} : vector<4x16x384xf32> to vector<4x16x32xf32>
    %217 = arith.truncf %216 : vector<4x16x32xf32> to vector<4x16x32xbf16>
    "tpu.trace_start"() <{level = 10 : i32, message = "bqa,bka->bqk"}> : () -> ()
    %cst_73 = arith.constant dense<0.000000e+00> : vector<4x16x16xf32>
    %218 = tpu.matmul %213, %215, %cst_73 {dimension_numbers = #tpu.dot_dimension_numbers<[2], [2], [1], [1], [0, 0, 0, 1, 1, 1], [0], [0]>} : vector<4x16x32xbf16>, vector<4x16x32xbf16>, vector<4x16x16xf32> -> vector<4x16x16xf32>
    "tpu.trace_stop"() : () -> ()
    %cst_74 = arith.constant 0.176776692 : f32
    %219 = vector.broadcast %cst_74 : f32 to vector<4x16x16xf32>
    %220 = arith.mulf %218, %219 : vector<4x16x16xf32>
    %221 = arith.addf %220, %103 : vector<4x16x16xf32>
    %cst_75 = arith.constant 5.000000e-01 : f32
    %222 = vector.broadcast %cst_75 : f32 to vector<4x16x16xf32>
    %223 = arith.cmpf ogt, %70, %222 : vector<4x16x16xf32>
    %cst_76 = arith.constant -3.40282347E+38 : f32
    %224 = vector.broadcast %cst_76 : f32 to vector<4x16x16xf32>
    %225 = arith.select %223, %224, %221 : vector<4x16x16xi1>, vector<4x16x16xf32>
    %cst_77 = arith.constant dense<0xFF800000> : vector<4x16xf32>
    %226 = vector.multi_reduction <maximumf>, %225, %cst_77 [2] : vector<4x16x16xf32> to vector<4x16xf32>
    %227 = vector.shape_cast %226 : vector<4x16xf32> to vector<4x16x1xf32>
    %228 = vector.broadcast %227 : vector<4x16x1xf32> to vector<4x16x16xf32>
    %229 = arith.subf %225, %228 : vector<4x16x16xf32>
    %230 = math.exp %229 : vector<4x16x16xf32>
    %cst_78 = arith.constant dense<0.000000e+00> : vector<4x16xf32>
    %231 = vector.multi_reduction <add>, %230, %cst_78 [2] : vector<4x16x16xf32> to vector<4x16xf32>
    %232 = vector.shape_cast %231 : vector<4x16xf32> to vector<4x16x1xf32>
    %233 = tpu.reciprocal %232 {approx = true} : vector<4x16x1xf32> -> vector<4x16x1xf32>
    %234 = vector.broadcast %233 : vector<4x16x1xf32> to vector<4x16x16xf32>
    %235 = arith.mulf %230, %234 : vector<4x16x16xf32>
    %236 = arith.truncf %235 : vector<4x16x16xf32> to vector<4x16x16xbf16>
    "tpu.trace_start"() <{level = 10 : i32, message = "bqk,bka->bqa"}> : () -> ()
    %cst_79 = arith.constant dense<0.000000e+00> : vector<4x16x32xf32>
    %237 = tpu.matmul %236, %217, %cst_79 {dimension_numbers = #tpu.dot_dimension_numbers<[2], [1], [1], [2], [0, 0, 0, 1, 1, 2], [0], [0]>} : vector<4x16x16xbf16>, vector<4x16x32xbf16>, vector<4x16x32xf32> -> vector<4x16x32xf32>
    "tpu.trace_stop"() : () -> ()
    %238 = vector.extract_strided_slice %159 {offsets = [0, 0, 96], sizes = [4, 16, 32], strides = [1, 1, 1]} : vector<4x16x384xf32> to vector<4x16x32xf32>
    %239 = arith.truncf %238 : vector<4x16x32xf32> to vector<4x16x32xbf16>
    %240 = vector.extract_strided_slice %159 {offsets = [0, 0, 224], sizes = [4, 16, 32], strides = [1, 1, 1]} : vector<4x16x384xf32> to vector<4x16x32xf32>
    %241 = arith.truncf %240 : vector<4x16x32xf32> to vector<4x16x32xbf16>
    %242 = vector.extract_strided_slice %159 {offsets = [0, 0, 352], sizes = [4, 16, 32], strides = [1, 1, 1]} : vector<4x16x384xf32> to vector<4x16x32xf32>
    %243 = arith.truncf %242 : vector<4x16x32xf32> to vector<4x16x32xbf16>
    "tpu.trace_start"() <{level = 10 : i32, message = "bqa,bka->bqk"}> : () -> ()
    %cst_80 = arith.constant dense<0.000000e+00> : vector<4x16x16xf32>
    %244 = tpu.matmul %239, %241, %cst_80 {dimension_numbers = #tpu.dot_dimension_numbers<[2], [2], [1], [1], [0, 0, 0, 1, 1, 1], [0], [0]>} : vector<4x16x32xbf16>, vector<4x16x32xbf16>, vector<4x16x16xf32> -> vector<4x16x16xf32>
    "tpu.trace_stop"() : () -> ()
    %cst_81 = arith.constant 0.176776692 : f32
    %245 = vector.broadcast %cst_81 : f32 to vector<4x16x16xf32>
    %246 = arith.mulf %244, %245 : vector<4x16x16xf32>
    %247 = arith.addf %246, %103 : vector<4x16x16xf32>
    %cst_82 = arith.constant 5.000000e-01 : f32
    %248 = vector.broadcast %cst_82 : f32 to vector<4x16x16xf32>
    %249 = arith.cmpf ogt, %70, %248 : vector<4x16x16xf32>
    %cst_83 = arith.constant -3.40282347E+38 : f32
    %250 = vector.broadcast %cst_83 : f32 to vector<4x16x16xf32>
    %251 = arith.select %249, %250, %247 : vector<4x16x16xi1>, vector<4x16x16xf32>
    %cst_84 = arith.constant dense<0xFF800000> : vector<4x16xf32>
    %252 = vector.multi_reduction <maximumf>, %251, %cst_84 [2] : vector<4x16x16xf32> to vector<4x16xf32>
    %253 = vector.shape_cast %252 : vector<4x16xf32> to vector<4x16x1xf32>
    %254 = vector.broadcast %253 : vector<4x16x1xf32> to vector<4x16x16xf32>
    %255 = arith.subf %251, %254 : vector<4x16x16xf32>
    %256 = math.exp %255 : vector<4x16x16xf32>
    %cst_85 = arith.constant dense<0.000000e+00> : vector<4x16xf32>
    %257 = vector.multi_reduction <add>, %256, %cst_85 [2] : vector<4x16x16xf32> to vector<4x16xf32>
    %258 = vector.shape_cast %257 : vector<4x16xf32> to vector<4x16x1xf32>
    %259 = tpu.reciprocal %258 {approx = true} : vector<4x16x1xf32> -> vector<4x16x1xf32>
    %260 = vector.broadcast %259 : vector<4x16x1xf32> to vector<4x16x16xf32>
    %261 = arith.mulf %256, %260 : vector<4x16x16xf32>
    %262 = arith.truncf %261 : vector<4x16x16xf32> to vector<4x16x16xbf16>
    "tpu.trace_start"() <{level = 10 : i32, message = "bqk,bka->bqa"}> : () -> ()
    %cst_86 = arith.constant dense<0.000000e+00> : vector<4x16x32xf32>
    %263 = tpu.matmul %262, %243, %cst_86 {dimension_numbers = #tpu.dot_dimension_numbers<[2], [1], [1], [2], [0, 0, 0, 1, 1, 2], [0], [0]>} : vector<4x16x16xbf16>, vector<4x16x32xbf16>, vector<4x16x32xf32> -> vector<4x16x32xf32>
    "tpu.trace_stop"() : () -> ()
    %264 = tpu.concatenate %185, %211, %237, %263 in 2 : vector<4x16x32xf32>, vector<4x16x32xf32>, vector<4x16x32xf32>, vector<4x16x32xf32> -> vector<4x16x128xf32>
    %265 = vector.shape_cast %264 : vector<4x16x128xf32> to vector<64x128xf32>
    %266 = arith.truncf %265 : vector<64x128xf32> to vector<64x128xbf16>
    %cst_87 = arith.constant dense<0.000000e+00> : vector<64x128xf32>
    %267 = tpu.matmul %266, %121, %cst_87 {dimension_numbers = #tpu.dot_dimension_numbers<[1], [0], [0], [1], [0, 0, 1, 1], [], []>} : vector<64x128xbf16>, vector<128x128xbf16>, vector<64x128xf32> -> vector<64x128xf32>
    %268 = vector.shape_cast %267 : vector<64x128xf32> to vector<4x16x128xf32>
    %269 = arith.addf %268, %155 : vector<4x16x128xf32>
    %cst_88 = arith.constant dense<0.000000e+00> : vector<4x16xf32>
    %270 = vector.multi_reduction <add>, %269, %cst_88 [2] : vector<4x16x128xf32> to vector<4x16xf32>
    %271 = vector.shape_cast %270 : vector<4x16xf32> to vector<4x16x1xf32>
    %cst_89 = arith.constant 1.280000e+02 : f32
    %272 = vector.broadcast %cst_89 : f32 to vector<4x16x1xf32>
    %273 = arith.divf %271, %272 : vector<4x16x1xf32>
    %274 = vector.broadcast %273 : vector<4x16x1xf32> to vector<4x16x128xf32>
    %275 = arith.subf %269, %274 : vector<4x16x128xf32>
    %276 = arith.mulf %275, %275 : vector<4x16x128xf32>
    %cst_90 = arith.constant dense<0.000000e+00> : vector<4x16xf32>
    %277 = vector.multi_reduction <add>, %276, %cst_90 [2] : vector<4x16x128xf32> to vector<4x16xf32>
    %278 = vector.shape_cast %277 : vector<4x16xf32> to vector<4x16x1xf32>
    %cst_91 = arith.constant 1.280000e+02 : f32
    %279 = vector.broadcast %cst_91 : f32 to vector<4x16x1xf32>
    %280 = arith.divf %278, %279 : vector<4x16x1xf32>
    %cst_92 = arith.constant 9.99999974E-6 : f32
    %281 = vector.broadcast %cst_92 : f32 to vector<4x16x1xf32>
    %282 = arith.addf %280, %281 : vector<4x16x1xf32>
    %283 = math.rsqrt %282 : vector<4x16x1xf32>
    %284 = vector.broadcast %283 : vector<4x16x1xf32> to vector<4x16x128xf32>
    %285 = arith.mulf %275, %284 : vector<4x16x128xf32>
    %286 = vector.shape_cast %112 : vector<1x128xf32> to vector<1x1x128xf32>
    %287 = vector.broadcast %286 : vector<1x1x128xf32> to vector<4x16x128xf32>
    %288 = arith.mulf %285, %287 : vector<4x16x128xf32>
    %289 = vector.shape_cast %115 : vector<1x128xf32> to vector<1x1x128xf32>
    %290 = vector.broadcast %289 : vector<1x1x128xf32> to vector<4x16x128xf32>
    %291 = arith.addf %288, %290 : vector<4x16x128xf32>
    %292 = vector.shape_cast %291 : vector<4x16x128xf32> to vector<64x128xf32>
    %293 = arith.truncf %292 : vector<64x128xf32> to vector<64x128xbf16>
    %cst_93 = arith.constant dense<0.000000e+00> : vector<64x512xf32>
    %294 = tpu.matmul %293, %124, %cst_93 {dimension_numbers = #tpu.dot_dimension_numbers<[1], [0], [0], [1], [0, 0, 1, 1], [], []>} : vector<64x128xbf16>, vector<128x512xbf16>, vector<64x512xf32> -> vector<64x512xf32>
    %295 = vector.broadcast %127 : vector<1x512xf32> to vector<64x512xf32>
    %296 = arith.addf %294, %295 : vector<64x512xf32>
    %cst_94 = arith.constant 0.000000e+00 : f32
    %297 = vector.broadcast %cst_94 : f32 to vector<64x512xf32>
    %298 = arith.maximumf %296, %297 : vector<64x512xf32>
    %299 = arith.truncf %298 : vector<64x512xf32> to vector<64x512xbf16>
    %cst_95 = arith.constant dense<0.000000e+00> : vector<64x128xf32>
    %300 = tpu.matmul %299, %130, %cst_95 {dimension_numbers = #tpu.dot_dimension_numbers<[1], [0], [0], [1], [0, 0, 1, 1], [], []>} : vector<64x512xbf16>, vector<512x128xbf16>, vector<64x128xf32> -> vector<64x128xf32>
    %301 = vector.broadcast %133 : vector<1x128xf32> to vector<64x128xf32>
    %302 = arith.addf %300, %301 : vector<64x128xf32>
    %303 = vector.shape_cast %302 : vector<64x128xf32> to vector<4x16x128xf32>
    %c0_96 = arith.constant 0 : index
    %c0_97 = arith.constant 0 : index
    %c0_98 = arith.constant 0 : index
    %304 = vector.load %arg6[%c0_96, %c0_97, %c0_98] : memref<4x16x1xf32, #tpu.memory_space<vmem>>, vector<4x16x1xf32>
    %cst_99 = arith.constant 5.000000e-01 : f32
    %305 = vector.broadcast %cst_99 : f32 to vector<4x16x1xf32>
    %306 = arith.cmpf ogt, %304, %305 : vector<4x16x1xf32>
    %cst_100 = arith.constant 0.000000e+00 : f32
    %307 = vector.shape_cast %306 : vector<4x16x1xi1> to vector<4x16x1xi1>
    %308 = vector.broadcast %307 : vector<4x16x1xi1> to vector<4x16x128xi1>
    %309 = vector.broadcast %cst_100 : f32 to vector<4x16x128xf32>
    %310 = arith.select %308, %309, %303 : vector<4x16x128xi1>, vector<4x16x128xf32>
    %311 = arith.addf %310, %291 : vector<4x16x128xf32>
    %c0_101 = arith.constant 0 : index
    %c0_102 = arith.constant 0 : index
    %c0_103 = arith.constant 0 : index
    %312 = vector.load %arg21[%c0_101, %c0_102, %c0_103] : memref<4x16x128xf32, #tpu.memory_space<vmem>>, vector<4x16x128xf32>
    tpu.vector_store %arg21[%c0_101, %c0_102, %c0_103], %311 {strides = array<i32>} : memref<4x16x128xf32, #tpu.memory_space<vmem>>, vector<4x16x128xf32>,
    %c6_i32_104 = arith.constant 6 : i32
    %313 = arith.cmpi eq, %arg1, %c6_i32_104 : i32
    %314 = arith.extui %313 : i1 to i32
    %c0_i32_105 = arith.constant 0 : i32
    %315 = arith.cmpi ne, %314, %c0_i32_105 : i32
    scf.if %315 {
      %c0_106 = arith.constant 0 : index
      %c0_107 = arith.constant 0 : index
      %316 = vector.load %arg18[%c0_106, %c0_107] : memref<1x128xf32, #tpu.memory_space<vmem>>, vector<1x128xf32>
      %c0_108 = arith.constant 0 : index
      %c0_109 = arith.constant 0 : index
      %317 = vector.load %arg19[%c0_108, %c0_109] : memref<1x128xf32, #tpu.memory_space<vmem>>, vector<1x128xf32>
      %cst_110 = arith.constant dense<0.000000e+00> : vector<4x16xf32>
      %318 = vector.multi_reduction <add>, %311, %cst_110 [2] : vector<4x16x128xf32> to vector<4x16xf32>
      %319 = vector.shape_cast %318 : vector<4x16xf32> to vector<4x16x1xf32>
      %cst_111 = arith.constant 1.280000e+02 : f32
      %320 = vector.broadcast %cst_111 : f32 to vector<4x16x1xf32>
      %321 = arith.divf %319, %320 : vector<4x16x1xf32>
      %322 = vector.broadcast %321 : vector<4x16x1xf32> to vector<4x16x128xf32>
      %323 = arith.subf %311, %322 : vector<4x16x128xf32>
      %324 = arith.mulf %323, %323 : vector<4x16x128xf32>
      %cst_112 = arith.constant dense<0.000000e+00> : vector<4x16xf32>
      %325 = vector.multi_reduction <add>, %324, %cst_112 [2] : vector<4x16x128xf32> to vector<4x16xf32>
      %326 = vector.shape_cast %325 : vector<4x16xf32> to vector<4x16x1xf32>
      %cst_113 = arith.constant 1.280000e+02 : f32
      %327 = vector.broadcast %cst_113 : f32 to vector<4x16x1xf32>
      %328 = arith.divf %326, %327 : vector<4x16x1xf32>
      %cst_114 = arith.constant 9.99999974E-6 : f32
      %329 = vector.broadcast %cst_114 : f32 to vector<4x16x1xf32>
      %330 = arith.addf %328, %329 : vector<4x16x1xf32>
      %331 = math.rsqrt %330 : vector<4x16x1xf32>
      %332 = vector.broadcast %331 : vector<4x16x1xf32> to vector<4x16x128xf32>
      %333 = arith.mulf %323, %332 : vector<4x16x128xf32>
      %334 = vector.shape_cast %316 : vector<1x128xf32> to vector<1x1x128xf32>
      %335 = vector.broadcast %334 : vector<1x1x128xf32> to vector<4x16x128xf32>
      %336 = arith.mulf %333, %335 : vector<4x16x128xf32>
      %337 = vector.shape_cast %317 : vector<1x128xf32> to vector<1x1x128xf32>
      %338 = vector.broadcast %337 : vector<1x1x128xf32> to vector<4x16x128xf32>
      %339 = arith.addf %336, %338 : vector<4x16x128xf32>
      %cst_115 = arith.constant dense<0.000000e+00> : vector<4x128xf32>
      %340 = vector.multi_reduction <add>, %339, %cst_115 [1] : vector<4x16x128xf32> to vector<4x128xf32>
      %341 = vector.shape_cast %340 : vector<4x128xf32> to vector<4x1x128xf32>
      %cst_116 = arith.constant 1.600000e+01 : f32
      %342 = vector.broadcast %cst_116 : f32 to vector<4x1x128xf32>
      %343 = arith.divf %341, %342 : vector<4x1x128xf32>
      %c0_117 = arith.constant 0 : index
      %c0_118 = arith.constant 0 : index
      %c0_119 = arith.constant 0 : index
      %344 = vector.load %arg20[%c0_117, %c0_118, %c0_119] : memref<4x1x128xf32, #tpu.memory_space<vmem>>, vector<4x1x128xf32>
      tpu.vector_store %arg20[%c0_117, %c0_118, %c0_119], %343 {strides = array<i32>} : memref<4x1x128xf32, #tpu.memory_space<vmem>>, vector<4x1x128xf32>,
    } else {
    }
    return
  }
  func.func @transform_0(%arg0: i32, %arg1: i32, %arg2: memref<7xi32, #tpu.memory_space<smem>>) -> (i32, i32, i32) {
    %c0_i32 = arith.constant 0 : i32
    %c0_i32_0 = arith.constant 0 : i32
    %c0_i32_1 = arith.constant 0 : i32
    return %arg0, %c0_i32, %c0_i32_0 : i32, i32, i32
  }
  func.func @transform_1(%arg0: i32, %arg1: i32, %arg2: memref<7xi32, #tpu.memory_space<smem>>) -> (i32, i32, i32) {
    %c0_i32 = arith.constant 0 : i32
    %c0_i32_0 = arith.constant 0 : i32
    %c0_i32_1 = arith.constant 0 : i32
    return %arg0, %c0_i32, %c0_i32_0 : i32, i32, i32
  }
  func.func @transform_2(%arg0: i32, %arg1: i32, %arg2: memref<7xi32, #tpu.memory_space<smem>>) -> (i32, i32, i32) {
    %c0_i32 = arith.constant 0 : i32
    %c0_i32_0 = arith.constant 0 : i32
    %c0_i32_1 = arith.constant 0 : i32
    return %arg0, %c0_i32, %c0_i32_0 : i32, i32, i32
  }
  func.func @transform_3(%arg0: i32, %arg1: i32, %arg2: memref<7xi32, #tpu.memory_space<smem>>) -> (i32, i32, i32) {
    %c0_i32 = arith.constant 0 : i32
    %c0_i32_0 = arith.constant 0 : i32
    %c0_i32_1 = arith.constant 0 : i32
    return %arg0, %c0_i32, %c0_i32_0 : i32, i32, i32
  }
  func.func @transform_4(%arg0: i32, %arg1: i32, %arg2: memref<7xi32, #tpu.memory_space<smem>>) -> (i32, i32, i32) {
    %c0_i32 = arith.constant 0 : i32
    %c0_i32_0 = arith.constant 0 : i32
    %c0_i32_1 = arith.constant 0 : i32
    return %arg0, %c0_i32, %c0_i32_0 : i32, i32, i32
  }
  func.func @transform_5(%arg0: i32, %arg1: i32, %arg2: memref<7xi32, #tpu.memory_space<smem>>) -> (i32, i32, i32) {
    %c0_i32 = arith.constant 0 : i32
    %c0_i32_0 = arith.constant 0 : i32
    %c0_i32_1 = arith.constant 0 : i32
    %c0_i32_2 = arith.constant 0 : i32
    return %c0_i32, %c0_i32_0, %c0_i32_1 : i32, i32, i32
  }
  func.func @transform_6(%arg0: i32, %arg1: i32, %arg2: memref<7xi32, #tpu.memory_space<smem>>) -> (i32, i32, i32) {
    %c0_i32 = arith.constant 0 : i32
    %c0_i32_0 = arith.constant 0 : i32
    %c0_i32_1 = arith.constant 0 : i32
    %c0_i32_2 = arith.constant 0 : i32
    return %c0_i32, %c0_i32_0, %c0_i32_1 : i32, i32, i32
  }
  func.func @transform_7(%arg0: i32, %arg1: i32, %arg2: memref<7xi32, #tpu.memory_space<smem>>) -> (i32, i32, i32) {
    %c0_i32 = arith.constant 0 : i32
    %c0_i32_0 = arith.constant 0 : i32
    %c0_i32_1 = arith.constant 0 : i32
    %c0_i32_2 = arith.constant 0 : i32
    return %c0_i32, %c0_i32_0, %c0_i32_1 : i32, i32, i32
  }
  func.func @transform_8(%arg0: i32, %arg1: i32, %arg2: memref<7xi32, #tpu.memory_space<smem>>) -> (i32, i32, i32) {
    %c0_i32 = arith.constant 0 : i32
    %c0_i32_0 = arith.constant 0 : i32
    %c0_i32_1 = arith.constant 0 : i32
    %c0_i32_2 = arith.constant 0 : i32
    return %c0_i32, %c0_i32_0, %c0_i32_1 : i32, i32, i32
  }
  func.func @transform_9(%arg0: i32, %arg1: i32, %arg2: memref<7xi32, #tpu.memory_space<smem>>) -> (i32, i32, i32) {
    %c0_i32 = arith.constant 0 : i32
    %c0_i32_0 = arith.constant 0 : i32
    %c0_i32_1 = arith.constant 0 : i32
    %c0_i32_2 = arith.constant 0 : i32
    return %c0_i32, %c0_i32_0, %c0_i32_1 : i32, i32, i32
  }
  func.func @transform_10(%arg0: i32, %arg1: i32, %arg2: memref<7xi32, #tpu.memory_space<smem>>) -> (i32, i32, i32) {
    %c0_i32 = arith.constant 0 : i32
    %c0_i32_0 = arith.constant 0 : i32
    %c0_i32_1 = arith.constant 0 : i32
    %c0_i32_2 = arith.constant 0 : i32
    return %c0_i32, %c0_i32_0, %c0_i32_1 : i32, i32, i32
  }
  func.func @transform_11(%arg0: i32, %arg1: i32, %arg2: memref<7xi32, #tpu.memory_space<smem>>) -> (i32, i32, i32) {
    %c0_i32 = arith.constant 0 : i32
    %c0_i32_0 = arith.constant 0 : i32
    %c0_i32_1 = arith.constant 0 : i32
    %c0_i32_2 = arith.constant 0 : i32
    return %c0_i32, %c0_i32_0, %c0_i32_1 : i32, i32, i32
  }
  func.func @transform_12(%arg0: i32, %arg1: i32, %arg2: memref<7xi32, #tpu.memory_space<smem>>) -> (i32, i32, i32) {
    %c0_i32 = arith.constant 0 : i32
    %c0_i32_0 = arith.constant 0 : i32
    %c0_i32_1 = arith.constant 0 : i32
    %c0_i32_2 = arith.constant 0 : i32
    return %c0_i32, %c0_i32_0, %c0_i32_1 : i32, i32, i32
  }
  func.func @transform_13(%arg0: i32, %arg1: i32, %arg2: memref<7xi32, #tpu.memory_space<smem>>) -> (i32, i32, i32) {
    %c0_i32 = arith.constant 0 : i32
    %c0_i32_0 = arith.constant 0 : i32
    %c0_i32_1 = arith.constant 0 : i32
    %c0_i32_2 = arith.constant 0 : i32
    return %c0_i32, %c0_i32_0, %c0_i32_1 : i32, i32, i32
  }
  func.func @transform_14(%arg0: i32, %arg1: i32, %arg2: memref<7xi32, #tpu.memory_space<smem>>) -> (i32, i32, i32) {
    %c0_i32 = arith.constant 0 : i32
    %c0_i32_0 = arith.constant 0 : i32
    %c0_i32_1 = arith.constant 0 : i32
    %c0_i32_2 = arith.constant 0 : i32
    return %c0_i32, %c0_i32_0, %c0_i32_1 : i32, i32, i32
  }
  func.func @transform_15(%arg0: i32, %arg1: i32, %arg2: memref<7xi32, #tpu.memory_space<smem>>) -> (i32, i32) {
    %c0_i32 = arith.constant 0 : i32
    %c0_i32_0 = arith.constant 0 : i32
    %c0_i32_1 = arith.constant 0 : i32
    return %c0_i32, %c0_i32_0 : i32, i32
  }
  func.func @transform_16(%arg0: i32, %arg1: i32, %arg2: memref<7xi32, #tpu.memory_space<smem>>) -> (i32, i32) {
    %c0_i32 = arith.constant 0 : i32
    %c0_i32_0 = arith.constant 0 : i32
    %c0_i32_1 = arith.constant 0 : i32
    return %c0_i32, %c0_i32_0 : i32, i32
  }
  func.func @transform_17(%arg0: i32, %arg1: i32, %arg2: memref<7xi32, #tpu.memory_space<smem>>) -> (i32, i32, i32) {
    %c0_i32 = arith.constant 0 : i32
    %c0_i32_0 = arith.constant 0 : i32
    %c0_i32_1 = arith.constant 0 : i32
    return %arg0, %c0_i32, %c0_i32_0 : i32, i32, i32
  }
}

</mosaic_0001>

<bundles_post_ra>
// kernel: tpu_custom_call.1
= control target key start
LH: loop header
LB: loop body
LE: loop exit
PB: predicated region body
PF: predicated region fallthrough
CT: control target
= control target key end

     0   :  { %s6412_s30 = smov [#allocation6]   ;;  %s8587_s0 = inlined_call_operand.hbm [shape: s32[7], index: 0, kind: input, shape index: {}]   ;;  %s8588_s1 = inlined_call_operand.vmem [shape: f32[8,16,128], index: 1, kind: input, shape index: {}]   ;;  %s8589_s2 = inlined_call_operand.hbm [shape: f32[8,16,16], index: 2, kind: input, shape index: {}]   ;;  %s8590_s3 = inlined_call_operand.hbm [shape: f32[8,16,16], index: 3, kind: input, shape index: {}]   ;;  %s8591_s4 = inlined_call_operand.vmem [shape: f32[8,16,1], index: 4, kind: input, shape index: {}]   ;;  %s8592_s5 = inlined_call_operand.vmem [shape: f32[8,1,16], index: 5, kind: input, shape index: {}]   ;;  %s8593_s6 = inlined_call_operand.hbm [shape: f32[7,1,128], index: 6, kind: input, shape index: {}]   ;;  %s8594_s7 = inlined_call_operand.hbm [shape: f32[7,1,128], index: 7, kind: input, shape index: {}]   ;;  %s8595_s8 = inlined_call_operand.hbm [shape: bf16[7,128,384], index: 8, kind: input, shape index: {}]   ;;  %s8596_s9 = inlined_call_operand.hbm [shape: bf16[7,128,128], index: 9, kind: input, shape index: {}]   ;;  %s8597_s10 = inlined_call_operand.vmem [shape: f32[7,1,128], index: 10, kind: input, shape index: {}]   ;;  %s8598_s11 = inlined_call_operand.hbm [shape: f32[7,1,128], index: 11, kind: input, shape index: {}]   ;;  %s8599_s12 = inlined_call_operand.hbm [shape: bf16[7,128,512], index: 12, kind: input, shape index: {}]   ;;  %s8600_s13 = inlined_call_operand.hbm [shape: f32[7,1,512], index: 13, kind: input, shape index: {}]   ;;  %s8601_s14 = inlined_call_operand.hbm [shape: bf16[7,512,128], index: 14, kind: input, shape index: {}]   ;;  %s8602_s15 = inlined_call_operand.hbm [shape: f32[7,1,128], index: 15, kind: input, shape index: {}]   ;;  %s8603_s16 = inlined_call_operand.vmem [shape: f32[1,128], index: 16, kind: input, shape index: {}]   ;;  %s8604_s17 = inlined_call_operand.vmem [shape: f32[1,128], index: 17, kind: input, shape index: {}]   ;;  %s8605_s18 = inlined_call_operand.hbm [shape: f32[8,1,128], index: 18, kind: output, shape index: {}]  }
   0x1   :  { %8653 = sst [smem:[#allocation75_spill]] %s8587_s0 }
   0x2   :  { %8654 = sst [smem:[#allocation76_spill]] %s8588_s1 }
   0x3   :  { %8655 = sst [smem:[#allocation77_spill]] %s8589_s2 }
   0x4   :  { %8656 = sst [smem:[#allocation78_spill]] %s8590_s3 }
   0x5   :  { %8657 = sst [smem:[#allocation79_spill]] %s8591_s4 }
   0x6   :  { %8658 = sst [smem:[#allocation80_spill]] %s8592_s5 }
   0x7   :  { %8659 = sst [smem:[#allocation81_spill]] %s8593_s6 }
   0x8   :  { %8660 = sst [smem:[#allocation82_spill]] %s8594_s7 }
   0x9   :  { %8661 = sst [smem:[#allocation83_spill]] %s8595_s8 }
   0xa   :  { %8662 = sst [smem:[#allocation84_spill]] %s8596_s9 }
   0xb   :  { %8663 = sst [smem:[#allocation85_spill]] %s8597_s10 }
   0xc   :  { %8664 = sst [smem:[#allocation86_spill]] %s8598_s11 }
   0xd   :  { %8665 = sst [smem:[#allocation87_spill]] %s8599_s12 }
   0xe   :  { %8666 = sst [smem:[#allocation88_spill]] %s8600_s13 }
   0xf   :  { %8667 = sst [smem:[#allocation89_spill]] %s8601_s14 }
  0x10   :  { %8668 = sst [smem:[#allocation90_spill]] %s8602_s15 }
  0x11   :  { %8669 = sst [smem:[#allocation91_spill]] %s8603_s16 }
  0x12   :  { %8670 = sst [smem:[#allocation92_spill]] %s8604_s17 }
  0x13   :  { %8671 = sst [smem:[#allocation93_spill]] %s8605_s18 }
  0x14   :  { %s8672_s29 = sld [smem:[#allocation75_spill]] }
  0x1a   :  { %s24_s10 = sshll.u32 %s8672_s29, 4  ;;  %s25_s10 = int_to_ptr.hbm [resolvable:$true] %s24_s10 }
  0x1b   :  { %27 = dma.hbm_to_smem %s25_s10, 16, %s6412_s30, [#allocation5] }
  0x1c   :  { %6346 = dma.done.wait [#allocation5], 16 }
  0x1d   :  { %6347 = vsyncadd [#allocation5], 4294967280 }
  0x1e   :  { %30 = sfence }
  0x1f   :  { %31 = vsyncpa [#allocation8], 0 }
  0x20   :  { %33 = vsyncpa [#allocation8 + $0x1], 0 }
  0x21   :  { %34 = vsyncpa [#allocation11], 0 }
  0x22   :  { %36 = vsyncpa [#allocation11 + $0x1], 0 }
  0x23   :  { %37 = vsyncpa [#allocation14], 0 }
  0x24   :  { %38 = vsyncpa [#allocation17], 0 }
  0x25   :  { %39 = vsyncpa [#allocation20], 0 }
  0x26   :  { %40 = vsyncpa [#allocation23], 0 }
  0x27   :  { %41 = vsyncpa [#allocation9], 0 }
  0x28   :  { %43 = vsyncpa [#allocation9 + $0x1], 0  ;;  %s6538_s0 = smov 0   ;;  %s6540_s19 = smov 0  }
  0x29   :  { %s6542_s1 = smov 0   ;;  %s6544_s10 = smov 0  }
  0x2a   :  { %s6546_s20 = smov 0   ;;  %s6548_s21 = smov 0  }
  0x2b   :  { %s6550_s22 = smov 0   ;;  %s6552_s2 = smov 0  }
  0x2c LB: > { %8673 = sst [smem:[#allocation35_spill]] %s6394_s10  ;;  %s6579_s23 = sadd.s32 4294967295, %s6410_s2   ;;  %s6410_s2 = sphi %s6552_s2, %s49_s2   ;;  %s6406_s22 = sphi %s6550_s22, %s8800_s22   ;;  %s6402_s21 = sphi %s6548_s21, %s8799_s21   ;;  %s6398_s20 = sphi %s6546_s20, %s8798_s20   ;;  %s6394_s10 = sphi %s6544_s10, %s8797_s10   ;;  %s6390_s1 = sphi %s6542_s1, %s8796_s1   ;;  %s6386_s19 = sphi %s6540_s19, %s8795_s19   ;;  %s6382_s0 = sphi %s6538_s0, %s8794_s0  }
  0x2d   : > { %8674 = sst [smem:[#allocation36_spill]] %s6398_s20  ;;  %p4865_p0 = scmp.ge.s32.totalorder %s6410_s2, 1 }
  0x2e   : > { %p108_p1 = scmp.eq.s32.totalorder %s6579_s23, 0  ;;  %p474_p2 = scmp.lt.s32.totalorder %s6410_s2, 15 }
  0x2f   : > { %s8675_s6 = sld [smem:[#allocation81_spill]]  ;;  %s6413_s28 = smov [#allocation12]  }
  0x30   : > { %p6587_p3 = pnand %p4865_p0, %p474_p2  ;;  %s487_s29 = sshll.u32 %s6413_s28, 4  ;;  %s488_s29 = int_to_ptr.vmem [resolvable:$true] %s487_s29 }
  0x31   : > { %s8678_s7 = sld [smem:[#allocation82_spill]]  ;;  %s8611_s25 = smov 16  }
  0x32   : > { %p5507_p4 = pneg %p6587_p3  ;;  %s6416_s28 = smov [#allocation13]  }
  0x33   : > { %s501_s16 = sshll.u32 %s6416_s28, 4  ;;  %s8679_s9 = sld [smem:[#allocation84_spill]]  ;;  %s502_s16 = int_to_ptr.vmem [resolvable:$true] %s501_s16 }
  0x34   : > { %p6595_p5 = pnand %p5507_p4, %p108_p1  ;;  %s6417_s17 = smov [#allocation16]  }
  0x35   : > { %s485_s26 = sshll.u32 %s8675_s6, 4  ;;  %s8609_s6 = smov 1   ;;  %s486_s26 = int_to_ptr.hbm [resolvable:$true] %s485_s26 }
  0x36   : > { %5510 = dma.hbm_to_vmem [thread:$0]  (!%p6595_p5), %s486_s26, 112, %s488_s29, [#allocation11], %s8611_s25, %s8611_s25, %s8609_s6  }
  0x37   : > { %s499_s24 = sshll.u32 %s8678_s7, 4  ;;  %s529_s18 = sshll.u32 %s6417_s17, 4  ;;  %s500_s24 = int_to_ptr.hbm [resolvable:$true] %s499_s24  ;;  %s530_s18 = int_to_ptr.vmem [resolvable:$true] %s529_s18 }
  0x38   : > { %5513 = dma.hbm_to_vmem [thread:$0]  (!%p6595_p5), %s500_s24, 112, %s502_s16, [#allocation14], %s8611_s25, %s8611_s25, %s8609_s6  }
  0x39   : > { %s527_s5 = sshll.u32 %s8679_s9, 4  ;;  %s8680_s12 = sld [smem:[#allocation87_spill]]  ;;  %s528_s5 = int_to_ptr.hbm [resolvable:$true] %s527_s5 }
  0x3a   : > { %s6418_s29 = smov 64   ;;  %s6419_s28 = smov 4  }
  0x3b   : > { %5519 = dma.hbm_to_vmem [thread:$0]  (!%p6595_p5), %s528_s5, 7168, %s530_s18, [#allocation17], %s6418_s29, %s6418_s29, %s6419_s28  }
  0x3c   : > { %s6420_s4 = smov [#allocation19]   ;;  %s8681_s14 = sld [smem:[#allocation89_spill]] }
  0x3d   : > { %s560_s10 = sshll.u32 %s6420_s4, 4  ;;  %s6421_s6 = smov 256   ;;  %s561_s10 = int_to_ptr.vmem [resolvable:$true] %s560_s10 }
  0x3e   : > { %s6422_s7 = smov [#allocation22]   ;;  %s8682_s8 = sld [smem:[#allocation83_spill]] }
  0x3f   : > { %s558_s26 = sshll.u32 %s8680_s12, 4  ;;  %s588_s20 = sshll.u32 %s6422_s7, 4  ;;  %s559_s26 = int_to_ptr.hbm [resolvable:$true] %s558_s26  ;;  %s589_s20 = int_to_ptr.vmem [resolvable:$true] %s588_s20 }
  0x40   : > { %5525 = dma.hbm_to_vmem [thread:$0]  (!%p6595_p5), %s559_s26, 28672, %s561_s10, [#allocation20], %s6421_s6, %s6421_s6, %s8611_s25  }
  0x41   : > { %s6423_s18 = smov [#allocation15]   ;;  %s8683_s11 = sld [smem:[#allocation86_spill]] }
  0x42   : > { %s586_s17 = sshll.u32 %s8681_s14, 4  ;;  %s515_s4 = sshll.u32 %s6423_s18, 4  ;;  %s587_s17 = int_to_ptr.hbm [resolvable:$true] %s586_s17  ;;  %s516_s4 = int_to_ptr.vmem [resolvable:$true] %s515_s4 }
  0x43   : > { %5531 = dma.hbm_to_vmem [thread:$0]  (!%p6595_p5), %s587_s17, 28672, %s589_s20, [#allocation23], %s6418_s29, %s6418_s29, %s6419_s28  }
  0x44   : > { %s513_s5 = sshll.u32 %s8682_s8, 4  ;;  %s6424_s10 = smov 192   ;;  %s514_s5 = int_to_ptr.hbm [resolvable:$true] %s513_s5 }
  0x45   : > { %s6425_s24 = smov 12   ;;  %s6426_s9 = smov [#allocation18]  }
  0x46   : > { %5516 = dma.hbm_to_vmem [thread:$0]  (!%p6595_p5), %s514_s5, 21504, %s516_s4, [#allocation14], %s6424_s10, %s6424_s10, %s6425_s24  }
  0x47   : > { %s544_s26 = sshll.u32 %s8683_s11, 4  ;;  %s546_s12 = sshll.u32 %s6426_s9, 4  ;;  %s545_s26 = int_to_ptr.hbm [resolvable:$true] %s544_s26  ;;  %s547_s12 = int_to_ptr.vmem [resolvable:$true] %s546_s12 }
  0x48   : > { %s8684_s13 = sld [smem:[#allocation88_spill]]  ;;  %s8685_s20 = smov 1  }
  0x49   : > { %s8686_s18 = smov 16   ;;  %s8687_s15 = sld [smem:[#allocation90_spill]] }
  0x4a   : > { %5522 = dma.hbm_to_vmem [thread:$0]  (!%p6595_p5), %s545_s26, 112, %s547_s12, [#allocation17], %s8686_s18, %s8686_s18, %s8685_s20  }
  0x4b   : > { %s6427_s6 = smov [#allocation21]   ;;  %s6428_s26 = smov [#allocation24]  }
  0x4c   : > { %s574_s25 = sshll.u32 %s6427_s6, 4  ;;  %s602_s10 = sshll.u32 %s6428_s26, 4  ;;  %s575_s25 = int_to_ptr.vmem [resolvable:$true] %s574_s25  ;;  %s603_s10 = int_to_ptr.vmem [resolvable:$true] %s602_s10 }
  0x4d   : > { %s4864_s24 = sadd.s32 4294967294, %s6410_s2   ;;  %s58_s9 = sadd.s32 1, %s6402_s21 }
  0x4e   : > { %s572_s17 = sshll.u32 %s8684_s13, 4  ;;  %p59_p6 = scmp.ge.s32.totalorder %s58_s9, 7  ;;  %s573_s17 = int_to_ptr.hbm [resolvable:$true] %s572_s17 }
  0x4f   : > { %s600_s16 = sshll.u32 %s8687_s15, 4  ;;  %s61_s12 = sadd.s32 1, %s6406_s22  ;;  %s601_s16 = int_to_ptr.hbm [resolvable:$true] %s600_s16 }
  0x50   : > { %5528 = dma.hbm_to_vmem [thread:$0]  (!%p6595_p5), %s573_s17, 448, %s575_s25, [#allocation20], %s6418_s29, %s6418_s29, %s6419_s28  }
  0x51   : > { %5534 = dma.hbm_to_vmem [thread:$0]  (!%p6595_p5), %s601_s16, 112, %s603_s10, [#allocation23], %s8686_s18, %s8686_s18, %s8685_s20  }
  0x52   : > { %s94_s7 = sadd.s32 1, %s6390_s1  ;;  %p101_p7 = scmp.ne.s32.totalorder %s6390_s1, %s6386_s19 }
  0x53   : > { %s8802_s9 = smov (%p59_p6, %s58_s9), 0  ;;  %s8804_s12 = smov (!%p59_p6, %s61_s12), %s6406_s22 }
  0x54   : > { %8688 = sst [smem:[#allocation37_spill]] %s8802_s9  ;;  %p102_p8 = scmp.eq.s32.totalorder %s6410_s2, 0 }
  0x55   : > { %p107_p9 = scmp.ne.s32.totalorder %s6386_s19, %s6382_s0  ;;  %p63_p10 = scmp.ge.s32.totalorder %s8804_s12, 2 }
  0x56   : > { %p461_p11 = scmp.eq.s32.totalorder %s6579_s23, 13  ;;  %p6676_p12 = por %p102_p8, %p101_p7 }
  0x57   : > { %p6682_p13 = por %p108_p1, %p107_p9  ;;  %s8806_s12 = smov (%p63_p10, %s8804_s12), 0 }
  0x58   : > { %8691 = sst [smem:[#allocation38_spill]] %s8806_s12  ;;  %p6688_p0 = por %p461_p11, %p101_p7 }
  0x59   : > { %p467_p2 = scmp.eq.s32.totalorder %s4864_s24, 13  ;;  %s91_s17 = ssub.s32 %s6406_s22, %s8806_s12 }
  0x5a   : > { %p5555_p4 = scmp.lt.s32.totalorder %s6410_s2, 14  ;;  %p92_p5 = scmp.eq.s32.totalorder %s91_s17, 0 }
  0x5b   : > { %p6695_p6 = por %p467_p2, %p107_p9  ;;  %s632_s18 = sand.u32 1, %s6390_s1  }
  0x5c   : > { %s5352_s5 = sshll.u32 %s6406_s22, 6  ;;  %s4876_s16 = sshll.u32 %s632_s18, 6 }
  0x5d   : > { %s6702_s4 = scalar_select %p92_p5, %s6390_s1, %s94_s7  }
  0x5e   : > { %s8694_s26 = sld [smem:[#allocation77_spill]]  ;;  %s636_s11 = scalar_lea.vmem [#allocation7], %s4876_s16 }
  0x5f   : > { %s645_s24 = sshll.u32 %s636_s11, 4  ;;  %p5536_p7 = pnand %p5555_p4, %p6676_p12  ;;  %s646_s24 = int_to_ptr.vmem [resolvable:$true] %s645_s24 }
  0x60   : > { %s8695_s3 = sld [smem:[#allocation78_spill]]  ;;  %s633_s7 = scalar_lea.sflag [#allocation8], %s632_s18 }
  0x61   : > { %s6429_s15 = smov 128   ;;  %s6430_s12 = smov 8  }
  0x62   : > { %s659_s6 = scalar_lea.vmem [#allocation10], %s4876_s16 }
  0x63   : > { %s668_s25 = sshll.u32 %s659_s6, 4  ;;  %s669_s25 = int_to_ptr.vmem [resolvable:$true] %s668_s25 }
  0x64   : > { %s642_s10 = scalar_lea.hbm %s8694_s26, %s5352_s5  ;;  %s655_s26 = sand.u32 1, %s6410_s2  }
  0x65   : > { %s643_s8 = sshll.u32 %s642_s10, 4  ;;  %s656_s11 = scalar_lea.sflag [#allocation11], %s655_s26  ;;  %s644_s8 = int_to_ptr.hbm [resolvable:$true] %s643_s8 }
  0x66   : > { %s665_s14 = scalar_lea.hbm %s8695_s3, %s5352_s5  ;;  %698 = sbr.rel (%p6587_p3) target bundleno = 3792 (0xed0), region = 88 }
  0x67   : > { %5538 = dma.hbm_to_vmem [thread:$0]  (!%p5536_p7), %s644_s8, 1024, %s646_s24, %s633_s7, %s6429_s15, %s6429_s15, %s6430_s12  }
  0x68   : > { %s666_s9 = sshll.u32 %s665_s14, 4  ;;  %s667_s9 = int_to_ptr.hbm [resolvable:$true] %s666_s9 }
  0x69   : > { %5541 = dma.hbm_to_vmem [thread:$0]  (!%p5536_p7), %s667_s9, 1024, %s669_s25, %s656_s11, %s6429_s15, %s6429_s15, %s6430_s12  }
  0x6b   : > { %s6718_s30 = sand.u32 1, %s6386_s19  }
  0x6c   : > { %s4885_s13 = sshll.u32 %s6718_s30, 6  ;;  %s701_s18 = scalar_lea.sflag [#allocation8], %s6718_s30 }
  0x6d   : > { %s6722_s8 = scalar_lea.vmem [#allocation7], %s4885_s13 }
  0x6e   : > { %6349 = dma.done.wait (%p6682_p13), %s701_s18, 1024  }
  0x6f   : > { %6351 = vsyncadd (%p6682_p13), %s701_s18, 4294966272  ;;  %s710_s14 = sand.u32 1, %s6579_s23   ;;  %s6729_s27 = scalar_lea.vmem [#allocation10], %s4885_s13 }
  0x70   : > { %s711_s15 = scalar_lea.sflag [#allocation11], %s710_s14 }
  0x71   : > { %6353 = dma.done.wait (%p6682_p13), %s711_s15, 1024  }
  0x72   : > { %6355 = vsyncadd (%p6682_p13), %s711_s15, 4294966272 }
  0x73   : > { %6357 = dma.done.wait (%p108_p1), [#allocation11], 112  }
  0x74   : > { %6359 = vsyncadd (%p108_p1), [#allocation11], 4294967184 }
  0x75   : > { %6361 = dma.done.wait (%p108_p1), [#allocation14], 21616  }
  0x76   : > { %6363 = vsyncadd (%p108_p1), [#allocation14], 4294945680 }
  0x77   : > { %6365 = dma.done.wait (%p108_p1), [#allocation17], 7280  }
  0x78   : > { %6367 = vsyncadd (%p108_p1), [#allocation17], 4294960016 }
  0x79   : > { %6369 = dma.done.wait (%p108_p1), [#allocation20], 29120  }
  0x7a   : > { %6371 = vsyncadd (%p108_p1), [#allocation20], 4294938176 }
  0x7b   : > { %6373 = dma.done.wait (%p108_p1), [#allocation23], 28784  }
  0x7c   : > { %6375 = vsyncadd (%p108_p1), [#allocation23], 4294938512  ;;  %s8696_s9 = sld [smem:[#allocation36_spill]]  ;;  %s4896_s12 = sshll.u32 %s6718_s30, 2 }
  0x7d   : > { %s8697_s17 = sld [smem:[#allocation80_spill]]  ;;  %s6774_s15 = scalar_lea.vmem [#allocation25], %s4896_s12 }
  0x7e   : > { %s8698_s26 = sld [smem:[#allocation76_spill]] }
  0x7f   : > { %s8699_s18 = sld [smem:[#allocation79_spill]] }
  0x82   : > { %s6757_s29 = sshll.u32 %s8696_s9, 2  ;;  %s8700_s9 = sld [smem:[#allocation35_spill]] }
  0x83   : > { %p833_p3 = scmp.lt.s32.totalorder %s6757_s29, 7 }
  0x85   : > { %s834_s5 = scalar_select %p833_p3, %s6757_s29, 7 }
  0x87   : > { %s5355_s16 = sshll.u32 %s834_s5, 4  ;;  %s6764_s7 = scalar_lea.vmem %s8697_s17, %s834_s5 }
  0x88   : > { %s837_s23 = scalar_lea.vmem %s8698_s26, %s5355_s16  ;;  %s6772_s14 = scalar_lea.vmem %s8699_s18, %s5355_s16 }
  0x89   : > { %p4904_p1 = scmp.ne.s32.totalorder %s8700_s9, 0 }
  0x8b   : > { %858 = sbr.rel (%p4904_p1) target bundleno = 172 (0xac), region = 136 }
  0x90   : > { %v859_v0 = vld [vmem:[%s837_s23] sm:$0xff]  ;;  %v860_v1 = vld [vmem:[%s837_s23 + $0x8] sm:$0xff]  ;;  %v861_v2 = vld [vmem:[%s837_s23 + $0x10] sm:$0xff]  ;;  %vm899_vm0 = vcmask 130048  }
  0x91   : > { %867 = vst [vmem:[#allocation2 + $0x30] sm:$0xff] %v859_v0  ;;  %v862_v3 = vld [vmem:[%s837_s23 + $0x18] sm:$0xff]  ;;  %v863_v4 = vld [vmem:[%s837_s23 + $0x20] sm:$0xff]  ;;  %v864_v6 = vld [vmem:[%s837_s23 + $0x28] sm:$0xff] }
  0x92   : > { %868 = vst [vmem:[#allocation2] sm:$0xff] %v860_v1  ;;  %v875_v5 = vld [vmem:[%s6729_s27] sm:$0xff]  ;;  %v876_v7 = vld [vmem:[%s6729_s27 + $0x8] sm:$0xff]  ;;  %v865_v8 = vld [vmem:[%s837_s23 + $0x30] sm:$0xff] }
  0x93   : > { %869 = vst [vmem:[#allocation2 + $0x18] sm:$0xff] %v861_v2  ;;  %5658 = vlog2.f32 %v875_v5  ;;  %v877_v9 = vld [vmem:[%s6729_s27 + $0x10] sm:$0xff]  ;;  %v866_v10 = vld [vmem:[%s837_s23 + $0x38] sm:$0xff]  ;;  %v879_v12 = vld [vmem:[%s6729_s27 + $0x20] sm:$0xff]  ;;  %v916_v14 = vadd.f32 0.2, %v875_v5 }
  0x94   : > { %870 = vst [vmem:[#allocation2 + $0x10] sm:$0xff] %v862_v3  ;;  %5660 = vlog2.f32 %v876_v7  ;;  %v878_v11 = vld [vmem:[%s6729_s27 + $0x18] sm:$0xff]  ;;  %v880_v13 = vld [vmem:[%s6729_s27 + $0x28] sm:$0xff]  ;;  %v881_v15 = vld [vmem:[%s6729_s27 + $0x30] sm:$0xff]  ;;  %v917_v16 = vadd.f32 0.2, %v876_v7 }
  0x95   : > { %871 = vst [vmem:[#allocation2 + $0x8] sm:$0xff] %v863_v4  ;;  %5662 = vlog2.f32 %v877_v9  ;;  %v882_v18 = vld [vmem:[%s6729_s27 + $0x38] sm:$0xff]  ;;  %v918_v19 = vadd.f32 0.2, %v877_v9  ;;  %v919_v22 = vadd.f32 0.2, %v878_v11 }
  0x96   : > { %872 = vst [vmem:[#allocation2 + $0x20] sm:$0xff] %v864_v6  ;;  %5664 = vlog2.f32 %v878_v11  ;;  %v920_v25 = vadd.f32 0.2, %v879_v12  ;;  %v921_v28 = vadd.f32 0.2, %v880_v13 }
  0x97   : > { %873 = vst [vmem:[#allocation2 + $0x28] sm:$0xff] %v865_v8  ;;  %5666 = vlog2.f32 %v879_v12  ;;  %v922_v31 = vadd.f32 0.2, %v881_v15  ;;  %v923_v34 = vadd.f32 0.2, %v882_v18 }
  0x98   : > { %874 = vst [vmem:[#allocation2 + $0x38] sm:$0xff] %v866_v10  ;;  %5668 = vlog2.f32 %v880_v13 }
  0x99   : > { %v5659_v17 = vpop.eup %5658  ;;  %5670 = vlog2.f32 %v881_v15 }
  0x9a   : > { %v5661_v20 = vpop.eup %5660  ;;  %v884_v21 = vmul.f32 0.6931472, %v5659_v17  ;;  %5672 = vlog2.f32 %v882_v18 }
  0x9b   : > { %v5663_v23 = vpop.eup %5662  ;;  %v886_v24 = vmul.f32 0.6931472, %v5661_v20  ;;  %5674 = vlog2.f32 %v916_v14 }
  0x9c   : > { %v5665_v26 = vpop.eup %5664  ;;  %900 = vst.msk [vmem:[#allocation3] sm:$0xff] %vm899_vm0, %v884_v21  ;;  %v888_v27 = vmul.f32 0.6931472, %v5663_v23  ;;  %5676 = vlog2.f32 %v917_v16 }
  0x9d   : > { %v5667_v29 = vpop.eup %5666  ;;  %901 = vst.msk [vmem:[#allocation3 + $0x8] sm:$0xff] %vm899_vm0, %v886_v24  ;;  %v890_v30 = vmul.f32 0.6931472, %v5665_v26  ;;  %5678 = vlog2.f32 %v918_v19 }
  0x9e   : > { %v5669_v32 = vpop.eup %5668  ;;  %902 = vst.msk [vmem:[#allocation3 + $0x10] sm:$0xff] %vm899_vm0, %v888_v27  ;;  %v892_v33 = vmul.f32 0.6931472, %v5667_v29  ;;  %5680 = vlog2.f32 %v919_v22 }
  0x9f   : > { %v5671_v35 = vpop.eup %5670  ;;  %903 = vst.msk [vmem:[#allocation3 + $0x18] sm:$0xff] %vm899_vm0, %v890_v30  ;;  %v894_v36 = vmul.f32 0.6931472, %v5669_v32  ;;  %5682 = vlog2.f32 %v920_v25 }
  0xa0   : > { %v5673_v37 = vpop.eup %5672  ;;  %904 = vst.msk [vmem:[#allocation3 + $0x20] sm:$0xff] %vm899_vm0, %v892_v33  ;;  %v896_v38 = vmul.f32 0.6931472, %v5671_v35  ;;  %5684 = vlog2.f32 %v921_v28 }
  0xa1   : > { %v5675_v39 = vpop.eup %5674  ;;  %905 = vst.msk [vmem:[#allocation3 + $0x28] sm:$0xff] %vm899_vm0, %v894_v36  ;;  %v898_v40 = vmul.f32 0.6931472, %v5673_v37  ;;  %5686 = vlog2.f32 %v922_v31 }
  0xa2   : > { %v5677_v41 = vpop.eup %5676  ;;  %906 = vst.msk [vmem:[#allocation3 + $0x30] sm:$0xff] %vm899_vm0, %v896_v38  ;;  %v925_v42 = vmul.f32 0.6931472, %v5675_v39  ;;  %5688 = vlog2.f32 %v923_v34 }
  0xa3   : > { %v5679_v43 = vpop.eup %5678  ;;  %907 = vst.msk [vmem:[#allocation3 + $0x38] sm:$0xff] %vm899_vm0, %v898_v40  ;;  %v927_v44 = vmul.f32 0.6931472, %v5677_v41 }
  0xa4   : > { %v5681_v45 = vpop.eup %5680  ;;  %940 = vst.msk [vmem:[#allocation4] sm:$0xff] %vm899_vm0, %v925_v42  ;;  %v929_v46 = vmul.f32 0.6931472, %v5679_v43 }
  0xa5   : > { %v5683_v47 = vpop.eup %5682  ;;  %941 = vst.msk [vmem:[#allocation4 + $0x8] sm:$0xff] %vm899_vm0, %v927_v44  ;;  %v931_v48 = vmul.f32 0.6931472, %v5681_v45 }
  0xa6   : > { %v5685_v49 = vpop.eup %5684  ;;  %942 = vst.msk [vmem:[#allocation4 + $0x10] sm:$0xff] %vm899_vm0, %v929_v46  ;;  %v933_v50 = vmul.f32 0.6931472, %v5683_v47 }
  0xa7   : > { %v5687_v51 = vpop.eup %5686  ;;  %943 = vst.msk [vmem:[#allocation4 + $0x18] sm:$0xff] %vm899_vm0, %v931_v48  ;;  %v935_v52 = vmul.f32 0.6931472, %v5685_v49 }
  0xa8   : > { %v5689_v53 = vpop.eup %5688  ;;  %944 = vst.msk [vmem:[#allocation4 + $0x20] sm:$0xff] %vm899_vm0, %v933_v50  ;;  %v937_v54 = vmul.f32 0.6931472, %v5687_v51 }
  0xa9   : > { %945 = vst.msk [vmem:[#allocation4 + $0x28] sm:$0xff] %vm899_vm0, %v935_v52  ;;  %v939_v55 = vmul.f32 0.6931472, %v5689_v53 }
  0xaa   : > { %946 = vst.msk [vmem:[#allocation4 + $0x30] sm:$0xff] %vm899_vm0, %v937_v54 }
  0xab   : > { %947 = vst.msk [vmem:[#allocation4 + $0x38] sm:$0xff] %vm899_vm0, %v939_v55 }
  0xac PF: > { %v950_v56 = vld [vmem:[#allocation2 + $0x18] sm:$0xff]  ;;  %v948_v57 = vld [vmem:[#allocation2 + $0x30] sm:$0xff]  ;;  %v949_v59 = vld [vmem:[#allocation2] sm:$0xff]  ;;  %v6431_v63 = vmov 128.0   ;;  %s8702_s12 = sld [smem:[#allocation35_spill]] }
  0xad   : > { %1510 = vadd.xlane.f32.xlu1 %v950_v56  ;;  %1506 = vadd.xlane.f32.xlu0 %v948_v57  ;;  %v951_v58 = vld [vmem:[#allocation2 + $0x10] sm:$0xff]  ;;  %v953_v60 = vld [vmem:[#allocation2 + $0x20] sm:$0xff]  ;;  %v952_v61 = vld [vmem:[#allocation2 + $0x8] sm:$0xff]  ;;  %5762 = vrcp.f32 %v6431_v63 }
  0xae   : > { %v954_v62 = vld [vmem:[#allocation2 + $0x28] sm:$0xff]  ;;  %v6836_v32 = vld [vmem:[#allocation2 + $0x38] sm:$0xff] }
  0xb2   : > { %s1338_s5 = scalar_lea.vmem [#allocation12], %s8702_s12  ;;  %s1340_s16 = scalar_lea.vmem [#allocation13], %s8702_s12 }
  0xb3   : > { %v5763_v0 = vpop.eup %5762  ;;  %s5357_s10 = smul.u32 192, %s8702_s12  ;;  %s956_s17 = sld [smem:[#allocation6 + %s8702_s12]] }
  0xb4   : > { %v1523_v1 = vmul.f32 128.0, %v5763_v0  ;;  %vm1527_vm1 = vweird.f32 %v5763_v0  ;;  %p5346_p4 = scmp.ne.s32.totalorder %s8702_s12, 6 }
  0xb5   : > { %1512 = vadd.xlane.f32.xlu1 %v951_v58  ;;  %1508 = vadd.xlane.f32.xlu0 %v949_v59  ;;  %s6844_s24 = scalar_lea.vmem [#allocation15], %s5357_s10 }
  0xb6   : > { %v1524_v2 = vsub.f32 1.0, %v1523_v1  ;;  %v5016_v35 = vld [vmem:[%s6844_s24 + $0xa8] sm:$0xf]  ;;  %v5380_v36 = vld [vmem:[%s6844_s24 + $0xb0] sm:$0xf0] }
  0xb7   : > { %v5379_v37 = vld [vmem:[%s6844_s24 + $0xac] sm:$0xf]  ;;  %v5017_v38 = vor.u32 %v5380_v36, %v5016_v35  ;;  %v5018_v39 = vld [vmem:[%s6844_s24 + $0xb4] sm:$0xf0]  ;;  %v5024_v40 = vld [vmem:[%s6844_s24 + $0xb0] sm:$0xf] }
  0xb8   : > { %v1525_v3 = vmul.f32 %v5763_v0, %v1524_v2  ;;  %v5381_v41 = vld [vmem:[%s6844_s24 + $0xb8] sm:$0xf0]  ;;  %v5021_v42 = vor.u32 %v5379_v37, %v5018_v39  ;;  %v5004_v44 = vld [vmem:[%s6844_s24 + $0x90] sm:$0xf]  ;;  %v5376_v46 = vld [vmem:[%s6844_s24 + $0x94] sm:$0xf] }
  0xb9   : > { %v5025_v43 = vor.u32 %v5381_v41, %v5024_v40  ;;  %1827 = vmatpush.bf16.msra.mxu0 %v5017_v38  ;;  %v5377_v45 = vld [vmem:[%s6844_s24 + $0x98] sm:$0xf0]  ;;  %v5006_v48 = vld [vmem:[%s6844_s24 + $0x9c] sm:$0xf0]  ;;  %v5012_v49 = vld [vmem:[%s6844_s24 + $0x98] sm:$0xf] }
  0xba   : > { %v1526_v4 = vadd.f32 %v5763_v0, %v1525_v3  ;;  %1856 = vmatpush.bf16.msra.mxu1 %v5021_v42  ;;  %v5005_v47 = vor.u32 %v5377_v45, %v5004_v44  ;;  %v5378_v50 = vld [vmem:[%s6844_s24 + $0xa0] sm:$0xf0]  ;;  %v5009_v51 = vor.u32 %v5376_v46, %v5006_v48  ;;  %v4992_v53 = vld [vmem:[%s6844_s24 + $0x78] sm:$0xf]  ;;  %v5373_v55 = vld [vmem:[%s6844_s24 + $0x7c] sm:$0xf] }
  0xbb   : > { %1885 = vmatpush.bf16.msra.mxu2 %v5025_v43  ;;  %v5013_v52 = vor.u32 %v5378_v50, %v5012_v49  ;;  %v5374_v54 = vld [vmem:[%s6844_s24 + $0x80] sm:$0xf0]  ;;  %v5371_v63 = vld [vmem:[%s6844_s24 + $0x68] sm:$0xf0]  ;;  %v4982_v2 = vld [vmem:[%s6844_s24 + $0x6c] sm:$0xf0] }
  0xbc   : > { %v6801_v5 = vsel %vm1527_vm1, %v5763_v0, %v1526_v4  ;;  %v5370_v0 = vld [vmem:[%s6844_s24 + $0x64] sm:$0xf]  ;;  %v4988_v3 = vld [vmem:[%s6844_s24 + $0x68] sm:$0xf]  ;;  %v5372_v4 = vld [vmem:[%s6844_s24 + $0x70] sm:$0xf0] }
  0xbd   : > { %1516 = vadd.xlane.f32.xlu1 %v953_v60  ;;  %1514 = vadd.xlane.f32.xlu0 %v952_v61  ;;  %8701 = vst [vmem:[#allocation39_spill] sm:$0xff] %v6801_v5  ;;  %v5362_v35 = vld [vmem:[%s6844_s24 + $0x20] sm:$0xf0]  ;;  %v5361_v36 = vld [vmem:[%s6844_s24 + $0x1c] sm:$0xf]  ;;  %p960_p8 = scmp.eq.s32.totalorder %s956_s17, 1 }
  0xbe   : > { %1828 = vmatpush.bf16.msra.mxu0 %v5005_v47  ;;  %1857 = vmatpush.bf16.msra.mxu1 %v5009_v51  ;;  %v4946_v39 = vld [vmem:[%s6844_s24 + $0x24] sm:$0xf0]  ;;  %v4952_v40 = vld [vmem:[%s6844_s24 + $0x20] sm:$0xf]  ;;  %v5363_v41 = vld [vmem:[%s6844_s24 + $0x28] sm:$0xf0] }
  0xbf   : > { %1886 = vmatpush.bf16.msra.mxu2 %v5013_v52  ;;  %v4949_v43 = vor.u32 %v5361_v36, %v4946_v39  ;;  %v4953_v44 = vor.u32 %v5363_v41, %v4952_v40  ;;  %v4932_v46 = vld [vmem:[%s6844_s24] sm:$0xf]  ;;  %v5359_v47 = vld [vmem:[%s6844_s24 + $0x8] sm:$0xf0]  ;;  %v5358_v49 = vld [vmem:[%s6844_s24 + $0x4] sm:$0xf] }
  0xc0   : > { %v4933_v48 = vor.u32 %v5359_v47, %v4932_v46  ;;  %v4934_v50 = vld [vmem:[%s6844_s24 + $0xc] sm:$0xf0]  ;;  %v4940_v51 = vld [vmem:[%s6844_s24 + $0x8] sm:$0xf]  ;;  %p972_p9 = scmp.eq.s32.totalorder %s956_s17, 5  ;;  %p975_p10 = scmp.eq.s32.totalorder %s956_s17, 6 }
  0xc1   : > { %v4937_v52 = vor.u32 %v5358_v49, %v4934_v50  ;;  %s7031_s6 = scalar_select %p960_p8, 1, 0 }
  0xc2   : > { %s7033_s25 = scalar_select %p972_p9, 1, 0 }
  0xc3   : > { %p966_p11 = scmp.eq.s32.totalorder %s956_s17, 3  ;;  %p957_p12 = scmp.eq.s32.totalorder %s956_s17, 0 }
  0xc4   : > { %p963_p13 = scmp.eq.s32.totalorder %s956_s17, 2  ;;  %p969_p2 = scmp.eq.s32.totalorder %s956_s17, 4 }
  0xc5   : > { %1518 = vadd.xlane.f32.xlu1 %v954_v62  ;;  %s962_s26 = scvt.s32.f32 %s7031_s6  ;;  %s974_s23 = scvt.s32.f32 %s7033_s25 }
  0xc6   : > { %s7037_s11 = scalar_select %p975_p10, 1, 0 }
  0xc7   : > { %s958_s13 = scalar_select %p957_p12, 1, 0 }
  0xc8   : > { %s7040_s18 = scalar_select %p963_p13, 1, 0 }
  0xc9   : > { %s7042_s9 = scalar_select %p969_p2, 1, 0 }
  0xca   : > { %s7050_s10 = scvt.s32.f32 %s958_s13  ;;  %s7065_s13 = sadd.f32 %s974_s23, %s962_s26 }
  0xcb   : > { %s965_s3 = scvt.s32.f32 %s7040_s18 }
 0x120   : > { %v1511_v6 = vpop.xlane.xlu1 %1510  ;;  %v1507_v7 = vpop.xlane.xlu0 %1506 }
 0x121   : > { %v1529_v8 = vmul.f32 %v6801_v5, %v1507_v7  ;;  %v1531_v15 = vmul.f32 %v6801_v5, %v1511_v6  ;;  %v4985_v6 = vor.u32 %v5370_v0, %v4982_v2  ;;  %v4989_v7 = vor.u32 %v5372_v4, %v4988_v3 }
 0x123   : > { %v6804_v9 = vsub.f32 %v948_v57, %v1529_v8  ;;  %v6819_v20 = vsub.f32 %v950_v56, %v1531_v15  ;;  %v4993_v56 = vor.u32 %v5374_v54, %v4992_v53  ;;  %v4994_v57 = vld [vmem:[%s6844_s24 + $0x84] sm:$0xf0]  ;;  %v5369_v15 = vld [vmem:[%s6844_s24 + $0x58] sm:$0xf0]  ;;  %v5360_v53 = vld [vmem:[%s6844_s24 + $0x10] sm:$0xf0] }
 0x124   : > { %v4968_v8 = vld [vmem:[%s6844_s24 + $0x48] sm:$0xf]  ;;  %v4941_v54 = vor.u32 %v5360_v53, %v4940_v51 }
 0x125   : > { %v1545_v10 = vmul.f32 %v6804_v9, %v6804_v9  ;;  %v1547_v26 = vmul.f32 %v6819_v20, %v6819_v20  ;;  %1829 = vmatpush.bf16.msra.mxu0 %v4993_v56 }
 0x127   : > { %1553 = vadd.xlane.f32.xlu2 %v1545_v10  ;;  %v5368_v10 = vld [vmem:[%s6844_s24 + $0x50] sm:$0xf0] }
 0x128   : > { %v1513_v11 = vpop.xlane.xlu1 %1512  ;;  %v1509_v12 = vpop.xlane.xlu0 %1508 }
 0x129   : > { %v1532_v13 = vmul.f32 %v6801_v5, %v1513_v11  ;;  %v1530_v14 = vmul.f32 %v6801_v5, %v1509_v12  ;;  %v5367_v11 = vld [vmem:[%s6844_s24 + $0x4c] sm:$0xf]  ;;  %v4969_v12 = vor.u32 %v5368_v10, %v4968_v8 }
 0x12b   : > { %v6811_v16 = vsub.f32 %v951_v58, %v1532_v13  ;;  %v6813_v17 = vsub.f32 %v949_v59, %v1530_v14  ;;  %v5000_v58 = vld [vmem:[%s6844_s24 + $0x80] sm:$0xf]  ;;  %v5375_v59 = vld [vmem:[%s6844_s24 + $0x88] sm:$0xf0]  ;;  %v4970_v13 = vld [vmem:[%s6844_s24 + $0x54] sm:$0xf0] }
 0x12c   : > { %v4976_v14 = vld [vmem:[%s6844_s24 + $0x50] sm:$0xf] }
 0x12d   : > { %v1548_v18 = vmul.f32 %v6811_v16, %v6811_v16  ;;  %v1546_v19 = vmul.f32 %v6813_v17, %v6813_v17 }
 0x12f   : > { %1559 = vadd.xlane.f32.xlu0 %v1548_v18  ;;  %1555 = vadd.xlane.f32.xlu2 %v1546_v19  ;;  %v4973_v18 = vor.u32 %v5367_v11, %v4970_v13  ;;  %v4977_v19 = vor.u32 %v5369_v15, %v4976_v14 }
 0x130   : > { %v1517_v21 = vpop.xlane.xlu1 %1516  ;;  %v1515_v22 = vpop.xlane.xlu0 %1514 }
 0x131   : > { %v1534_v23 = vmul.f32 %v6801_v5, %v1517_v21  ;;  %v1533_v24 = vmul.f32 %v6801_v5, %v1515_v22  ;;  %v4956_v21 = vld [vmem:[%s6844_s24 + $0x30] sm:$0xf]  ;;  %v5365_v22 = vld [vmem:[%s6844_s24 + $0x38] sm:$0xf0] }
 0x133   : > { %v6823_v25 = vsub.f32 %v953_v60, %v1534_v23  ;;  %v6827_v27 = vsub.f32 %v952_v61, %v1533_v24  ;;  %v4997_v60 = vor.u32 %v5373_v55, %v4994_v57  ;;  %v5001_v61 = vor.u32 %v5375_v59, %v5000_v58  ;;  %v5364_v23 = vld [vmem:[%s6844_s24 + $0x34] sm:$0xf] }
 0x134   : > { %v4957_v24 = vor.u32 %v5365_v22, %v4956_v21 }
 0x135   : > { %v1550_v28 = vmul.f32 %v6823_v25, %v6823_v25  ;;  %v1549_v29 = vmul.f32 %v6827_v27, %v6827_v27  ;;  %1858 = vmatpush.bf16.msra.mxu1 %v4997_v60  ;;  %1887 = vmatpush.bf16.msra.mxu2 %v5001_v61 }
 0x137   : > { %1563 = vadd.xlane.f32.xlu1 %v1550_v28  ;;  %1557 = vadd.xlane.f32.xlu2 %v1547_v26  ;;  %v4958_v26 = vld [vmem:[%s6844_s24 + $0x3c] sm:$0xf0]  ;;  %v4964_v28 = vld [vmem:[%s6844_s24 + $0x38] sm:$0xf] }
 0x138   : > { %1561 = vadd.xlane.f32.xlu0 %v1549_v29  ;;  %v1519_v30 = vpop.xlane.xlu1 %1518  ;;  %v5366_v29 = vld [vmem:[%s6844_s24 + $0x40] sm:$0xf0] }
 0x139   : > { %v1535_v31 = vmul.f32 %v6801_v5, %v1519_v30  ;;  %1859 = vmatpush.bf16.msra.mxu1 %v4985_v6  ;;  %1888 = vmatpush.bf16.msra.mxu2 %v4989_v7  ;;  %v4961_v30 = vor.u32 %v5364_v23, %v4958_v26 }
 0x13b   : > { %v6839_v33 = vsub.f32 %v954_v62, %v1535_v31  ;;  %v4980_v62 = vld [vmem:[%s6844_s24 + $0x60] sm:$0xf]  ;;  %v4965_v31 = vor.u32 %v5366_v29, %v4964_v28 }
 0x13c   : > { %v4981_v1 = vor.u32 %v5371_v63, %v4980_v62 }
 0x13d   : > { %v1551_v34 = vmul.f32 %v6839_v33, %v6839_v33  ;;  %1860 = vmatpush.bf16.msra.mxu1 %v4973_v18  ;;  %1889 = vmatpush.bf16.msra.mxu2 %v4977_v19 }
 0x13e   : > { %1830 = vmatpush.bf16.msra.mxu0 %v4981_v1 }
 0x13f   : > { %1520 = vadd.xlane.f32.xlu2 %v6836_v32 }
 0x141   : > { %1861 = vmatpush.bf16.msra.mxu1 %v4961_v30  ;;  %1890 = vmatpush.bf16.msra.mxu2 %v4965_v31 }
 0x142   : > { %1831 = vmatpush.bf16.msra.mxu0 %v4969_v12 }
 0x145   : > { %1862 = vmatpush.bf16.msra.mxu1 %v4949_v43  ;;  %1891 = vmatpush.bf16.msra.mxu2 %v4953_v44  ;;  %v6929_v44 = vld [vmem:[%s1340_s16] ss:$0 sm:$0xff]  ;;  %s977_s16 = scvt.s32.f32 %s7037_s11 }
 0x146   : > { %1832 = vmatpush.bf16.msra.mxu0 %v4957_v24 }
 0x147   : > { %1565 = vadd.xlane.f32.xlu2 %v1551_v34  ;;  %v4944_v34 = vld [vmem:[%s6844_s24 + $0x18] sm:$0xf]  ;;  %s971_s24 = scvt.s32.f32 %s7042_s9  ;;  %s7060_s17 = sadd.f32 %s977_s16, %s7050_s10 }
 0x148   : > { %v4945_v38 = vor.u32 %v5362_v35, %v4944_v34  ;;  %v6921_v34 = vld [vmem:[%s1338_s5] ss:$0 sm:$0xff]  ;;  %s7044_s5 = scalar_select %p966_p11, 1, 0 }
 0x149   : > { %1863 = vmatpush.bf16.msra.mxu1 %v4937_v52  ;;  %1892 = vmatpush.bf16.msra.mxu2 %v4941_v54  ;;  %s1152_s9 = ssub.f32 1.0, %s7050_s10 }
 0x14a   : > { %1833 = vmatpush.bf16.msra.mxu0 %v4945_v38  ;;  %s968_s6 = scvt.s32.f32 %s7044_s5  ;;  %s1189_s26 = ssub.f32 1.0, %s7060_s17 }
 0x14b   : > { %s7096_s5 = sadd.f32 %s977_s16, %s965_s3 }
 0x14c   : > { %s1190_s11 = ssub.f32 %s1189_s26, %s7065_s13 }
 0x14d   : > { %s8772_s16 = sld [smem:[#allocation85_spill]] }
 0x14e   : > { %1834 = vmatpush.bf16.msra.mxu0 %v4933_v48 }
 0x19a   : > { %v1554_v37 = vpop.xlane.xlu2 %1553 }
 0x19b   : > { %v1569_v42 = vmul.f32 %v1554_v37, %v6801_v5 }
 0x19d   : > { %v1577_v45 = vadd.f32 1e-05, %v1569_v42 }
 0x19f   : > { %5764 = vrsqrt.f32 %v1577_v45  ;;  %vm1591_vm3 = vweird.f32 %v1577_v45 }
 0x1a2   : > { %v1556_v55 = vpop.xlane.xlu2 %1555  ;;  %v1560_v56 = vpop.xlane.xlu0 %1559 }
 0x1a3   : > { %v1570_v57 = vmul.f32 %v1556_v55, %v6801_v5  ;;  %v1572_v58 = vmul.f32 %v1560_v56, %v6801_v5 }
 0x1a5   : > { %v5765_v59 = vpop.eup %5764  ;;  %v1578_v60 = vadd.f32 1e-05, %v1570_v57  ;;  %v6897_v61 = vadd.f32 1e-05, %v1572_v58 }
 0x1a6   : > { %v1586_v62 = vmul.f32 %v5765_v59, %v1577_v45  ;;  %vm1592_vm2 = vweird.f32 %v5765_v59 }
 0x1a7   : > { %5766 = vrsqrt.f32 %v1578_v60  ;;  %vm1593_vm4 = vmor %vm1591_vm3, %vm1592_vm2  ;;  %vm1601_vm6 = vweird.f32 %v1578_v60  ;;  %vm1621_vm8 = vweird.f32 %v6897_v61 }
 0x1a8   : > { %v1587_v63 = vmul.f32 %v5765_v59, %v1586_v62  ;;  %5768 = vrsqrt.f32 %v6897_v61 }
 0x1aa   : > { %v1588_v0 = vmul.f32 0.5, %v1587_v63  ;;  %v1564_v1 = vpop.xlane.xlu1 %1563  ;;  %v1558_v2 = vpop.xlane.xlu2 %1557 }
 0x1ab   : > { %v1574_v3 = vmul.f32 %v1564_v1, %v6801_v5  ;;  %v1571_v4 = vmul.f32 %v1558_v2, %v6801_v5  ;;  %v1562_v6 = vpop.xlane.xlu0 %1561 }
 0x1ac   : > { %v1589_v7 = vsub.f32 1.5, %v1588_v0  ;;  %v1573_v8 = vmul.f32 %v1562_v6, %v6801_v5 }
 0x1ad   : > { %v5767_v10 = vpop.eup %5766  ;;  %v1579_v11 = vadd.f32 1e-05, %v1571_v4  ;;  %v6905_v15 = vadd.f32 1e-05, %v1574_v3 }
 0x1ae   : > { %v6903_v12 = vpop.eup %5768  ;;  %v1590_v13 = vmul.f32 %v5765_v59, %v1589_v7  ;;  %v1596_v14 = vmul.f32 %v5767_v10, %v1578_v60  ;;  %v6909_v19 = vadd.f32 1e-05, %v1573_v8  ;;  %vm1602_vm5 = vweird.f32 %v5767_v10 }
 0x1af   : > { %v1616_v18 = vmul.f32 %v6903_v12, %v6897_v61  ;;  %5770 = vrsqrt.f32 %v1579_v11  ;;  %vm1603_vm7 = vmor %vm1601_vm6, %vm1602_vm5  ;;  %vm1622_vm9 = vweird.f32 %v6903_v12  ;;  %vm1611_vm12 = vweird.f32 %v1579_v11 }
 0x1b0   : > { %v1597_v21 = vmul.f32 %v5767_v10, %v1596_v14  ;;  %v1594_v22 = vsel %vm1593_vm4, %v5765_v59, %v1590_v13  ;;  %5772 = vrsqrt.f32 %v6905_v15  ;;  %vm1623_vm11 = vmor %vm1621_vm8, %vm1622_vm9  ;;  %vm1641_vm14 = vweird.f32 %v6905_v15 }
 0x1b1   : > { %v1617_v24 = vmul.f32 %v6903_v12, %v1616_v18  ;;  %5774 = vrsqrt.f32 %v6909_v19  ;;  %v1665_v30 = vmul.f32 %v1594_v22, %v6804_v9  ;;  %vm1631_vm0 = vweird.f32 %v6909_v19 }
 0x1b2   : > { %v1598_v23 = vmul.f32 0.5, %v1597_v21  ;;  %v1521_v26 = vpop.xlane.xlu2 %1520 }
 0x1b3   : > { %v1536_v28 = vmul.f32 %v6801_v5, %v1521_v26  ;;  %v1618_v37 = vmul.f32 0.5, %v1617_v24  ;;  %v1676_v43 = vmul.f32 %v6921_v34, %v1665_v30 }
 0x1b4   : > { %v1599_v29 = vsub.f32 1.5, %v1598_v23 }
 0x1b5   : > { %v6917_v31 = vsub.f32 %v6836_v32, %v1536_v28  ;;  %v5771_v35 = vpop.eup %5770  ;;  %v1619_v45 = vsub.f32 1.5, %v1618_v37  ;;  %v6937_v50 = vadd.f32 %v6929_v44, %v1676_v43 }
 0x1b6   : > { %v1600_v36 = vmul.f32 %v5767_v10, %v1599_v29  ;;  %v1606_v38 = vmul.f32 %v5771_v35, %v1579_v11  ;;  %v5773_v40 = vpop.eup %5772  ;;  %vm1612_vm10 = vweird.f32 %v5771_v35 }
 0x1b7   : > { %v1552_v39 = vmul.f32 %v6917_v31, %v6917_v31  ;;  %v5775_v42 = vpop.eup %5774  ;;  %v1636_v48 = vmul.f32 %v5773_v40, %v6905_v15  ;;  %8703 = vst [vmem:[#allocation40_spill] sm:$0xff] %v6937_v50  ;;  %v1620_v52 = vmul.f32 %v6903_v12, %v1619_v45  ;;  %vm1613_vm13 = vmor %vm1611_vm12, %vm1612_vm10  ;;  %vm1642_vm15 = vweird.f32 %v5773_v40 }
 0x1b8   : > { %v1604_v41 = vsel %vm1603_vm7, %v5767_v10, %v1600_v36  ;;  %v1607_v32 = vmul.f32 %v5771_v35, %v1606_v38  ;;  %v1626_v49 = vmul.f32 %v5775_v42, %v6909_v19  ;;  %vm1632_vm1 = vweird.f32 %v5775_v42  ;;  %vm1643_vm2 = vmor %vm1641_vm14, %vm1642_vm15 }
 0x1b9   : > { %v1666_v9 = vmul.f32 %v1604_v41, %v6813_v17  ;;  %1567 = vadd.xlane.f32.xlu0 %v1552_v39  ;;  %v1637_v55 = vmul.f32 %v5773_v40, %v1636_v48  ;;  %v1624_v58 = vsel %vm1623_vm11, %v6903_v12, %v1620_v52  ;;  %vm1633_vm3 = vmor %vm1631_vm0, %vm1632_vm1  ;;  %v8614_v45 = vmov 0  }
 0x1ba   : > { %v1608_v46 = vmul.f32 0.5, %v1607_v32  ;;  %v1627_v56 = vmul.f32 %v5775_v42, %v1626_v49  ;;  %v1668_v62 = vmul.f32 %v1624_v58, %v6811_v16  ;;  %v1566_v19 = vpop.xlane.xlu2 %1565  ;;  %5690 = vset.pattern.permute.xlu1 %v8614_v45  ;;  %5692 = vset.pattern.permute.xlu0 %v8614_v45  ;;  %vm1948_vm10 = vcmask 261120  }
 0x1bb   : > { %v1677_v47 = vmul.f32 %v6921_v34, %v1666_v9  ;;  %v1638_v60 = vmul.f32 0.5, %v1637_v55  ;;  %5691 = vset.pattern.permute.xlu2 %v8614_v45 }
 0x1bc   : > { %v1609_v17 = vsub.f32 1.5, %v1608_v46  ;;  %v1628_v61 = vmul.f32 0.5, %v1627_v56  ;;  %v1679_v2 = vmul.f32 %v6921_v34, %v1668_v62  ;;  %v978_v46 = vld [vmem:[%s6772_s14] sm:$0xff] }
 0x1bd   : > { %v6940_v51 = vadd.f32 %v6929_v44, %v1677_v47  ;;  %v1639_v0 = vsub.f32 1.5, %v1638_v60  ;;  %992 = vperm.xlu1 %5690, %v978_v46  }
 0x1be   : > { %v1610_v53 = vmul.f32 %v5771_v35, %v1609_v17  ;;  %v1629_v1 = vsub.f32 1.5, %v1628_v61  ;;  %v6956_v16 = vadd.f32 %v6929_v44, %v1679_v2 }
 0x1bf   : > { %8704 = vst [vmem:[#allocation41_spill] sm:$0xff] %v6940_v51  ;;  %v1695_v54 = vpack.c.bf16 %v6940_v51, %v6937_v50  ;;  %v1097_v50 = vld [vmem:[%s6722_s8 + $0x20] sm:$0xff] }
 0x1c0   : > { %v1614_v57 = vsel %vm1613_vm13, %v5771_v35, %v1610_v53  ;;  %v1630_v4 = vmul.f32 %v5775_v42, %v1629_v1  ;;  %8706 = vst [vmem:[#allocation43_spill] sm:$0xff] %v6956_v16 }
 0x1c1   : > { %1835 = vmatmul.bf16.vlgmr.msra.gmra.mxu0 %v1695_v54  ;;  %1864 = vmatmul.bf16.vlgmr.msra.gmra.mxu1 %v1695_v54  ;;  %v1667_v59 = vmul.f32 %v1614_v57, %v6819_v20  ;;  %v1640_v20 = vmul.f32 %v5773_v40, %v1639_v0 }
 0x1c2   : > { %1893 = vmatmul.bf16.vlgmr.msra.gmra.mxu2 %v1695_v54  ;;  %v1634_v8 = vsel %vm1633_vm3, %v5775_v42, %v1630_v4 }
 0x1c3   : > { %v1678_v63 = vmul.f32 %v6921_v34, %v1667_v59  ;;  %v1644_v7 = vsel %vm1643_vm2, %v5773_v40, %v1640_v20  ;;  %v1669_v11 = vmul.f32 %v1634_v8, %v6827_v27 }
 0x1c4   : > { %v1670_v10 = vmul.f32 %v1644_v7, %v6823_v25  ;;  %v1575_v25 = vmul.f32 %v1566_v19, %v6801_v5 }
 0x1c5   : > { %v6953_v3 = vadd.f32 %v6929_v44, %v1678_v63  ;;  %v1680_v12 = vmul.f32 %v6921_v34, %v1669_v11  ;;  %v980_v63 = vld [vmem:[%s6772_s14 + $0x10] sm:$0xff] }
 0x1c6   : > { %v1681_v13 = vmul.f32 %v6921_v34, %v1670_v10  ;;  %v1583_v27 = vadd.f32 1e-05, %v1575_v25  ;;  %v982_v10 = vld [vmem:[%s6772_s14 + $0x20] sm:$0xff] }
 0x1c7   : > { %8705 = vst [vmem:[#allocation42_spill] sm:$0xff] %v6953_v3  ;;  %v1696_v6 = vpack.c.bf16 %v6956_v16, %v6953_v3  ;;  %v6965_v14 = vadd.f32 %v6929_v44, %v1680_v12 }
 0x1c8   : > { %v6968_v15 = vadd.f32 %v6929_v44, %v1681_v13  ;;  %5776 = vrsqrt.f32 %v1583_v27  ;;  %vm1651_vm4 = vweird.f32 %v1583_v27 }
 0x1c9   : > { %8707 = vst [vmem:[#allocation44_spill] sm:$0xff] %v6965_v14 }
 0x1ca   : > { %8708 = vst [vmem:[#allocation45_spill] sm:$0xff] %v6968_v15  ;;  %v1697_v18 = vpack.c.bf16 %v6968_v15, %v6965_v14 }
 0x1cd   : > { %1002 = vperm.xlu0 %5692, %v980_v63  }
 0x1ce   : > { %v5777_v21 = vpop.eup %5776 }
 0x1cf   : > { %v1646_v22 = vmul.f32 %v5777_v21, %v1583_v27  ;;  %vm1652_vm5 = vweird.f32 %v5777_v21 }
 0x1d0   : > { %vm1653_vm6 = vmor %vm1651_vm4, %vm1652_vm5 }
 0x1d1   : > { %1840 = vmatmul.bf16.gmra.mxu0 %v1696_v6  ;;  %1869 = vmatmul.bf16.gmra.mxu1 %v1696_v6  ;;  %v1647_v23 = vmul.f32 %v5777_v21, %v1646_v22 }
 0x1d2   : > { %1898 = vmatmul.bf16.gmra.mxu2 %v1696_v6  ;;  %v979_v6 = vld [vmem:[%s6772_s14 + $0x8] sm:$0xff] }
 0x1d3   : > { %v1648_v29 = vmul.f32 0.5, %v1647_v23  ;;  %997 = vperm.xlu2 %5691, %v979_v6  }
 0x1d5   : > { %v1649_v30 = vsub.f32 1.5, %v1648_v29  ;;  %1012 = vperm.xlu0 %5692, %v982_v10   ;;  %v983_v29 = vld [vmem:[%s6772_s14 + $0x28] sm:$0xff] }
 0x1d7   : > { %v1650_v36 = vmul.f32 %v5777_v21, %v1649_v30 }
 0x1d9   : > { %v1654_v39 = vsel %vm1653_vm6, %v5777_v21, %v1650_v36  ;;  %v981_v21 = vld [vmem:[%s6772_s14 + $0x18] sm:$0xff]  ;;  %vm2091_vm6 = vcmask 130048  }
 0x1da   : > { %v1671_v32 = vmul.f32 %v1654_v39, %v6839_v33 }
 0x1db   : > { %1007 = vperm.xlu2 %5691, %v981_v21   ;;  %v7076_v21 = vstv %s971_s24  ;;  %s1153_s24 = ssub.f32 %s1152_s9, %s7065_s13 }
 0x1dc   : > { %v1682_v49 = vmul.f32 %v6921_v34, %v1671_v32 }
 0x1dd   : > { %1017 = vperm.xlu0 %5692, %v983_v29  }
 0x1de   : > { %v6985_v56 = vadd.f32 %v6929_v44, %v1682_v49 }
 0x1e0   : > { %8709 = vst [vmem:[#allocation46_spill] sm:$0xff] %v6985_v56 }
 0x1e1   : > { %1845 = vmatmul.bf16.gmra.mxu0 %v1697_v18  ;;  %1874 = vmatmul.bf16.gmra.mxu1 %v1697_v18 }
 0x1e2   : > { %1903 = vmatmul.bf16.gmra.mxu2 %v1697_v18 }
 0x22c   : > { %v1568_v24 = vpop.xlane.xlu0 %1567 }
 0x22d   : > { %v1576_v26 = vmul.f32 %v1568_v24, %v6801_v5 }
 0x22f   : > { %v1584_v28 = vadd.f32 1e-05, %v1576_v26 }
 0x231   : > { %5778 = vrsqrt.f32 %v1584_v28  ;;  %vm1661_vm8 = vweird.f32 %v1584_v28 }
 0x237   : > { %v5779_v35 = vpop.eup %5778 }
 0x238   : > { %v1656_v37 = vmul.f32 %v5779_v35, %v1584_v28  ;;  %vm1662_vm7 = vweird.f32 %v5779_v35 }
 0x239   : > { %vm1663_vm9 = vmor %vm1661_vm8, %vm1662_vm7 }
 0x23a   : > { %v1657_v38 = vmul.f32 %v5779_v35, %v1656_v37 }
 0x23c   : > { %v1658_v40 = vmul.f32 0.5, %v1657_v38 }
 0x23e   : > { %v1659_v41 = vsub.f32 1.5, %v1658_v40  ;;  %v1836_v42 = vpop.f32.mrf.mxu0  ;;  %v1865_v9 = vpop.f32.mrf.mxu1 }
 0x23f   : > { %v1922_v17 = vpack.c.bf16 %v1865_v9, %v1865_v9  ;;  %v1914_v1 = vpack.c.bf16 %v1836_v42, %v1836_v42  ;;  %v1003_v15 = vpop.permute.xlu0 %1002 }
 0x240   : > { %v1660_v43 = vmul.f32 %v5779_v35, %v1659_v41 }
 0x241   : > { %v1945_v58 = vunpack.c.l.b16 %v1922_v17  ;;  %v1940_v11 = vunpack.c.l.b16 %v1914_v1 }
 0x242   : > { %v1664_v47 = vsel %vm1663_vm9, %v5779_v35, %v1660_v43 }
 0x243   : > { %v1672_v48 = vmul.f32 %v1664_v47, %v6917_v31 }
 0x245   : > { %v6981_v52 = vpop.f32.mrf.mxu2  ;;  %v1683_v33 = vmul.f32 %v6921_v34, %v1672_v48 }
 0x246   : > { %v1838_v53 = vpop.f32.mrf.mxu0  ;;  %v1867_v54 = vpop.f32.mrf.mxu1 }
 0x247   : > { %v1923_v55 = vpack.c.bf16 %v1867_v54, %v1867_v54  ;;  %v6988_v57 = vadd.f32 %v6929_v44, %v1683_v33  ;;  %v1915_v0 = vpack.c.bf16 %v1838_v53, %v1838_v53 }
 0x249   : > { %8710 = vst [vmem:[#allocation47_spill] sm:$0xff] %v6988_v57  ;;  %v1946_v59 = vunpack.c.l.b16 %v1923_v55  ;;  %v1698_v31 = vpack.c.bf16 %v6988_v57, %v6985_v56  ;;  %v1941_v2 = vunpack.c.l.b16 %v1915_v0 }
 0x24b   : > { %v6992_v60 = vpack.c.b16 %v1946_v59, %v1945_v58  ;;  %1850 = vmatmul.bf16.gmra.mxu0 %v1698_v31  ;;  %1879 = vmatmul.bf16.gmra.mxu1 %v1698_v31  ;;  %v7003_v13 = vpack.c.b16 %v1941_v2, %v1940_v11  ;;  %v7048_v2 = vld [vmem:[%s6764_s7 + $0x1] ss:$0 sm:$0xff] }
 0x24c   : > { %1908 = vmatmul.bf16.gmra.mxu2 %v1698_v31  ;;  %v998_v31 = vpop.permute.xlu2 %997 }
 0x24d   : > { %v6994_v34 = vpop.f32.mrf.mxu2  ;;  %v1953_v61 = vsel %vm1948_vm10, %v6992_v60, 0 }
 0x24e   : > { %v1841_v44 = vpop.f32.mrf.mxu0  ;;  %v1870_v62 = vpop.f32.mrf.mxu1  ;;  %1962 = vmatpush.bf16.xpose.msrb.mxu0 %v1953_v61  ;;  %v5755_v61 = vld [vmem:[%s6764_s7] ss:$0 sm:$0xff] }
 0x24f   : > { %v1924_v20 = vpack.c.bf16 %v1870_v62, %v1870_v62  ;;  %v1916_v22 = vpack.c.bf16 %v1841_v44, %v1841_v44  ;;  %v1074_v44 = vlaneseq  ;;  %v993_v62 = vpop.permute.xlu1 %992  ;;  %v1043_v10 = vadd.f32 %v5755_v61, %v998_v31 }
 0x250   : > { %v1042_v1 = vadd.f32 %v5755_v61, %v993_v62  ;;  %v1302_v61 = vstv %s7096_s5  ;;  %s4928_s5 = sshll.u32 %s8702_s12, 2 }
 0x251   : > { %v1976_v18 = vunpack.c.l.b16 %v1924_v20  ;;  %v1971_v35 = vunpack.c.l.b16 %v1916_v22  ;;  %v1075_v63 = vshrl.u32 %v1074_v44, 7  ;;  %v1078_v0 = vand.u32 127, %v1074_v44  ;;  %v1094_v22 = vld [vmem:[%s6722_s8 + $0x8] sm:$0xff] }
 0x252   : > { %v1930_v20 = vpack.c.bf16 %v6981_v52, %v6981_v52  ;;  %vm1050_vm12 = vcmp.gt.f32.partialorder %v1042_v1, 0.5  ;;  %v1216_v52 = vld [vmem:[#allocation3] sm:$0xff]  ;;  %vm1051_vm14 = vcmp.gt.f32.partialorder %v1043_v10, 0.5  ;;  %vm1102_vm1 = vcmp.lt.f32.partialorder %v1094_v22, 0.5  ;;  %v1217_v1 = vld [vmem:[#allocation3 + $0x8] sm:$0xff] }
 0x253   : > { %vm1079_vm11 = vcmp.eq.s32.totalorder %v1075_v63, %v1078_v0  ;;  %v1232_v29 = vsub.f32 0.0, %v1216_v52  ;;  %vm7161_vm5 = vcmp.gt.f32.partialorder %v1302_v61, 0.5  ;;  %v1209_v22 = vld [vmem:[%s6729_s27 + $0x8] sm:$0xff] }
 0x254   : > { %v1008_v6 = vpop.permute.xlu2 %1007 }
 0x255   : > { %v6999_v4 = vpop.f32.mrf.mxu2  ;;  %v1045_v11 = vadd.f32 %v7048_v2, %v1008_v6 }
 0x256   : > { %v1843_v7 = vpop.f32.mrf.mxu0  ;;  %v1872_v8 = vpop.f32.mrf.mxu1  ;;  %v1932_v6 = vpack.c.bf16 %v6999_v4, %v6999_v4 }
 0x257   : > { %v1925_v12 = vpack.c.bf16 %v1872_v8, %v1872_v8  ;;  %v1917_v25 = vpack.c.bf16 %v1843_v7, %v1843_v7  ;;  %v1931_v7 = vpack.c.bf16 %v6994_v34, %v6994_v34  ;;  %v1076_v8 = vadd.s32 8, %v1075_v63 }
 0x258   : > { %v7069_v34 = vunpack.c.l.b16 %v1930_v20  ;;  %vm1053_vm15 = vcmp.gt.f32.partialorder %v1045_v11, 0.5  ;;  %v7149_v20 = vstv %s1190_s11  ;;  %v7159_v11 = vmul.f32 -2.0, %v1216_v52  ;;  %s1504_s11 = scalar_lea.vmem [#allocation24], %s8702_s12 }
 0x259   : > { %v1977_v19 = vunpack.c.l.b16 %v1925_v12  ;;  %v1972_v30 = vunpack.c.l.b16 %v1917_v25  ;;  %v1240_v12 = vld [vmem:[#allocation4] sm:$0xff]  ;;  %vm1080_vm13 = vcmp.eq.s32.totalorder %v1076_v8, %v1078_v0  ;;  %v7147_v0 = vstv %s1153_s24  ;;  %s1436_s24 = scalar_lea.vmem [#allocation21], %s4928_s5 }
 0x25a   : > { %v1208_v25 = vld [vmem:[%s6729_s27] sm:$0xff]  ;;  %v2223_v57 = vunpack.c.l.b16 %v1932_v6 }
 0x25b   : > { %v7005_v27 = vpack.c.b16 %v1977_v19, %v1976_v18  ;;  %5026 = vmatmul.msk.bf16.vlgmr.msrb.gmra.mxu0 %vm1948_vm10, %v7003_v13  ;;  %v7015_v36 = vpack.c.b16 %v1972_v30, %v1971_v35  ;;  %v1093_v18 = vld [vmem:[%s6722_s8] sm:$0xff]  ;;  %v7073_v19 = vunpack.c.l.b16 %v1931_v7  ;;  %v7086_v30 = vstv %s968_s6  ;;  %v1096_v35 = vld [vmem:[%s6722_s8 + $0x18] sm:$0xff]  ;;  %s5391_s6 = sshll.u32 %s8702_s12, 8 }
 0x25c   : > { %vm1101_vm0 = vcmp.lt.f32.partialorder %v1093_v18, 0.5  ;;  %vm1266_vm2 = vcmp.gt.f32.partialorder %v7086_v30, 0.5  ;;  %vm1104_vm3 = vcmp.lt.f32.partialorder %v1096_v35, 0.5 }
 0x25d   : > { %v7010_v23 = vpop.f32.mrf.mxu2  ;;  %v1983_v24 = vsel %vm1948_vm10, %v7005_v27, 0  ;;  %v1267_v31 = vsel %vm1266_vm2, %v1232_v29, 0.0  ;;  %v7178_v61 = vpack.c.b16 %v7073_v19, %v7069_v34 }
 0x25e   : > { %v1846_v26 = vpop.f32.mrf.mxu0  ;;  %v1875_v28 = vpop.f32.mrf.mxu1  ;;  %1992 = vmatpush.bf16.xpose.msra.mxu3 %v1983_v24  ;;  %v8616_v24 = vmov 0.0   ;;  %v1933_v7 = vpack.c.bf16 %v7010_v23, %v7010_v23 }
 0x25f   : > { %v1926_v37 = vpack.c.bf16 %v1875_v28, %v1875_v28  ;;  %v1918_v47 = vpack.c.bf16 %v1846_v26, %v1846_v26  ;;  %v7082_v26 = vsel %vm1079_vm11, 1.0, %v8616_v24  ;;  %v4905_v28 = vsel %vm1050_vm12, 1.0, %v8616_v24 }
 0x260   : > { %v7140_v44 = vsel %vm1104_vm3, 1.0, %v8616_v24  ;;  %v2224_v14 = vunpack.c.l.b16 %v1933_v7 }
 0x261   : > { %v2006_v42 = vunpack.c.l.b16 %v1926_v37  ;;  %v2001_v55 = vunpack.c.l.b16 %v1918_v47  ;;  %v7090_v37 = vstv %s7065_s13  ;;  %s8084_s13 = scalar_lea.vmem [#allocation19], %s5391_s6 }
 0x262   : > { %v7118_v47 = vmul.f32 %v4905_v28, %v7090_v37 }
 0x265   : > { %v1904_v38 = vpop.f32.mrf.mxu2  ;;  %5027 = vmatmul.msk.bf16.vlgmr.msra.gmra.mxu3 %vm1948_vm10, %v7015_v36 }
 0x266   : > { %v1877_v39 = vpop.f32.mrf.mxu1  ;;  %v1848_v41 = vpop.f32.mrf.mxu0  ;;  %v1934_v46 = vpack.c.bf16 %v1904_v38, %v1904_v38  ;;  %v1248_v38 = vmul.f32 -2.0, %v1240_v12 }
 0x267   : > { %v1927_v40 = vpack.c.bf16 %v1877_v39, %v1877_v39  ;;  %v1919_v32 = vpack.c.bf16 %v1848_v41, %v1848_v41  ;;  %v7100_v39 = vsel %vm1080_vm13, 1.0, %v8616_v24  ;;  %v1257_v41 = vmul.f32 %v7076_v21, %v1208_v25 }
 0x268   : > { %v2251_v53 = vunpack.c.l.b16 %v1934_v46  ;;  %vm1105_vm13 = vcmp.lt.f32.partialorder %v1097_v50, 0.5 }
 0x269   : > { %v2007_v9 = vunpack.c.l.b16 %v1927_v40  ;;  %v2002_v33 = vunpack.c.l.b16 %v1919_v32  ;;  %v4906_v40 = vsel %vm1051_vm14, 1.0, %v8616_v24  ;;  %v1275_v12 = vadd.f32 %v1267_v31, %v1257_v41  ;;  %v1241_v41 = vld [vmem:[#allocation4 + $0x8] sm:$0xff] }
 0x26b   : > { %v7019_v43 = vpack.c.b16 %v2007_v9, %v2006_v42  ;;  %v7025_v59 = vpack.c.b16 %v2002_v33, %v2001_v55  ;;  %v7107_v42 = vmax.f32 %v4905_v28, %v7082_v26  ;;  %v7112_v9 = vstv %s974_s23 }
 0x26c   : > { %v1086_v33 = vmax.f32 %v4906_v40, %v7100_v39  ;;  %v7133_v55 = vstv %s7060_s17  ;;  %vm1284_vm4 = vcmp.gt.f32.partialorder %v7112_v9, 0.5  ;;  %v1233_v28 = vsub.f32 0.0, %v1217_v1  ;;  %s1344_s17 = scalar_lea.vmem [#allocation18], %s8702_s12 }
 0x26d   : > { %v1906_v48 = vpop.f32.mrf.mxu2  ;;  %v2013_v49 = vsel %vm1948_vm10, %v7019_v43, 0  ;;  %v1176_v25 = vmul.f32 %v7140_v44, %v7133_v55  ;;  %v1285_v4 = vsel %vm1284_vm4, %v1248_v38, 0.0  ;;  %v1155_v23 = vmul.f32 %v7147_v0, %v7107_v42 }
 0x26e   : > { %v1935_v17 = vpack.c.bf16 %v1906_v48, %v1906_v48  ;;  %2022 = vmatpush.bf16.xpose.msrb.mxu3 %v2013_v49  ;;  %v4908_v48 = vsel %vm1053_vm15, 1.0, %v8616_v24  ;;  %v7122_v49 = vsel %vm1101_vm0, 1.0, %v8616_v24  ;;  %v1193_v29 = vmul.f32 %v7149_v20, %v1086_v33 }
 0x26f   : > { %v7143_v62 = vmul.f32 %v4908_v48, %v7090_v37  ;;  %v7156_v8 = vmax.f32 %v4908_v48, %v7100_v39  ;;  %v1268_v34 = vsel %vm1266_vm2, %v1233_v28, 0.0 }
 0x270   : > { %v2252_v54 = vunpack.c.l.b16 %v1935_v17  ;;  %v7125_v17 = vstv %s7050_s10  ;;  %s1342_s10 = scalar_lea.vmem %s8772_s16, %s8702_s12 }
 0x271   : > { %v1127_v63 = vmul.f32 %v7122_v49, %v7125_v17  ;;  %v1184_v31 = vadd.f32 %v1176_v25, %v7143_v62  ;;  %v1249_v25 = vmul.f32 -2.0, %v1241_v41 }
 0x272   : > { %v7023_v58 = vpack.c.b16 %v2252_v54, %v2251_v53  ;;  %v7129_v53 = vmul.f32 %v4906_v40, %v7090_v37  ;;  %v4916_v54 = vsel %vm1102_vm1, 1.0, %v8616_v24  ;;  %v1195_v24 = vmul.f32 %v7149_v20, %v7156_v8 }
 0x273   : > { %v1174_v10 = vmul.f32 %v4916_v54, %v7133_v55  ;;  %v1144_v40 = vadd.f32 %v7118_v47, %v1127_v63  ;;  %v1258_v63 = vmul.f32 %v7076_v21, %v1209_v22  ;;  %v1128_v22 = vmul.f32 %v4916_v54, %v7125_v17 }
 0x274   : > { %2265 = vmatpush.bf16.msra.mxu0 %v7023_v58  ;;  %v7196_v16 = vadd.f32 %v1195_v24, %v1184_v31  ;;  %v7213_v54 = vmul.f32 -2.0, %v1217_v1 }
 0x275   : > { %5028 = vmatmul.msk.bf16.vlgmr.msrb.gmra.mxu3 %vm1948_vm10, %v7025_v59  ;;  %v1182_v48 = vadd.f32 %v1174_v10, %v7129_v53  ;;  %v1304_v10 = vsel %vm7161_vm5, %v7159_v11, 0.0  ;;  %v7192_v6 = vadd.f32 %v1155_v23, %v1144_v40  ;;  %v1276_v7 = vadd.f32 %v1268_v34, %v1258_v63  ;;  %v1210_v40 = vld [vmem:[%s6729_s27 + $0x10] sm:$0xff] }
 0x276   : > { %8714 = vst [vmem:[#allocation49_spill] sm:$0xff] %v7196_v16  ;;  %v1286_v23 = vsel %vm1284_vm4, %v1249_v25, 0.0 }
 0x277   : > { %v7190_v19 = vadd.f32 %v1193_v29, %v1182_v48  ;;  %v1095_v29 = vld [vmem:[%s6722_s8 + $0x10] sm:$0xff]  ;;  %vm2075_vm7 = vcmp.gt.f32.partialorder %v7192_v6, 0.5  ;;  %8715 = vst [vmem:[#allocation50_spill] sm:$0xff] %v7213_v54 }
 0x278   : > { %v1242_v48 = vld [vmem:[#allocation4 + $0x10] sm:$0xff]  ;;  %vm1103_vm9 = vcmp.lt.f32.partialorder %v1095_v29, 0.5  ;;  %v1305_v29 = vsel %vm7161_vm5, %v7213_v54, 0.0 }
 0x279   : > { %8713 = vst [vmem:[#allocation48_spill] sm:$0xff] %v7190_v19  ;;  %v1250_v1 = vmul.f32 -2.0, %v1242_v48 }
 0x2c8   : > { %v7115_v32 = vpop.f32.mrf.mxu0  ;;  %v1880_v46 = vpop.f32.mrf.mxu1 }
 0x2c9   : > { %v1928_v52 = vpack.c.bf16 %v1880_v46, %v1880_v46  ;;  %v7182_v46 = vadd.f32 %v1285_v4, %v1275_v12  ;;  %v1218_v12 = vld [vmem:[#allocation3 + $0x10] sm:$0xff]  ;;  %v1044_v4 = vadd.f32 %v7048_v2, %v1003_v15  ;;  %v1920_v2 = vpack.c.bf16 %v7115_v32, %v7115_v32 }
 0x2ca   : > { %v1234_v15 = vsub.f32 0.0, %v1218_v12  ;;  %v7217_v32 = vadd.f32 %v1286_v23, %v1276_v7 }
 0x2cb   : > { %v2036_v5 = vunpack.c.l.b16 %v1928_v52  ;;  %v7201_v28 = vadd.f32 %v1304_v10, %v7182_v46  ;;  %vm1052_vm8 = vcmp.gt.f32.partialorder %v1044_v4, 0.5  ;;  %v1259_v10 = vmul.f32 %v7076_v21, %v1210_v40 }
 0x2cc   : > { %8716 = vst [vmem:[#allocation51_spill] sm:$0xff] %v7217_v32 }
 0x2cf   : > { %v1909_v35 = vpop.f32.mrf.mxu2 }
 0x2d0   : > { %v1853_v38 = vpop.f32.mrf.mxu0  ;;  %v1882_v45 = vpop.f32.mrf.mxu1  ;;  %v1936_v52 = vpack.c.bf16 %v1909_v35, %v1909_v35 }
 0x2d1   : > { %v1929_v56 = vpack.c.bf16 %v1882_v45, %v1882_v45  ;;  %v1921_v41 = vpack.c.bf16 %v1853_v38, %v1853_v38 }
 0x2d2   : > { %v2279_v25 = vunpack.c.l.b16 %v1936_v52 }
 0x2d3   : > { %v2037_v45 = vunpack.c.l.b16 %v1929_v56  ;;  %v1156_v56 = vmul.f32 %v7147_v0, %v1086_v33  ;;  %v1145_v33 = vadd.f32 %v7129_v53, %v1128_v22  ;;  %v2032_v38 = vunpack.c.l.b16 %v1921_v41 }
 0x2d4   : > { %v7227_v41 = vpack.c.b16 %v2224_v14, %v2223_v57 }
 0x2d5   : > { %v7198_v3 = vpack.c.b16 %v2037_v45, %v2036_v5  ;;  %v1269_v45 = vsel %vm1266_vm2, %v1234_v15, 0.0  ;;  %v7240_v40 = vadd.f32 %v1156_v56, %v1145_v33  ;;  %v7256_v56 = vadd.f32 %v1305_v29, %v7217_v32 }
 0x2d6   : > { %v1277_v15 = vadd.f32 %v1269_v45, %v1259_v10  ;;  %v1287_v33 = vsel %vm1284_vm4, %v1250_v1, 0.0 }
 0x2d7   : > { %v1911_v24 = vpop.f32.mrf.mxu2  ;;  %v2043_v5 = vsel %vm1948_vm10, %v7198_v3, 0  ;;  %vm2076_vm11 = vcmp.gt.f32.partialorder %v7240_v40, 0.5 }
 0x2d8   : > { %v1937_v35 = vpack.c.bf16 %v1911_v24, %v1911_v24  ;;  %v1964_v31 = vpop.f32.mrf.mxu0  ;;  %2052 = vmatpush.bf16.xpose.msra.mxu3 %v2043_v5  ;;  %v2031_v24 = vunpack.c.l.b16 %v1920_v2  ;;  %v8717_v5 = vmov 0.0   ;;  %v1219_v2 = vld [vmem:[#allocation3 + $0x18] sm:$0xff] }
 0x2d9   : > { %v2059_v63 = vmul.f32 0.17677669, %v1964_v31  ;;  %v4907_v53 = vsel %vm1052_vm8, 1.0, %v8717_v5  ;;  %v7225_v22 = vsel %vm1103_vm9, 1.0, %v8717_v5  ;;  %v7258_v31 = vmul.f32 -2.0, %v1218_v12 }
 0x2da   : > { %v2280_v34 = vunpack.c.l.b16 %v1937_v35  ;;  %8718 = vst [vmem:[#allocation52_spill] sm:$0xff] %v7225_v22  ;;  %v7234_v52 = vpack.c.b16 %v2032_v38, %v2031_v24  ;;  %v7246_v57 = vmax.f32 %v4907_v53, %v7082_v26  ;;  %v7249_v48 = vmul.f32 %v4907_v53, %v7090_v37  ;;  %v5757_v38 = vld [vmem:[%s6764_s7 + $0x2] ss:$0 sm:$0xff]  ;;  %v1243_v24 = vld [vmem:[#allocation4 + $0x18] sm:$0xff] }
 0x2db   : > { %v2067_v4 = vadd.f32 %v2059_v63, %v7201_v28  ;;  %v1129_v35 = vmul.f32 %v7225_v22, %v7125_v17  ;;  %8721 = vst [vmem:[#allocation55_spill] sm:$0xff] %v7258_v31  ;;  %v1013_v63 = vpop.permute.xlu0 %1012  ;;  %v1306_v29 = vsel %vm7161_vm5, %v7258_v31, 0.0  ;;  %v1251_v51 = vmul.f32 -2.0, %v1243_v24  ;;  %v1212_v24 = vld [vmem:[%s6729_s27 + $0x20] sm:$0xff] }
 0x2dc   : > { %v7229_v7 = vpack.c.b16 %v2280_v34, %v2279_v25  ;;  %8719 = vst [vmem:[#allocation53_spill] sm:$0xff] %v7246_v57  ;;  %v1211_v25 = vld [vmem:[%s6729_s27 + $0x18] sm:$0xff]  ;;  %v1235_v34 = vsub.f32 0.0, %v1219_v2  ;;  %v1157_v53 = vmul.f32 %v7147_v0, %v7246_v57  ;;  %v1244_v31 = vld [vmem:[#allocation4 + $0x20] sm:$0xff]  ;;  %v1261_v50 = vmul.f32 %v7076_v21, %v1212_v24 }
 0x2dd   : > { %v7238_v23 = vsel %vm2075_vm7, -3.4028235e+38, %v2067_v4  ;;  %8720 = vst [vmem:[#allocation54_spill] sm:$0xff] %v7249_v48  ;;  %v7266_v4 = vadd.f32 %v1287_v33, %v1277_v15  ;;  %v1146_v12 = vadd.f32 %v7249_v48, %v1129_v35  ;;  %v1220_v33 = vld [vmem:[#allocation3 + $0x20] sm:$0xff] }
 0x2de   : > { %2293 = vmatpush.bf16.msrb.mxu1 %v7229_v7  ;;  %v2092_v14 = vsel %vm2091_vm6, %v7238_v23, -inf  ;;  %v1270_v15 = vsel %vm1266_vm2, %v1235_v34, 0.0  ;;  %v1236_v57 = vsub.f32 0.0, %v1220_v33 }
 0x2df   : > { %2093 = vmax.xlane.f32.xlu1 %v2092_v14  ;;  %5029 = vmatmul.msk.bf16.vlgmr.msra.gmra.mxu3 %vm1948_vm10, %v7234_v52  ;;  %8722 = vst [vmem:[#allocation56_spill] sm:$0xff] %v7266_v4  ;;  %v1046_v14 = vadd.f32 %v5757_v38, %v1013_v63  ;;  %v7288_v63 = vadd.f32 %v1306_v29, %v7266_v4 }
 0x2e0   : > { %2209 = vmatpush.bf16.msrb.mxu3 %v7178_v61  ;;  %v1966_v10 = vpop.f32.mrf.mxu0  ;;  %v1173_v4 = vmul.f32 %v7122_v49, %v7133_v55 }
 0x2e1   : > { %v2060_v45 = vmul.f32 0.17677669, %v1966_v10  ;;  %v1260_v10 = vmul.f32 %v7076_v21, %v1211_v25  ;;  %v7290_v25 = vadd.f32 %v1157_v53, %v1146_v12  ;;  %vm1054_vm12 = vcmp.gt.f32.partialorder %v1046_v14, 0.5 }
 0x2e2   : > { %v1158_v12 = vmul.f32 %v7147_v0, %v7156_v8  ;;  %v4909_v53 = vsel %vm1054_vm12, 1.0, %v8717_v5 }
 0x2e3   : > { %v2068_v1 = vadd.f32 %v2060_v45, %v7256_v56  ;;  %v1130_v45 = vmul.f32 %v7140_v44, %v7125_v17  ;;  %v1278_v34 = vadd.f32 %v1270_v15, %v1260_v10  ;;  %v1288_v44 = vsel %vm1284_vm4, %v1251_v51, 0.0 }
 0x2e4   : > { %2237 = vmatpush.bf16.msra.mxu3 %v7227_v41  ;;  %vm2077_vm14 = vcmp.gt.f32.partialorder %v7290_v25, 0.5  ;;  %v7319_v15 = vmax.f32 %v4909_v53, %v7082_v26 }
 0x2e5   : > { %v7281_v35 = vsel %vm2076_vm11, -3.4028235e+38, %v2068_v1  ;;  %v7293_v1 = vmul.f32 -2.0, %v1219_v2  ;;  %v1147_v19 = vadd.f32 %v7143_v62, %v1130_v45  ;;  %v7304_v2 = vsel %vm1105_vm13, 1.0, %v8717_v5  ;;  %v1221_v45 = vld [vmem:[#allocation3 + $0x28] sm:$0xff] }
 0x2e6   : > { %v2095_v16 = vsel %vm2091_vm6, %v7281_v35, -inf  ;;  %8724 = vst [vmem:[#allocation58_spill] sm:$0xff] %v7304_v2  ;;  %v7307_v29 = vadd.f32 %v1288_v44, %v1278_v34  ;;  %v1271_v62 = vsel %vm1266_vm2, %v1236_v57, 0.0  ;;  %v1098_v57 = vld [vmem:[%s6722_s8 + $0x28] sm:$0xff] }
 0x2e7   : > { %2096 = vmax.xlane.f32.xlu2 %v2095_v16  ;;  %8723 = vst [vmem:[#allocation57_spill] sm:$0xff] %v7293_v1  ;;  %v1018_v16 = vpop.permute.xlu0 %1017  ;;  %v1307_v8 = vsel %vm7161_vm5, %v7293_v1, 0.0  ;;  %v1279_v24 = vadd.f32 %v1271_v62, %v1261_v50  ;;  %vm1106_vm0 = vcmp.lt.f32.partialorder %v1098_v57, 0.5  ;;  %v1237_v1 = vsub.f32 0.0, %v1221_v45  ;;  %v1245_v62 = vld [vmem:[#allocation4 + $0x28] sm:$0xff] }
 0x2e8   : > { %v1994_v48 = vpop.f32.mrf.mxu3  ;;  %8725 = vst [vmem:[#allocation59_spill] sm:$0xff] %v7307_v29  ;;  %v1047_v14 = vadd.f32 %v5757_v38, %v1018_v16  ;;  %v7329_v38 = vadd.f32 %v1158_v12, %v1147_v19  ;;  %v7332_v44 = vadd.f32 %v1307_v8, %v7307_v29  ;;  %v7334_v16 = vmul.f32 -2.0, %v1220_v33 }
 0x2e9   : > { %v2061_v22 = vmul.f32 0.17677669, %v1994_v48  ;;  %v1252_v48 = vmul.f32 -2.0, %v1244_v31  ;;  %8726 = vst [vmem:[#allocation60_spill] sm:$0xff] %v7319_v15  ;;  %v1131_v31 = vmul.f32 %v7304_v2, %v7125_v17  ;;  %v1213_v2 = vld [vmem:[%s6729_s27 + $0x28] sm:$0xff]  ;;  %v1159_v50 = vmul.f32 %v7147_v0, %v7319_v15 }
 0x2ea   : > { %8728 = vst [vmem:[#allocation62_spill] sm:$0xff] %v7334_v16  ;;  %vm1055_vm15 = vcmp.gt.f32.partialorder %v1047_v14, 0.5  ;;  %vm2078_vm1 = vcmp.gt.f32.partialorder %v7329_v38, 0.5  ;;  %v1192_v8 = vmul.f32 %v7149_v20, %v7107_v42  ;;  %v7353_v57 = vsel %vm1106_vm0, 1.0, %v8717_v5 }
 0x2eb   : > { %v2069_v51 = vadd.f32 %v2061_v22, %v7288_v63  ;;  %v7322_v22 = vmul.f32 %v4909_v53, %v7090_v37  ;;  %v1289_v53 = vsel %vm1284_vm4, %v1252_v48, 0.0  ;;  %v1181_v48 = vadd.f32 %v1173_v4, %v7118_v47  ;;  %8730 = vst [vmem:[#allocation64_spill] sm:$0xff] %v7353_v57 }
 0x2ec   : > { %v7345_v33 = vadd.f32 %v1289_v53, %v1279_v24  ;;  %v4910_v49 = vsel %vm1055_vm15, 1.0, %v8717_v5  ;;  %v1253_v24 = vmul.f32 -2.0, %v1245_v62  ;;  %v1272_v47 = vsel %vm1266_vm2, %v1237_v1, 0.0 }
 0x2ed   : > { %v7316_v10 = vsel %vm2077_vm14, -3.4028235e+38, %v2069_v51  ;;  %8727 = vst [vmem:[#allocation61_spill] sm:$0xff] %v7322_v22  ;;  %v1148_v12 = vadd.f32 %v7322_v22, %v1131_v31  ;;  %v1262_v31 = vmul.f32 %v7076_v21, %v1213_v2  ;;  %v7361_v4 = vadd.f32 %v1192_v8, %v1181_v48 }
 0x2ee   : > { %v2098_v34 = vsel %vm2091_vm6, %v7316_v10, -inf  ;;  %8729 = vst [vmem:[#allocation63_spill] sm:$0xff] %v7345_v33  ;;  %v7372_v2 = vmax.f32 %v4910_v49, %v7100_v39  ;;  %v1132_v1 = vmul.f32 %v7353_v57, %v7125_v17  ;;  %v1290_v8 = vsel %vm1284_vm4, %v1253_v24, 0.0 }
 0x2ef   : > { %2099 = vmax.xlane.f32.xlu0 %v2098_v34  ;;  %v1308_v34 = vsel %vm7161_vm5, %v7334_v16, 0.0  ;;  %v7367_v53 = vadd.f32 %v1159_v50, %v1148_v12  ;;  %v1280_v48 = vadd.f32 %v1272_v47, %v1262_v31  ;;  %v7382_v50 = vmul.f32 -2.0, %v1221_v45  ;;  %v984_v31 = vld [vmem:[%s6772_s14 + $0x30] sm:$0xff] }
 0x2f0   : > { %v1996_v51 = vpop.f32.mrf.mxu3  ;;  %8731 = vst [vmem:[#allocation65_spill] sm:$0xff] %v7372_v2  ;;  %v7380_v62 = vadd.f32 %v1308_v34, %v7345_v33  ;;  %v1160_v15 = vmul.f32 %v7147_v0, %v7372_v2  ;;  %v1099_v2 = vld [vmem:[%s6722_s8 + $0x30] sm:$0xff]  ;;  %v5758_v33 = vld [vmem:[%s6764_s7 + $0x3] ss:$0 sm:$0xff]  ;;  %s6434_s7 = smov 96  }
 0x2f1   : > { %v2062_v19 = vmul.f32 0.17677669, %v1996_v51  ;;  %8733 = vst [vmem:[#allocation67_spill] sm:$0xff] %v7382_v50  ;;  %vm2079_vm3 = vcmp.gt.f32.partialorder %v7367_v53, 0.5  ;;  %v7391_v57 = vadd.f32 %v1290_v8, %v1280_v48  ;;  %v1309_v45 = vsel %vm7161_vm5, %v7382_v50, 0.0 }
 0x2f2   : > { %vm1107_vm9 = vcmp.lt.f32.partialorder %v1099_v2, 0.5 }
 0x2f3   : > { %v2070_v14 = vadd.f32 %v2062_v19, %v7332_v44  ;;  %v7375_v19 = vmul.f32 %v4910_v49, %v7090_v37  ;;  %8734 = vst [vmem:[#allocation68_spill] sm:$0xff] %v7391_v57 }
 0x2f5   : > { %v7365_v42 = vsel %vm2078_vm1, -3.4028235e+38, %v2070_v14  ;;  %8732 = vst [vmem:[#allocation66_spill] sm:$0xff] %v7375_v19  ;;  %v1149_v49 = vadd.f32 %v7375_v19, %v1132_v1  ;;  %v7406_v1 = vadd.f32 %v1309_v45, %v7391_v57 }
 0x2f6   : > { %v2101_v51 = vsel %vm2091_vm6, %v7365_v42, -inf }
 0x2f7   : > { %2102 = vmax.xlane.f32.xlu1 %v2101_v51  ;;  %v7403_v47 = vadd.f32 %v1160_v15, %v1149_v49  ;;  %v985_v49 = vld [vmem:[%s6772_s14 + $0x38] sm:$0xff] }
 0x2f8   : > { %v2024_v12 = vpop.f32.mrf.mxu3 }
 0x2f9   : > { %v2063_v14 = vmul.f32 0.17677669, %v2024_v12  ;;  %vm2080_vm8 = vcmp.gt.f32.partialorder %v7403_v47, 0.5 }
 0x2fb   : > { %v2071_v51 = vadd.f32 %v2063_v14, %v7380_v62 }
 0x2fd   : > { %v7399_v34 = vsel %vm2079_vm3, -3.4028235e+38, %v2071_v51  ;;  %v1222_v51 = vld [vmem:[#allocation3 + $0x30] sm:$0xff] }
 0x2fe   : > { %v2104_v24 = vsel %vm2091_vm6, %v7399_v34, -inf  ;;  %v1238_v45 = vsub.f32 0.0, %v1222_v51 }
 0x2ff   : > { %1022 = vperm.xlu2 %5691, %v984_v31   ;;  %2105 = vmax.xlane.f32.xlu0 %v2104_v24  ;;  %v1214_v31 = vld [vmem:[%s6729_s27 + $0x30] sm:$0xff] }
 0x300   : > { %v2026_v48 = vpop.f32.mrf.mxu3  ;;  %v1273_v50 = vsel %vm1266_vm2, %v1238_v45, 0.0 }
 0x301   : > { %v2064_v12 = vmul.f32 0.17677669, %v2026_v48  ;;  %v1246_v48 = vld [vmem:[#allocation4 + $0x30] sm:$0xff] }
 0x303   : > { %v2072_v8 = vadd.f32 %v2064_v12, %v7406_v1  ;;  %v1263_v12 = vmul.f32 %v7076_v21, %v1214_v31 }
 0x305   : > { %v7412_v14 = vsel %vm2080_vm8, -3.4028235e+38, %v2072_v8  ;;  %v1254_v8 = vmul.f32 -2.0, %v1246_v48 }
 0x306   : > { %v2107_v15 = vsel %vm2091_vm6, %v7412_v14, -inf }
 0x307   : > { %2108 = vmax.xlane.f32.xlu0 %v2107_v15  ;;  %v1281_v15 = vadd.f32 %v1273_v50, %v1263_v12  ;;  %v1291_v22 = vsel %vm1284_vm4, %v1254_v8, 0.0 }
 0x309   : > { %v7429_v31 = vadd.f32 %v1291_v22, %v1281_v15 }
 0x30b   : > { %8736 = vst [vmem:[#allocation70_spill] sm:$0xff] %v7429_v31 }
 0x310   : > { %1027 = vperm.xlu1 %5690, %v985_v49   ;;  %v7424_v49 = vmul.f32 -2.0, %v1222_v51 }
 0x312   : > { %8735 = vst [vmem:[#allocation69_spill] sm:$0xff] %v7424_v49 }
 0x35a   : > { %v2097_v24 = vpop.xlane.xlu2 %2096 }
 0x35b   : > { %v2117_v57 = vsub.f32 %v7281_v35, %v2097_v24  ;;  %v4921_v35 = vsel %vm1107_vm9, 1.0, %v8717_v5 }
 0x35c   : > { %v1133_v50 = vmul.f32 %v4921_v35, %v7125_v17  ;;  %v1179_v48 = vmul.f32 %v4921_v35, %v7133_v55 }
 0x35d   : > { %v2126_v19 = vmul.f32 1.442695, %v2117_v57 }
 0x35f   : > { %5780 = vpow2.f32 %v2126_v19  ;;  %v1310_v19 = vsel %vm7161_vm5, %v7424_v49, 0.0 }
 0x360   : > { %v7444_v12 = vadd.f32 %v1310_v19, %v7429_v31 }
 0x362   : > { %v1023_v16 = vpop.permute.xlu2 %1022  ;;  %v2054_v2 = vpop.f32.mrf.mxu3 }
 0x363   : > { %v1048_v24 = vadd.f32 %v5758_v33, %v1023_v16  ;;  %v2065_v8 = vmul.f32 0.17677669, %v2054_v2 }
 0x365   : > { %v7431_v57 = vpop.eup %5780  ;;  %vm1056_vm12 = vcmp.gt.f32.partialorder %v1048_v24, 0.5  ;;  %v2073_v35 = vadd.f32 %v2065_v8, %v7444_v12 }
 0x366   : > { %v4911_v51 = vsel %vm1056_vm12, 1.0, %v8717_v5  ;;  %v2143_v45 = vsel %vm2091_vm6, %v7431_v57, 0.0  ;;  %vm3369_vm12 = vcmask 785408  }
 0x367   : > { %v1091_v22 = vmax.f32 %v4911_v51, %v7082_v26  ;;  %v1142_v16 = vmul.f32 %v4911_v51, %v7090_v37  ;;  %2144 = vadd.xlane.f32.xlu1 %v2143_v45  ;;  %v1223_v51 = vld [vmem:[#allocation3 + $0x38] sm:$0xff] }
 0x368   : > { %v1215_v45 = vld [vmem:[%s6729_s27 + $0x38] sm:$0xff]  ;;  %s5382_s27 = sshll.u32 %s8702_s12, 6 }
 0x369   : > { %v1150_v15 = vadd.f32 %v1142_v16, %v1133_v50  ;;  %v1161_v24 = vmul.f32 %v7147_v0, %v1091_v22  ;;  %v1187_v49 = vadd.f32 %v1179_v48, %v1142_v16  ;;  %v1198_v29 = vmul.f32 %v7149_v20, %v1091_v22  ;;  %v2094_v50 = vpop.xlane.xlu1 %2093  ;;  %v1247_v16 = vld [vmem:[#allocation4 + $0x38] sm:$0xff]  ;;  %s1383_s25 = scalar_lea.vmem [#allocation16], %s5382_s27 }
 0x36a   : > { %v1239_v48 = vsub.f32 0.0, %v1223_v51  ;;  %v2056_v30 = vpop.f32.mrf.mxu3 }
 0x36b   : > { %v7448_v32 = vadd.f32 %v1161_v24, %v1150_v15  ;;  %v7451_v26 = vadd.f32 %v1198_v29, %v1187_v49  ;;  %v1100_v15 = vld [vmem:[%s6722_s8 + $0x38] sm:$0xff]  ;;  %v1264_v29 = vmul.f32 %v7076_v21, %v1215_v45  ;;  %v1255_v49 = vmul.f32 -2.0, %v1247_v16  ;;  %s6435_s8 = smov 64  }
 0x36c   : > { %v1274_v8 = vsel %vm1266_vm2, %v1239_v48, 0.0  ;;  %vm1108_vm15 = vcmp.lt.f32.partialorder %v1100_v15, 0.5  ;;  %v2116_v48 = vsub.f32 %v7238_v23, %v2094_v50  ;;  %v2066_v15 = vmul.f32 0.17677669, %v2056_v30 }
 0x36d   : > { %8737 = vst [vmem:[#allocation71_spill] sm:$0xff] %v7451_v26  ;;  %vm2081_vm13 = vcmp.gt.f32.partialorder %v7448_v32, 0.5  ;;  %v1282_v24 = vadd.f32 %v1274_v8, %v1264_v29  ;;  %v4922_v31 = vsel %vm1108_vm15, 1.0, %v8717_v5 }
 0x36e   : > { %v7456_v19 = vsel %vm2081_vm13, -3.4028235e+38, %v2073_v35  ;;  %v7467_v35 = vmul.f32 -2.0, %v1223_v51  ;;  %v1134_v45 = vmul.f32 %v4922_v31, %v7125_v17  ;;  %v1180_v9 = vmul.f32 %v4922_v31, %v7133_v55 }
 0x36f   : > { %v2110_v2 = vsel %vm2091_vm6, %v7456_v19, -inf  ;;  %v2124_v8 = vmul.f32 1.442695, %v2116_v48 }
 0x370   : > { %2111 = vmax.xlane.f32.xlu0 %v2110_v2  ;;  %v1292_v2 = vsel %vm1284_vm4, %v1255_v49, 0.0  ;;  %v1311_v51 = vsel %vm7161_vm5, %v7467_v35, 0.0 }
 0x371   : > { %v2103_v22 = vpop.xlane.xlu1 %2102  ;;  %v7474_v21 = vadd.f32 %v1292_v2, %v1282_v24  ;;  %5782 = vpow2.f32 %v2124_v8 }
 0x372   : > { %v2119_v48 = vsub.f32 %v7365_v42, %v2103_v22 }
 0x373   : > { %v7486_v29 = vadd.f32 %v1311_v51, %v7474_v21 }
 0x380   : > { %2302 = vrot.lane.b32.xlu1 %v6992_v60, %s6434_s7 }
 0x382   : > { %v1028_v26 = vpop.permute.xlu1 %1027 }
 0x383   : > { %v1049_v54 = vadd.f32 %v5758_v33, %v1028_v26 }
 0x384   : > { %2300 = vrot.lane.b32.xlu0 %v7003_v13, %s6434_s7 }
 0x385   : > { %vm1057_vm2 = vcmp.gt.f32.partialorder %v1049_v54, 0.5 }
 0x386   : > { %v4912_v16 = vsel %vm1057_vm2, 1.0, %v8717_v5  ;;  %v2074_v5 = vadd.f32 %v2066_v15, %v7486_v29 }
 0x387   : > { %v1092_v33 = vmax.f32 %v4912_v16, %v7100_v39  ;;  %v1143_v26 = vmul.f32 %v4912_v16, %v7090_v37  ;;  %v2100_v39 = vpop.xlane.xlu0 %2099 }
 0x389   : > { %v1151_v54 = vadd.f32 %v1143_v26, %v1134_v45  ;;  %v1162_v17 = vmul.f32 %v7147_v0, %v1092_v33  ;;  %v1188_v49 = vadd.f32 %v1180_v9, %v1143_v26  ;;  %v1199_v18 = vmul.f32 %v7149_v20, %v1092_v33  ;;  %v7499_v0 = vpop.eup %5782 }
 0x38a   : > { %v2140_v2 = vsel %vm2091_vm6, %v7499_v0, 0.0  ;;  %v2118_v45 = vsub.f32 %v7316_v10, %v2100_v39  ;;  %v2130_v33 = vmul.f32 1.442695, %v2119_v48 }
 0x38b   : > { %v7490_v31 = vadd.f32 %v1162_v17, %v1151_v54  ;;  %v7492_v23 = vadd.f32 %v1199_v18, %v1188_v49 }
 0x38c   : > { %v2128_v9 = vmul.f32 1.442695, %v2118_v45 }
 0x38d   : > { %vm2082_vm4 = vcmp.gt.f32.partialorder %v7490_v31, 0.5  ;;  %vm2735_vm9 = vcmp.gt.f32.partialorder %v7492_v23, 0.5 }
 0x38e   : > { %v2090_v37 = vsel %vm2082_vm4, -3.4028235e+38, %v2074_v5 }
 0x38f   : > { %v2113_v50 = vsel %vm2091_vm6, %v2090_v37, -inf  ;;  %v2106_v24 = vpop.xlane.xlu0 %2105 }
 0x390   : > { %2114 = vmax.xlane.f32.xlu2 %v2113_v50  ;;  %v2120_v30 = vsub.f32 %v7399_v34, %v2106_v24 }
 0x392   : > { %v2132_v51 = vmul.f32 1.442695, %v2120_v30 }
 0x394   : > { %5784 = vpow2.f32 %v2132_v51 }
 0x395   : > { %5786 = vpow2.f32 %v2128_v9 }
 0x396   : > { %5788 = vpow2.f32 %v2130_v33 }
 0x397   : > { %v2109_v22 = vpop.xlane.xlu0 %2108 }
 0x398   : > { %2141 = vadd.xlane.f32.xlu2 %v2140_v2  ;;  %v2121_v54 = vsub.f32 %v7412_v14, %v2109_v22 }
 0x39a   : > { %v7506_v16 = vpop.eup %5784  ;;  %v2134_v17 = vmul.f32 1.442695, %v2121_v54 }
 0x39b   : > { %v2152_v26 = vsel %vm2091_vm6, %v7506_v16, 0.0  ;;  %v7510_v15 = vpop.eup %5786 }
 0x39c   : > { %v2146_v34 = vsel %vm2091_vm6, %v7510_v15, 0.0  ;;  %v5789_v10 = vpop.eup %5788  ;;  %5790 = vpow2.f32 %v2134_v17 }
 0x39d   : > { %v2149_v42 = vsel %vm2091_vm6, %v5789_v10, 0.0 }
 0x3a2   : > { %v7520_v49 = vpop.eup %5790 }
 0x3a3   : > { %v2155_v18 = vsel %vm2091_vm6, %v7520_v49, 0.0 }
 0x3aa   : > { %2153 = vadd.xlane.f32.xlu1 %v2152_v26 }
 0x3ae   : > { %2147 = vadd.xlane.f32.xlu0 %v2146_v34 }
 0x3b0   : > { %2326 = vrot.lane.b32.xlu2 %v7005_v27, %s6434_s7 }
 0x3b6   : > { %2150 = vadd.xlane.f32.xlu0 %v2149_v42 }
 0x3ca   : > { %2324 = vrot.lane.b32.xlu0 %v7015_v36, %s6434_s7 }
 0x3d9   : > { %2156 = vadd.xlane.f32.xlu2 %v2155_v18 }
 0x3da   : > { %v2145_v50 = vpop.xlane.xlu1 %2144 }
 0x3e3   : > { %v2112_v8 = vpop.xlane.xlu0 %2111 }
 0x3e4   : > { %v2122_v5 = vsub.f32 %v7456_v19, %v2112_v8 }
 0x3e6   : > { %v2136_v39 = vmul.f32 1.442695, %v2122_v5 }
 0x3e8   : > { %5792 = vpow2.f32 %v2136_v39 }
 0x3e9   : > { %5794 = vrcp.f32 %v2145_v50 }
 0x3ee   : > { %v7525_v24 = vpop.eup %5792 }
 0x3ef   : > { %v2158_v30 = vsel %vm2091_vm6, %v7525_v24, 0.0  ;;  %v5795_v33 = vpop.eup %5794 }
 0x3f0   : > { %v2173_v34 = vmul.f32 %v5795_v33, %v7431_v57 }
 0x3f1   : > { %2350 = vrot.lane.b32.xlu2 %v7019_v43, %s6434_s7 }
 0x3f2   : > { %v2303_v14 = vpop.permute.xlu1 %2302  ;;  %v2181_v22 = vpack.c.bf16 %v2173_v34, %v2173_v34 }
 0x3f3   : > { %v2308_v2 = vsel %vm1948_vm10, %v2303_v14, 0 }
 0x3f4   : > { %2317 = vmatpush.bf16.xpose.msrb.mxu2 %v2308_v2  ;;  %2159 = vadd.xlane.f32.xlu0 %v2158_v30  ;;  %v2191_v18 = vunpack.c.l.b16 %v2181_v22 }
 0x3f6   : > { %v2301_v19 = vpop.permute.xlu0 %2300 }
 0x3f9   : > { %2372 = vrot.lane.b32.xlu2 %v7234_v52, %s6434_s7 }
 0x3fb   : > { %5034 = vmatmul.msk.bf16.vlgmr.msrb.gmra.mxu2 %vm1948_vm10, %v2301_v19 }
 0x401   : > { %2521 = vrot.lane.b32.xlu2 %v7178_v61, %s6434_s7 }
 0x403   : > { %v2115_v45 = vpop.xlane.xlu2 %2114 }
 0x404   : > { %v2123_v51 = vsub.f32 %v2090_v37, %v2115_v45 }
 0x406   : > { %v2138_v9 = vmul.f32 1.442695, %v2123_v51 }
 0x408   : > { %5796 = vpow2.f32 %v2138_v9  ;;  %2348 = vrot.lane.b32.xlu0 %v7025_v59, %s6434_s7 }
 0x409   : > { %2616 = vrot.lane.b32.xlu2 %v7003_v13, %s6435_s8 }
 0x40b   : > { %v2142_v48 = vpop.xlane.xlu2 %2141 }
 0x40c   : > { %5798 = vrcp.f32 %v2142_v48 }
 0x40e   : > { %v7541_v26 = vpop.eup %5796 }
 0x40f   : > { %v2161_v37 = vsel %vm2091_vm6, %v7541_v26, 0.0 }
 0x410   : > { %2162 = vadd.xlane.f32.xlu1 %v2161_v37 }
 0x412   : > { %v5799_v42 = vpop.eup %5798 }
 0x413   : > { %v2172_v54 = vmul.f32 %v5799_v42, %v7499_v0  ;;  %v2327_v5 = vpop.permute.xlu2 %2326 }
 0x414   : > { %v2332_v50 = vsel %vm1948_vm10, %v2327_v5, 0 }
 0x415   : > { %v2180_v17 = vpack.c.bf16 %v2172_v54, %v2172_v54 }
 0x417   : > { %v2190_v8 = vunpack.c.l.b16 %v2180_v17 }
 0x419   : > { %v2192_v39 = vpack.c.b16 %v2191_v18, %v2190_v8 }
 0x41b   : > { %5030 = vmatmul.msk.bf16.vlgmr.msrb.gmra.mxu3 %vm2091_vm6, %v2192_v39 }
 0x41c   : > { %2341 = vmatpush.bf16.xpose.msrb.mxu3 %v2332_v50 }
 0x41d   : > { %v2154_v34 = vpop.xlane.xlu1 %2153 }
 0x421   : > { %v2148_v14 = vpop.xlane.xlu0 %2147 }
 0x422   : > { %5800 = vrcp.f32 %v2148_v14 }
 0x428   : > { %v5801_v2 = vpop.eup %5800 }
 0x429   : > { %2374 = vrot.lane.b32.xlu1 %v7198_v3, %s6434_s7  ;;  %v2151_v57 = vpop.xlane.xlu0 %2150  ;;  %v2174_v0 = vmul.f32 %v5801_v2, %v7510_v15 }
 0x42a   : > { %5802 = vrcp.f32 %v2151_v57 }
 0x42b   : > { %v2182_v19 = vpack.c.bf16 %v2174_v0, %v2174_v0  ;;  %5804 = vrcp.f32 %v2154_v34 }
 0x42d   : > { %v2218_v9 = vunpack.c.l.b16 %v2182_v19 }
 0x430   : > { %v5803_v30 = vpop.eup %5802 }
 0x431   : > { %v2175_v45 = vmul.f32 %v5803_v30, %v5789_v10  ;;  %v5805_v22 = vpop.eup %5804 }
 0x432   : > { %v2176_v54 = vmul.f32 %v5805_v22, %v7506_v16 }
 0x433   : > { %v2183_v51 = vpack.c.bf16 %v2175_v45, %v2175_v45 }
 0x434   : > { %v2184_v17 = vpack.c.bf16 %v2176_v54, %v2176_v54 }
 0x435   : > { %v2219_v48 = vunpack.c.l.b16 %v2183_v51 }
 0x436   : > { %v2246_v39 = vunpack.c.l.b16 %v2184_v17 }
 0x437   : > { %v2220_v33 = vpack.c.b16 %v2219_v48, %v2218_v9 }
 0x439   : > { %5031 = vmatmul.msk.bf16.vlgmr.msra.gmra.mxu3 %vm2091_vm6, %v2220_v33 }
 0x43c   : > { %v2325_v37 = vpop.permute.xlu0 %2324 }
 0x449   : > { %5035 = vmatmul.msk.bf16.vlgmr.msrb.gmra.mxu3 %vm1948_vm10, %v2325_v37 }
 0x44c   : > { %v2157_v42 = vpop.xlane.xlu2 %2156 }
 0x44d   : > { %5806 = vrcp.f32 %v2157_v42 }
 0x453   : > { %v5807_v15 = vpop.eup %5806 }
 0x454   : > { %v2177_v10 = vmul.f32 %v5807_v15, %v7520_v49  ;;  %v2351_v18 = vpop.permute.xlu2 %2350 }
 0x455   : > { %v2356_v8 = vsel %vm1948_vm10, %v2351_v18, 0 }
 0x456   : > { %v2185_v5 = vpack.c.bf16 %v2177_v10, %v2177_v10  ;;  %2365 = vmatpush.bf16.xpose.msrb.mxu0 %v2356_v8 }
 0x458   : > { %v2247_v50 = vunpack.c.l.b16 %v2185_v5 }
 0x45a   : > { %v2248_v14 = vpack.c.b16 %v2247_v50, %v2246_v39 }
 0x45c   : > { %5032 = vmatmul.msk.bf16.vlgmr.msra.gmra.mxu0 %vm2091_vm6, %v2248_v14  ;;  %v2373_v57 = vpop.permute.xlu2 %2372 }
 0x464   : > { %v2522_v2 = vpop.permute.xlu2 %2521 }
 0x465   : > { %2534 = vmatpush.bf16.msra.mxu2 %v2522_v2 }
 0x467   : > { %v2160_v0 = vpop.xlane.xlu0 %2159 }
 0x468   : > { %5808 = vrcp.f32 %v2160_v0 }
 0x46e   : > { %v5809_v9 = vpop.eup %5808 }
 0x46f   : > { %v2178_v34 = vmul.f32 %v5809_v9, %v7525_v24 }
 0x471   : > { %v2186_v54 = vpack.c.bf16 %v2178_v34, %v2178_v34 }
 0x473   : > { %v2274_v10 = vunpack.c.l.b16 %v2186_v54 }
 0x47a   : > { %v2349_v30 = vpop.permute.xlu0 %2348 }
 0x47b   : > { %5036 = vmatmul.msk.bf16.vlgmr.msrb.gmra.mxu0 %vm1948_vm10, %v2349_v30 }
 0x47e   : > { %v2319_v16 = vpop.f32.mrf.mxu2 }
 0x47f   : > { %v2396_v49 = vmul.f32 0.17677669, %v2319_v16 }
 0x481   : > { %v2404_v19 = vadd.f32 %v2396_v49, %v7201_v28 }
 0x483   : > { %v2163_v45 = vpop.xlane.xlu1 %2162  ;;  %v2412_v51 = vsel %vm2075_vm7, -3.4028235e+38, %v2404_v19  ;;  %vm2728_vm7 = vcmp.gt.f32.partialorder %v7361_v4, 0.5 }
 0x484   : > { %5810 = vrcp.f32 %v2163_v45  ;;  %v2420_v48 = vsel %vm2091_vm6, %v2412_v51, -inf }
 0x485   : > { %2421 = vmax.xlane.f32.xlu0 %v2420_v48 }
 0x486   : > { %v2321_v33 = vpop.f32.mrf.mxu2 }
 0x487   : > { %v2397_v37 = vmul.f32 0.17677669, %v2321_v33 }
 0x489   : > { %v2405_v42 = vadd.f32 %v2397_v37, %v7256_v56 }
 0x48a   : > { %v5811_v22 = vpop.eup %5810 }
 0x48b   : > { %v2179_v15 = vmul.f32 %v5811_v22, %v7541_v26  ;;  %v2413_v28 = vsel %vm2076_vm11, -3.4028235e+38, %v2405_v42 }
 0x48c   : > { %v2423_v6 = vsel %vm2091_vm6, %v2413_v28, -inf }
 0x48d   : > { %v2187_v17 = vpack.c.bf16 %v2179_v15, %v2179_v15  ;;  %2424 = vmax.xlane.f32.xlu1 %v2423_v6 }
 0x48f   : > { %v2275_v18 = vunpack.c.l.b16 %v2187_v17 }
 0x491   : > { %v2276_v8 = vpack.c.b16 %v2275_v18, %v2274_v10 }
 0x493   : > { %5033 = vmatmul.msk.bf16.vlgmr.msrb.gmra.mxu1 %vm2091_vm6, %v2276_v8 }
 0x499   : > { %2618 = vrot.lane.b32.xlu0 %v6992_v60, %s6435_s8 }
 0x49b   : > { %v2375_v56 = vpop.permute.xlu1 %2374 }
 0x49c   : > { %v2380_v24 = vsel %vm1948_vm10, %v2375_v56, 0 }
 0x49d   : > { %2389 = vmatpush.bf16.xpose.msra.mxu1 %v2380_v24 }
 0x49e   : > { %v7576_v40 = vpop.f32.mrf.mxu3 }
 0x4a4   : > { %5037 = vmatmul.msk.bf16.vlgmr.msra.gmra.mxu1 %vm1948_vm10, %v2373_v57 }
 0x4a6   : > { %2546 = vrot.lane.b32.xlu1 %v7227_v41, %s6434_s7  ;;  %v7578_v26 = vpop.f32.mrf.mxu3 }
 0x4bc   : > { %v7580_v5 = vpop.f32.mrf.mxu3 }
 0x4c4   : > { %v7582_v39 = vpop.f32.mrf.mxu3 }
 0x4cc   : > { %v2343_v50 = vpop.f32.mrf.mxu3 }
 0x4cd   : > { %v2398_v14 = vmul.f32 0.17677669, %v2343_v50 }
 0x4cf   : > { %v2406_v2 = vadd.f32 %v2398_v14, %v7288_v63 }
 0x4d1   : > { %v2414_v0 = vsel %vm2077_vm14, -3.4028235e+38, %v2406_v2 }
 0x4d2   : > { %v2426_v57 = vsel %vm2091_vm6, %v2414_v0, -inf }
 0x4d3   : > { %2427 = vmax.xlane.f32.xlu2 %v2426_v57 }
 0x4d4   : > { %v2345_v48 = vpop.f32.mrf.mxu3 }
 0x4d5   : > { %v2399_v33 = vmul.f32 0.17677669, %v2345_v48 }
 0x4d7   : > { %v2407_v54 = vadd.f32 %v2399_v33, %v7332_v44 }
 0x4d9   : > { %v7588_v30 = vpop.f32.mrf.mxu0  ;;  %v2415_v6 = vsel %vm2078_vm1, -3.4028235e+38, %v2407_v54 }
 0x4da   : > { %8738 = vst [vmem:[#allocation72_spill] sm:$0xff] %v7588_v30  ;;  %v2429_v8 = vsel %vm2091_vm6, %v2415_v6, -inf }
 0x4e1   : > { %v7592_v16 = vpop.f32.mrf.mxu0 }
 0x4eb   : > { %2642 = vrot.lane.b32.xlu2 %v7005_v27, %s6435_s8 }
 0x4f8   : > { %v2422_v49 = vpop.xlane.xlu0 %2421  ;;  %v2367_v45 = vpop.f32.mrf.mxu0 }
 0x4f9   : > { %v2444_v19 = vsub.f32 %v2412_v51, %v2422_v49  ;;  %v2400_v51 = vmul.f32 0.17677669, %v2367_v45 }
 0x4fb   : > { %v2452_v9 = vmul.f32 1.442695, %v2444_v19  ;;  %v2408_v24 = vadd.f32 %v2400_v51, %v7380_v62 }
 0x4fd   : > { %5812 = vpow2.f32 %v2452_v9  ;;  %v2416_v50 = vsel %vm2079_vm3, -3.4028235e+38, %v2408_v24  ;;  %v2617_v9 = vpop.permute.xlu2 %2616 }
 0x4fe   : > { %v2432_v2 = vsel %vm2091_vm6, %v2416_v50, -inf }
 0x500   : > { %v2425_v63 = vpop.xlane.xlu1 %2424  ;;  %v2369_v22 = vpop.f32.mrf.mxu0 }
 0x501   : > { %v2445_v25 = vsub.f32 %v2413_v28, %v2425_v63  ;;  %v2401_v15 = vmul.f32 0.17677669, %v2369_v22 }
 0x503   : > { %v7594_v34 = vpop.eup %5812  ;;  %v2454_v37 = vmul.f32 1.442695, %v2445_v25  ;;  %v2409_v56 = vadd.f32 %v2401_v15, %v7406_v1 }
 0x504   : > { %v2468_v42 = vsel %vm2091_vm6, %v7594_v34, 0.0 }
 0x505   : > { %5814 = vpow2.f32 %v2454_v37  ;;  %2469 = vadd.xlane.f32.xlu0 %v2468_v42  ;;  %v2417_v38 = vsel %vm2080_vm8, -3.4028235e+38, %v2409_v56 }
 0x506   : > { %v2435_v14 = vsel %vm2091_vm6, %v2417_v38, -inf }
 0x50b   : > { %v5815_v17 = vpop.eup %5814  ;;  %v2619_v10 = vpop.permute.xlu0 %2618 }
 0x50c   : > { %v2624_v28 = vsel %vm1948_vm10, %v2619_v10, 0  ;;  %v2471_v18 = vsel %vm2091_vm6, %v5815_v17, 0.0 }
 0x50d   : > { %2472 = vadd.xlane.f32.xlu1 %v2471_v18  ;;  %2430 = vmax.xlane.f32.xlu0 %v2429_v8 }
 0x50e   : > { %2633 = vmatpush.bf16.xpose.msrb.mxu2 %v2624_v28 }
 0x510   : > { %v7606_v44 = vpop.f32.mrf.mxu1 }
 0x511   : > { %8739 = vst [vmem:[#allocation73_spill] sm:$0xff] %v7606_v44 }
 0x514   : > { %2436 = vmax.xlane.f32.xlu2 %v2435_v14 }
 0x515   : > { %2433 = vmax.xlane.f32.xlu1 %v2432_v2 }
 0x518   : > { %v2547_v1 = vpop.permute.xlu1 %2546  ;;  %v7614_v57 = vpop.f32.mrf.mxu1 }
 0x519   : > { %8740 = vst [vmem:[#allocation74_spill] sm:$0xff] %v7614_v57  ;;  %2559 = vmatpush.bf16.msra.mxu3 %v2547_v1 }
 0x521   : > { %v2391_v62 = vpop.f32.mrf.mxu1  ;;  %2640 = vrot.lane.b32.xlu0 %v7015_v36, %s6435_s8 }
 0x522   : > { %v2402_v48 = vmul.f32 0.17677669, %v2391_v62 }
 0x524   : > { %v2410_v63 = vadd.f32 %v2402_v48, %v7444_v12 }
 0x526   : > { %v2418_v37 = vsel %vm2081_vm13, -3.4028235e+38, %v2410_v63 }
 0x527   : > { %v2438_v22 = vsel %vm2091_vm6, %v2418_v37, -inf }
 0x529   : > { %v2393_v49 = vpop.f32.mrf.mxu1 }
 0x52a   : > { %v2403_v47 = vmul.f32 0.17677669, %v2393_v49 }
 0x52c   : > { %2596 = vrot.lane.b32.xlu2 %v7229_v7, %s6434_s7  ;;  %v2411_v53 = vadd.f32 %v2403_v47, %v7486_v29 }
 0x52e   : > { %v2419_v19 = vsel %vm2082_vm4, -3.4028235e+38, %v2411_v53 }
 0x52f   : > { %v2441_v45 = vsel %vm2091_vm6, %v2419_v19, -inf }
 0x530   : > { %2442 = vmax.xlane.f32.xlu1 %v2441_v45 }
 0x546   : > { %v2428_v33 = vpop.xlane.xlu2 %2427 }
 0x547   : > { %v2446_v25 = vsub.f32 %v2414_v0, %v2428_v33 }
 0x549   : > { %v2456_v42 = vmul.f32 1.442695, %v2446_v25 }
 0x54b   : > { %5816 = vpow2.f32 %v2456_v42  ;;  %2439 = vmax.xlane.f32.xlu0 %v2438_v22 }
 0x54e   : > { %v2643_v29 = vpop.permute.xlu2 %2642 }
 0x54f   : > { %v2648_v31 = vsel %vm1948_vm10, %v2643_v29, 0 }
 0x550   : > { %2657 = vmatpush.bf16.xpose.msrb.mxu3 %v2648_v31 }
 0x551   : > { %v7629_v54 = vpop.eup %5816 }
 0x552   : > { %v2474_v15 = vsel %vm2091_vm6, %v7629_v54, 0.0 }
 0x553   : > { %2475 = vadd.xlane.f32.xlu0 %v2474_v15 }
 0x567   : > { %2666 = vrot.lane.b32.xlu0 %v7019_v43, %s6435_s8 }
 0x578   : > { %v2470_v32 = vpop.xlane.xlu0 %2469 }
 0x579   : > { %5818 = vrcp.f32 %v2470_v32 }
 0x57f   : > { %v5819_v51 = vpop.eup %5818 }
 0x580   : > { %v2473_v12 = vpop.xlane.xlu1 %2472  ;;  %v2431_v0 = vpop.xlane.xlu0 %2430  ;;  %v2500_v18 = vmul.f32 %v5819_v51, %v7594_v34 }
 0x581   : > { %5820 = vrcp.f32 %v2473_v12  ;;  %v2447_v10 = vsub.f32 %v2415_v6, %v2431_v0 }
 0x582   : > { %v2508_v24 = vpack.c.bf16 %v2500_v18, %v2500_v18 }
 0x583   : > { %v2458_v28 = vmul.f32 1.442695, %v2447_v10 }
 0x584   : > { %v2518_v48 = vunpack.c.l.b16 %v2508_v24 }
 0x585   : > { %5822 = vpow2.f32 %v2458_v28 }
 0x587   : > { %v5821_v8 = vpop.eup %5820  ;;  %v2437_v56 = vpop.xlane.xlu2 %2436 }
 0x588   : > { %v2501_v14 = vmul.f32 %v5821_v8, %v5815_v17  ;;  %v2449_v2 = vsub.f32 %v2417_v38, %v2437_v56  ;;  %v2434_v1 = vpop.xlane.xlu1 %2433 }
 0x589   : > { %v2448_v62 = vsub.f32 %v2416_v50, %v2434_v1 }
 0x58a   : > { %v2509_v49 = vpack.c.bf16 %v2501_v14, %v2501_v14  ;;  %v2462_v47 = vmul.f32 1.442695, %v2449_v2 }
 0x58b   : > { %v5823_v53 = vpop.eup %5822  ;;  %v2460_v45 = vmul.f32 1.442695, %v2448_v62 }
 0x58c   : > { %v2519_v63 = vunpack.c.l.b16 %v2509_v49  ;;  %5824 = vpow2.f32 %v2462_v47  ;;  %v2477_v6 = vsel %vm2091_vm6, %v5823_v53, 0.0 }
 0x58d   : > { %5826 = vpow2.f32 %v2460_v45  ;;  %2478 = vadd.xlane.f32.xlu1 %v2477_v6 }
 0x58e   : > { %v2520_v34 = vpack.c.b16 %v2519_v63, %v2518_v48 }
 0x58f   : > { %v2597_v33 = vpop.permute.xlu2 %2596 }
 0x590   : > { %5038 = vmatmul.msk.bf16.vlgmr.msra.gmra.mxu2 %vm2091_vm6, %v2520_v34  ;;  %2609 = vmatpush.bf16.msrb.mxu1 %v2597_v33 }
 0x592   : > { %v5825_v17 = vpop.eup %5824 }
 0x593   : > { %v5827_v38 = vpop.eup %5826  ;;  %v2483_v50 = vsel %vm2091_vm6, %v5825_v17, 0.0  ;;  %v2641_v32 = vpop.permute.xlu0 %2640 }
 0x594   : > { %2484 = vadd.xlane.f32.xlu0 %v2483_v50  ;;  %v2480_v25 = vsel %vm2091_vm6, %v5827_v38, 0.0 }
 0x595   : > { %2481 = vadd.xlane.f32.xlu2 %v2480_v25 }
 0x5a0   : > { %5042 = vmatmul.msk.bf16.vlgmr.msrb.gmra.mxu2 %vm1948_vm10, %v2617_v9 }
 0x5a3   : > { %v2443_v42 = vpop.xlane.xlu1 %2442 }
 0x5a4   : > { %v2451_v22 = vsub.f32 %v2419_v19, %v2443_v42 }
 0x5a6   : > { %v2466_v29 = vmul.f32 1.442695, %v2451_v22  ;;  %2571 = vrot.lane.b32.xlu1 %v7023_v58, %s6434_s7 }
 0x5a8   : > { %5828 = vpow2.f32 %v2466_v29  ;;  %2690 = vrot.lane.b32.xlu0 %v7198_v3, %s6435_s8  ;;  %v7666_v29 = vstv %s965_s3  ;;  %s6436_s3 = smov 32  }
 0x5a9   : > { %vm1321_vm5 = vcmp.gt.f32.partialorder %v7666_v29, 0.5 }
 0x5ae   : > { %v7645_v31 = vpop.eup %5828 }
 0x5af   : > { %v2489_v15 = vsel %vm2091_vm6, %v7645_v31, 0.0 }
 0x5b0   : > { %2490 = vadd.xlane.f32.xlu2 %v2489_v15 }
 0x5be   : > { %v2440_v12 = vpop.xlane.xlu0 %2439 }
 0x5bf   : > { %v2450_v0 = vsub.f32 %v2418_v37, %v2440_v12 }
 0x5c1   : > { %v2464_v9 = vmul.f32 1.442695, %v2450_v0  ;;  %v1322_v0 = vsel %vm1321_vm5, %v7159_v11, 0.0 }
 0x5c3   : > { %5830 = vpow2.f32 %v2464_v9  ;;  %v7678_v9 = vadd.f32 %v1322_v0, %v7182_v46  ;;  %v8745_v0 = vld [vmem:[#allocation55_spill] sm:$0xff] }
 0x5c6   : > { %v2476_v10 = vpop.xlane.xlu0 %2475 }
 0x5c7   : > { %5832 = vrcp.f32 %v2476_v10 }
 0x5c8   : > { %2688 = vrot.lane.b32.xlu2 %v7234_v52, %s6435_s8 }
 0x5c9   : > { %v7651_v19 = vpop.eup %5830 }
 0x5ca   : > { %v2486_v51 = vsel %vm2091_vm6, %v7651_v19, 0.0 }
 0x5cd   : > { %v5833_v18 = vpop.eup %5832 }
 0x5ce   : > { %v2502_v8 = vmul.f32 %v5833_v18, %v7629_v54 }
 0x5d0   : > { %2487 = vadd.xlane.f32.xlu1 %v2486_v51  ;;  %v2510_v14 = vpack.c.bf16 %v2502_v8, %v2502_v8 }
 0x5d2   : > { %v2543_v49 = vunpack.c.l.b16 %v2510_v14 }
 0x5d9   : > { %v2667_v37 = vpop.permute.xlu0 %2666 }
 0x5da   : > { %v2672_v22 = vsel %vm1948_vm10, %v2667_v37, 0 }
 0x5e9   : > { %2664 = vrot.lane.b32.xlu1 %v7025_v59, %s6435_s8 }
 0x5f1   : > { %2870 = vrot.lane.b32.xlu1 %v7227_v41, %s6435_s8 }
 0x600   : > { %v2479_v28 = vpop.xlane.xlu1 %2478 }
 0x601   : > { %5834 = vrcp.f32 %v2479_v28  ;;  %v8741_v28 = vld [vmem:[#allocation50_spill] sm:$0xff] }
 0x602   : > { %v1323_v18 = vsel %vm1321_vm5, %v8741_v28, 0.0  ;;  %v8746_v28 = vld [vmem:[#allocation54_spill] sm:$0xff] }
 0x607   : > { %v5835_v56 = vpop.eup %5834  ;;  %v2485_v24 = vpop.xlane.xlu0 %2484 }
 0x608   : > { %v2503_v2 = vmul.f32 %v5835_v56, %v5823_v53  ;;  %5836 = vrcp.f32 %v2485_v24  ;;  %v2482_v1 = vpop.xlane.xlu2 %2481 }
 0x609   : > { %5838 = vrcp.f32 %v2482_v1 }
 0x60a   : > { %v2511_v62 = vpack.c.bf16 %v2503_v2, %v2503_v2  ;;  %v8743_v2 = vld [vmem:[#allocation48_spill] sm:$0xff] }
 0x60b   : > { %vm2729_vm11 = vcmp.gt.f32.partialorder %v8743_v2, 0.5 }
 0x60c   : > { %v2544_v47 = vunpack.c.l.b16 %v2511_v62 }
 0x60e   : > { %v5837_v45 = vpop.eup %5836  ;;  %v2545_v48 = vpack.c.b16 %v2544_v47, %v2543_v49 }
 0x60f   : > { %v5839_v63 = vpop.eup %5838  ;;  %v2505_v6 = vmul.f32 %v5837_v45, %v5825_v17 }
 0x610   : > { %v2504_v34 = vmul.f32 %v5839_v63, %v5827_v38  ;;  %5039 = vmatmul.msk.bf16.vlgmr.msra.gmra.mxu3 %vm2091_vm6, %v2545_v48 }
 0x611   : > { %v2513_v33 = vpack.c.bf16 %v2505_v6, %v2505_v6 }
 0x612   : > { %v2512_v54 = vpack.c.bf16 %v2504_v34, %v2504_v34 }
 0x613   : > { %v7661_v50 = vpop.f32.mrf.mxu2  ;;  %v2569_v25 = vunpack.c.l.b16 %v2513_v33 }
 0x614   : > { %v2568_v53 = vunpack.c.l.b16 %v2512_v54 }
 0x616   : > { %v2570_v15 = vpack.c.b16 %v2569_v25, %v2568_v53 }
 0x618   : > { %v2572_v42 = vpop.permute.xlu1 %2571 }
 0x619   : > { %2584 = vmatpush.bf16.msra.mxu0 %v2572_v42 }
 0x61a   : > { %v2691_v12 = vpop.permute.xlu0 %2690 }
 0x61b   : > { %v2696_v17 = vsel %vm1948_vm10, %v2691_v12, 0  ;;  %v7669_v38 = vpop.f32.mrf.mxu2 }
 0x61c   : > { %5040 = vmatmul.msk.bf16.vlgmr.msra.gmra.mxu0 %vm2091_vm6, %v2570_v15  ;;  %2705 = vmatpush.bf16.xpose.msra.mxu1 %v2696_v17 }
 0x61d   : > { %2681 = vmatpush.bf16.xpose.msrb.mxu0 %v2672_v22 }
 0x620   : > { %5043 = vmatmul.msk.bf16.vlgmr.msrb.gmra.mxu3 %vm1948_vm10, %v2641_v32  ;;  %v8742_v32 = vld [vmem:[#allocation51_spill] sm:$0xff] }
 0x621   : > { %v7689_v56 = vadd.f32 %v1323_v18, %v8742_v32 }
 0x623   : > { %v2635_v51 = vpop.f32.mrf.mxu2  ;;  %v2491_v49 = vpop.xlane.xlu2 %2490 }
 0x624   : > { %v2712_v10 = vmul.f32 0.17677669, %v2635_v51  ;;  %5840 = vrcp.f32 %v2491_v49  ;;  %v1324_v51 = vsel %vm1321_vm5, %v8745_v0, 0.0 }
 0x626   : > { %v2720_v37 = vadd.f32 %v2712_v10, %v7678_v9 }
 0x628   : > { %v2736_v8 = vsel %vm2728_vm7, -3.4028235e+38, %v2720_v37 }
 0x629   : > { %v2744_v11 = vsel %vm2091_vm6, %v2736_v8, -inf }
 0x62a   : > { %2745 = vmax.xlane.f32.xlu0 %v2744_v11  ;;  %v5841_v45 = vpop.eup %5840  ;;  %v8747_v11 = vld [vmem:[#allocation53_spill] sm:$0xff] }
 0x62b   : > { %v2637_v46 = vpop.f32.mrf.mxu2  ;;  %v2507_v48 = vmul.f32 %v5841_v45, %v7645_v31  ;;  %v2689_v31 = vpop.permute.xlu2 %2688  ;;  %v1194_v32 = vmul.f32 %v7149_v20, %v8747_v11  ;;  %v8753_v11 = vld [vmem:[#allocation62_spill] sm:$0xff] }
 0x62c   : > { %v2713_v24 = vmul.f32 0.17677669, %v2637_v46  ;;  %v8748_v46 = vld [vmem:[#allocation56_spill] sm:$0xff] }
 0x62d   : > { %v2515_v6 = vpack.c.bf16 %v2507_v48, %v2507_v48 }
 0x62e   : > { %v2721_v14 = vadd.f32 %v2713_v24, %v7689_v56  ;;  %v7724_v24 = vadd.f32 %v1324_v51, %v8748_v46  ;;  %v8754_v46 = vld [vmem:[#allocation61_spill] sm:$0xff] }
 0x630   : > { %v2737_v1 = vsel %vm2729_vm11, -3.4028235e+38, %v2721_v14  ;;  %v8749_v14 = vld [vmem:[#allocation57_spill] sm:$0xff] }
 0x631   : > { %v2747_v62 = vsel %vm2091_vm6, %v2737_v1, -inf }
 0x632   : > { %2748 = vmax.xlane.f32.xlu2 %v2747_v62  ;;  %v1325_v62 = vsel %vm1321_vm5, %v8749_v14, 0.0  ;;  %v8755_v14 = vld [vmem:[#allocation60_spill] sm:$0xff] }
 0x63e   : > { %2942 = vrot.lane.b32.xlu0 %v6992_v60, %s6436_s3  ;;  %v2594_v60 = vunpack.c.l.b16 %v2515_v6 }
 0x643   : > { %v2488_v47 = vpop.xlane.xlu1 %2487 }
 0x644   : > { %5842 = vrcp.f32 %v2488_v47 }
 0x646   : > { %2966 = vrot.lane.b32.xlu0 %v7005_v27, %s6436_s3 }
 0x64a   : > { %v5843_v63 = vpop.eup %5842  ;;  %2845 = vrot.lane.b32.xlu2 %v7178_v61, %s6435_s8 }
 0x64b   : > { %v2506_v34 = vmul.f32 %v5843_v63, %v7651_v19 }
 0x64d   : > { %v2514_v33 = vpack.c.bf16 %v2506_v34, %v2506_v34 }
 0x64e   : > { %2964 = vrot.lane.b32.xlu0 %v7015_v36, %s6436_s3 }
 0x64f   : > { %v2593_v54 = vunpack.c.l.b16 %v2514_v33 }
 0x651   : > { %v2595_v25 = vpack.c.b16 %v2594_v60, %v2593_v54 }
 0x652   : > { %2940 = vrot.lane.b32.xlu2 %v7003_v13, %s6436_s3  ;;  %v8744_v13 = vld [vmem:[#allocation52_spill] sm:$0xff] }
 0x653   : > { %5041 = vmatmul.msk.bf16.vlgmr.msrb.gmra.mxu1 %vm2091_vm6, %v2595_v25  ;;  %v1175_v12 = vmul.f32 %v8744_v13, %v7133_v55  ;;  %v8751_v25 = vld [vmem:[#allocation49_spill] sm:$0xff] }
 0x654   : > { %vm2731_vm0 = vcmp.gt.f32.partialorder %v8751_v25, 0.5 }
 0x655   : > { %v1183_v18 = vadd.f32 %v1175_v12, %v8746_v28  ;;  %v8752_v28 = vld [vmem:[#allocation58_spill] sm:$0xff] }
 0x657   : > { %v7736_v63 = vadd.f32 %v1194_v32, %v1183_v18  ;;  %v1177_v18 = vmul.f32 %v8752_v28, %v7133_v55  ;;  %v1326_v32 = vsel %vm1321_vm5, %v8753_v11, 0.0  ;;  %v8761_v11 = vld [vmem:[#allocation68_spill] sm:$0xff] }
 0x659   : > { %vm2730_vm14 = vcmp.gt.f32.partialorder %v7736_v63, 0.5 }
 0x65b   : > { %v2665_v27 = vpop.permute.xlu1 %2664 }
 0x65c   : > { %5044 = vmatmul.msk.bf16.vlgmr.msrb.gmra.mxu0 %vm1948_vm10, %v2665_v27 }
 0x663   : > { %v2871_v53 = vpop.permute.xlu1 %2870  ;;  %5045 = vmatmul.msk.bf16.vlgmr.msra.gmra.mxu1 %vm1948_vm10, %v2689_v31 }
 0x664   : > { %2883 = vmatpush.bf16.msra.mxu3 %v2871_v53 }
 0x693   : > { %v7711_v19 = vpop.f32.mrf.mxu3 }
 0x699   : > { %v7760_v51 = vpop.f32.mrf.mxu0 }
 0x69b   : > { %v7713_v42 = vpop.f32.mrf.mxu3 }
 0x69d   : > { %v2746_v36 = vpop.xlane.xlu0 %2745 }
 0x69e   : > { %v2768_v22 = vsub.f32 %v2736_v8, %v2746_v36 }
 0x6a0   : > { %v2776_v15 = vmul.f32 1.442695, %v2768_v22 }
 0x6a2   : > { %5844 = vpow2.f32 %v2776_v15 }
 0x6a3   : > { %v2659_v17 = vpop.f32.mrf.mxu3 }
 0x6a4   : > { %v2714_v8 = vmul.f32 0.17677669, %v2659_v17 }
 0x6a5   : > { %v2749_v10 = vpop.xlane.xlu2 %2748 }
 0x6a6   : > { %v2769_v37 = vsub.f32 %v2737_v1, %v2749_v10  ;;  %v8750_v1 = vld [vmem:[#allocation59_spill] sm:$0xff]  ;;  %v2722_v6 = vadd.f32 %v2714_v8, %v7724_v24  ;;  %v1185_v8 = vadd.f32 %v1177_v18, %v8754_v46  ;;  %v8762_v46 = vld [vmem:[#allocation69_spill] sm:$0xff] }
 0x6a7   : > { %v7734_v48 = vadd.f32 %v1325_v62, %v8750_v1  ;;  %v1196_v62 = vmul.f32 %v7149_v20, %v8755_v14 }
 0x6a8   : > { %v7729_v49 = vpop.eup %5844  ;;  %v2778_v47 = vmul.f32 1.442695, %v2769_v37  ;;  %v7744_v27 = vsel %vm2730_vm14, -3.4028235e+38, %v2722_v6  ;;  %v7764_v37 = vpop.f32.mrf.mxu0 }
 0x6a9   : > { %v2792_v45 = vsel %vm2091_vm6, %v7729_v49, 0.0  ;;  %v2750_v12 = vsel %vm2091_vm6, %v7744_v27, -inf }
 0x6aa   : > { %5846 = vpow2.f32 %v2778_v47  ;;  %2793 = vadd.xlane.f32.xlu1 %v2792_v45  ;;  %v8756_v45 = vld [vmem:[#allocation63_spill] sm:$0xff] }
 0x6ab   : > { %v2661_v34 = vpop.f32.mrf.mxu3  ;;  %v7777_v1 = vadd.f32 %v1326_v32, %v8756_v45  ;;  %v8763_v45 = vld [vmem:[#allocation70_spill] sm:$0xff] }
 0x6ac   : > { %v2715_v33 = vmul.f32 0.17677669, %v2661_v34  ;;  %v7779_v34 = vadd.f32 %v1196_v62, %v1185_v8  ;;  %v1328_v8 = vsel %vm1321_vm5, %v8762_v46, 0.0 }
 0x6ad   : > { %v2846_v60 = vpop.permute.xlu2 %2845 }
 0x6ae   : > { %2858 = vmatpush.bf16.msra.mxu2 %v2846_v60  ;;  %v2723_v54 = vadd.f32 %v2715_v33, %v7734_v48  ;;  %v8757_v33 = vld [vmem:[#allocation64_spill] sm:$0xff]  ;;  %vm2732_vm1 = vcmp.gt.f32.partialorder %v7779_v34, 0.5 }
 0x6af   : > { %v1178_v60 = vmul.f32 %v8757_v33, %v7133_v55 }
 0x6b0   : > { %v7746_v31 = vpop.eup %5846  ;;  %v2943_v53 = vpop.permute.xlu0 %2942  ;;  %v7750_v36 = vsel %vm2731_vm0, -3.4028235e+38, %v2723_v54 }
 0x6b1   : > { %v2948_v22 = vsel %vm1948_vm10, %v2943_v53, 0  ;;  %v2795_v15 = vsel %vm2091_vm6, %v7746_v31, 0.0  ;;  %v2753_v13 = vsel %vm2091_vm6, %v7750_v36, -inf }
 0x6b2   : > { %2796 = vadd.xlane.f32.xlu2 %v2795_v15  ;;  %2754 = vmax.xlane.f32.xlu0 %v2753_v13  ;;  %v8759_v13 = vld [vmem:[#allocation66_spill] sm:$0xff] }
 0x6b3   : > { %2751 = vmax.xlane.f32.xlu1 %v2750_v12  ;;  %2957 = vmatpush.bf16.xpose.msrb.mxu2 %v2948_v22  ;;  %v8758_v22 = vld [vmem:[#allocation67_spill] sm:$0xff]  ;;  %v1186_v12 = vadd.f32 %v1178_v60, %v8759_v13 }
 0x6b4   : > { %v1327_v15 = vsel %vm1321_vm5, %v8758_v22, 0.0 }
 0x6b5   : > { %v7798_v32 = vadd.f32 %v1327_v15, %v8761_v11  ;;  %v2941_v11 = vpop.permute.xlu2 %2940 }
 0x6b8   : > { %v2967_v17 = vpop.permute.xlu0 %2966 }
 0x6b9   : > { %v2972_v0 = vsel %vm1948_vm10, %v2967_v17, 0  ;;  %v8760_v17 = vld [vmem:[#allocation65_spill] sm:$0xff] }
 0x6ba   : > { %2981 = vmatpush.bf16.xpose.msrb.mxu3 %v2972_v0  ;;  %v1197_v0 = vmul.f32 %v7149_v20, %v8760_v17 }
 0x6bc   : > { %v7803_v62 = vadd.f32 %v1197_v0, %v1186_v12 }
 0x6be   : > { %vm2733_vm3 = vcmp.gt.f32.partialorder %v7803_v62, 0.5 }
 0x6c0   : > { %v7832_v46 = vpop.permute.xlu0 %2964 }
 0x6d0   : > { %v7762_v10 = vpop.f32.mrf.mxu1 }
 0x6d8   : > { %v7774_v47 = vpop.f32.mrf.mxu1 }
 0x6d9   : > { %v2683_v6 = vpop.f32.mrf.mxu0 }
 0x6da   : > { %v2716_v54 = vmul.f32 0.17677669, %v2683_v6  ;;  %v7806_v6 = vadd.f32 %v1328_v8, %v8763_v45 }
 0x6dc   : > { %v2724_v53 = vadd.f32 %v2716_v54, %v7777_v1  ;;  %v1329_v54 = vsel %vm1321_vm5, %v7467_v35, 0.0 }
 0x6dd   : > { %v7817_v15 = vadd.f32 %v1329_v54, %v7474_v21 }
 0x6de   : > { %v7793_v28 = vsel %vm2732_vm1, -3.4028235e+38, %v2724_v53 }
 0x6df   : > { %v2756_v55 = vsel %vm2091_vm6, %v7793_v28, -inf }
 0x6e0   : > { %2757 = vmax.xlane.f32.xlu2 %v2756_v55  ;;  %v2707_v18 = vpop.f32.mrf.mxu1  ;;  %v8764_v55 = vld [vmem:[#allocation71_spill] sm:$0xff] }
 0x6e1   : > { %v2685_v14 = vpop.f32.mrf.mxu0  ;;  %v2718_v33 = vmul.f32 0.17677669, %v2707_v18  ;;  %vm2734_vm8 = vcmp.gt.f32.partialorder %v8764_v55, 0.5 }
 0x6e2   : > { %v2717_v20 = vmul.f32 0.17677669, %v2685_v14 }
 0x6e3   : > { %v2726_v13 = vadd.f32 %v2718_v33, %v7806_v6 }
 0x6e4   : > { %v2725_v60 = vadd.f32 %v2717_v20, %v7798_v32 }
 0x6e5   : > { %v2742_v35 = vsel %vm2734_vm8, -3.4028235e+38, %v2726_v13 }
 0x6e6   : > { %v2741_v53 = vsel %vm2733_vm3, -3.4028235e+38, %v2725_v60  ;;  %v2762_v18 = vsel %vm2091_vm6, %v2742_v35, -inf }
 0x6e7   : > { %v2759_v22 = vsel %vm2091_vm6, %v2741_v53, -inf }
 0x6e8   : > { %2760 = vmax.xlane.f32.xlu0 %v2759_v22  ;;  %v2709_v12 = vpop.f32.mrf.mxu1 }
 0x6e9   : > { %v2719_v17 = vmul.f32 0.17677669, %v2709_v12 }
 0x6eb   : > { %v2727_v0 = vadd.f32 %v2719_v17, %v7817_v15 }
 0x6ed   : > { %v7827_v29 = vsel %vm2735_vm9, -3.4028235e+38, %v2727_v0 }
 0x6ee   : > { %v2765_v21 = vsel %vm2091_vm6, %v7827_v29, -inf }
 0x6ef   : > { %2766 = vmax.xlane.f32.xlu1 %v2765_v21 }
 0x6f0   : > { %2763 = vmax.xlane.f32.xlu0 %v2762_v18 }
 0x71d   : > { %v2794_v8 = vpop.xlane.xlu1 %2793 }
 0x71e   : > { %5848 = vrcp.f32 %v2794_v8 }
 0x724   : > { %v5849_v45 = vpop.eup %5848 }
 0x725   : > { %v2797_v14 = vpop.xlane.xlu2 %2796  ;;  %v2755_v20 = vpop.xlane.xlu0 %2754  ;;  %v2824_v13 = vmul.f32 %v5849_v45, %v7729_v49 }
 0x726   : > { %5850 = vrcp.f32 %v2797_v14  ;;  %v2752_v33 = vpop.xlane.xlu1 %2751  ;;  %v2771_v60 = vsub.f32 %v7750_v36, %v2755_v20 }
 0x727   : > { %v2770_v54 = vsub.f32 %v7744_v27, %v2752_v33  ;;  %v2832_v0 = vpack.c.bf16 %v2824_v13, %v2824_v13 }
 0x728   : > { %v2782_v22 = vmul.f32 1.442695, %v2771_v60 }
 0x729   : > { %v2780_v12 = vmul.f32 1.442695, %v2770_v54  ;;  %v2842_v57 = vunpack.c.l.b16 %v2832_v0 }
 0x72a   : > { %5852 = vpow2.f32 %v2782_v22 }
 0x72b   : > { %5854 = vpow2.f32 %v2780_v12 }
 0x72c   : > { %v5851_v17 = vpop.eup %5850 }
 0x72d   : > { %v2825_v21 = vmul.f32 %v5851_v17, %v7746_v31 }
 0x72f   : > { %v2833_v18 = vpack.c.bf16 %v2825_v21, %v2825_v21 }
 0x730   : > { %v5853_v8 = vpop.eup %5852 }
 0x731   : > { %v5855_v44 = vpop.eup %5854  ;;  %v2843_v14 = vunpack.c.l.b16 %v2833_v18  ;;  %v2801_v30 = vsel %vm2091_vm6, %v5853_v8, 0.0 }
 0x732   : > { %v2798_v36 = vsel %vm2091_vm6, %v5855_v44, 0.0  ;;  %2802 = vadd.xlane.f32.xlu1 %v2801_v30 }
 0x733   : > { %v2844_v27 = vpack.c.b16 %v2843_v14, %v2842_v57  ;;  %2799 = vadd.xlane.f32.xlu0 %v2798_v36 }
 0x735   : > { %5046 = vmatmul.msk.bf16.vlgmr.msra.gmra.mxu2 %vm2091_vm6, %v2844_v27 }
 0x745   : > { %5050 = vmatmul.msk.bf16.vlgmr.msrb.gmra.mxu2 %vm1948_vm10, %v2941_v11 }
 0x747   : > { %2895 = vrot.lane.b32.xlu0 %v7023_v58, %s6435_s8 }
 0x74b   : > { %2990 = vrot.lane.b32.xlu1 %v7019_v43, %s6436_s3 }
 0x753   : > { %v2758_v49 = vpop.xlane.xlu2 %2757 }
 0x754   : > { %v2772_v31 = vsub.f32 %v7793_v28, %v2758_v49 }
 0x756   : > { %v2784_v20 = vmul.f32 1.442695, %v2772_v31 }
 0x758   : > { %5856 = vpow2.f32 %v2784_v20 }
 0x75b   : > { %v2761_v45 = vpop.xlane.xlu0 %2760 }
 0x75c   : > { %v2773_v57 = vsub.f32 %v2741_v53, %v2761_v45 }
 0x75e   : > { %v7847_v33 = vpop.eup %5856  ;;  %v2786_v22 = vmul.f32 1.442695, %v2773_v57 }
 0x75f   : > { %v2804_v30 = vsel %vm2091_vm6, %v7847_v33, 0.0 }
 0x760   : > { %2805 = vadd.xlane.f32.xlu2 %v2804_v30 }
 0x762   : > { %v2767_v53 = vpop.xlane.xlu1 %2766 }
 0x763   : > { %v2764_v11 = vpop.xlane.xlu0 %2763 }
 0x764   : > { %v2774_v60 = vsub.f32 %v2742_v35, %v2764_v11  ;;  %v2775_v35 = vsub.f32 %v7827_v29, %v2767_v53 }
 0x766   : > { %v2788_v54 = vmul.f32 1.442695, %v2774_v60  ;;  %v2790_v17 = vmul.f32 1.442695, %v2775_v35 }
 0x768   : > { %5858 = vpow2.f32 %v2788_v54 }
 0x769   : > { %5860 = vpow2.f32 %v2786_v22 }
 0x76a   : > { %5862 = vpow2.f32 %v2790_v17 }
 0x76e   : > { %v7851_v43 = vpop.eup %5858 }
 0x76f   : > { %v2810_v28 = vsel %vm2091_vm6, %v7851_v43, 0.0  ;;  %v5861_v13 = vpop.eup %5860 }
 0x770   : > { %v2807_v12 = vsel %vm2091_vm6, %v5861_v13, 0.0  ;;  %v7863_v0 = vpop.eup %5862 }
 0x771   : > { %2811 = vadd.xlane.f32.xlu0 %v2810_v28  ;;  %v2813_v21 = vsel %vm2091_vm6, %v7863_v0, 0.0 }
 0x775   : > { %2808 = vadd.xlane.f32.xlu1 %v2807_v12 }
 0x778   : > { %2920 = vrot.lane.b32.xlu2 %v7229_v7, %s6435_s8 }
 0x785   : > { %2988 = vrot.lane.b32.xlu0 %v7025_v59, %s6436_s3 }
 0x78e   : > { %3014 = vrot.lane.b32.xlu1 %v7198_v3, %s6436_s3 }
 0x7a1   : > { %2814 = vadd.xlane.f32.xlu2 %v2813_v21 }
 0x7a5   : > { %v2803_v18 = vpop.xlane.xlu1 %2802 }
 0x7a6   : > { %5864 = vrcp.f32 %v2803_v18  ;;  %v2800_v14 = vpop.xlane.xlu0 %2799 }
 0x7a7   : > { %5866 = vrcp.f32 %v2800_v14 }
 0x7ac   : > { %v5865_v36 = vpop.eup %5864 }
 0x7ad   : > { %v5867_v59 = vpop.eup %5866  ;;  %v2827_v27 = vmul.f32 %v5865_v36, %v5853_v8 }
 0x7ae   : > { %v2826_v49 = vmul.f32 %v5867_v59, %v5855_v44 }
 0x7af   : > { %v2835_v31 = vpack.c.bf16 %v2827_v27, %v2827_v27 }
 0x7b0   : > { %v2834_v3 = vpack.c.bf16 %v2826_v49, %v2826_v49 }
 0x7b1   : > { %v2868_v20 = vunpack.c.l.b16 %v2835_v31 }
 0x7b2   : > { %v2867_v29 = vunpack.c.l.b16 %v2834_v3 }
 0x7b4   : > { %v2869_v45 = vpack.c.b16 %v2868_v20, %v2867_v29 }
 0x7b6   : > { %5047 = vmatmul.msk.bf16.vlgmr.msra.gmra.mxu3 %vm2091_vm6, %v2869_v45 }
 0x7b8   : > { %v7868_v30 = vpop.f32.mrf.mxu2 }
 0x7b9   : > { %v2896_v57 = vpop.permute.xlu0 %2895  ;;  %3012 = vrot.lane.b32.xlu2 %v7234_v52, %s6436_s3 }
 0x7ba   : > { %2908 = vmatpush.bf16.msra.mxu0 %v2896_v57 }
 0x7bd   : > { %v2991_v11 = vpop.permute.xlu1 %2990 }
 0x7be   : > { %v2996_v60 = vsel %vm1948_vm10, %v2991_v11, 0 }
 0x7bf   : > { %3005 = vmatpush.bf16.xpose.msrb.mxu0 %v2996_v60 }
 0x7c0   : > { %v7873_v8 = vpop.f32.mrf.mxu2 }
 0x7c6   : > { %5051 = vmatmul.msk.bf16.vlgmr.msrb.gmra.mxu3 %vm1948_vm10, %v7832_v46 }
 0x7c8   : > { %v2959_v44 = vpop.f32.mrf.mxu2 }
 0x7c9   : > { %v3036_v54 = vmul.f32 0.17677669, %v2959_v44 }
 0x7cb   : > { %v3044_v22 = vadd.f32 %v3036_v54, %v7678_v9 }
 0x7cd   : > { %v3052_v28 = vsel %vm2728_vm7, -3.4028235e+38, %v3044_v22 }
 0x7ce   : > { %v3060_v12 = vsel %vm2091_vm6, %v3052_v28, -inf }
 0x7cf   : > { %3061 = vmax.xlane.f32.xlu1 %v3060_v12 }
 0x7d0   : > { %v2961_v52 = vpop.f32.mrf.mxu2 }
 0x7d1   : > { %v3037_v35 = vmul.f32 0.17677669, %v2961_v52 }
 0x7d3   : > { %v2806_v53 = vpop.xlane.xlu2 %2805  ;;  %v3045_v17 = vadd.f32 %v3037_v35, %v7689_v56 }
 0x7d4   : > { %5868 = vrcp.f32 %v2806_v53 }
 0x7d5   : > { %v7884_v46 = vsel %vm2729_vm11, -3.4028235e+38, %v3045_v17 }
 0x7d6   : > { %v3063_v9 = vsel %vm2091_vm6, %v7884_v46, -inf }
 0x7da   : > { %v5869_v18 = vpop.eup %5868 }
 0x7db   : > { %v2921_v21 = vpop.permute.xlu2 %2920  ;;  %v2828_v14 = vmul.f32 %v5869_v18, %v7847_v33 }
 0x7dc   : > { %2933 = vmatpush.bf16.msrb.mxu1 %v2921_v21 }
 0x7dd   : > { %v2836_v59 = vpack.c.bf16 %v2828_v14, %v2828_v14 }
 0x7df   : > { %v2892_v49 = vunpack.c.l.b16 %v2836_v59 }
 0x7e2   : > { %3064 = vmax.xlane.f32.xlu2 %v3063_v9 }
 0x7e4   : > { %v2812_v2 = vpop.xlane.xlu0 %2811 }
 0x7e8   : > { %v2809_v4 = vpop.xlane.xlu1 %2808 }
 0x7e9   : > { %5870 = vrcp.f32 %v2809_v4 }
 0x7ea   : > { %5872 = vrcp.f32 %v2812_v2 }
 0x7ef   : > { %v5871_v36 = vpop.eup %5870 }
 0x7f0   : > { %v2829_v27 = vmul.f32 %v5871_v36, %v5861_v13  ;;  %v5873_v33 = vpop.eup %5872 }
 0x7f1   : > { %v2830_v13 = vmul.f32 %v5873_v33, %v7851_v43 }
 0x7f2   : > { %v2837_v56 = vpack.c.bf16 %v2829_v27, %v2829_v27 }
 0x7f3   : > { %v2838_v60 = vpack.c.bf16 %v2830_v13, %v2830_v13 }
 0x7f4   : > { %v2893_v31 = vunpack.c.l.b16 %v2837_v56 }
 0x7f5   : > { %v2917_v22 = vunpack.c.l.b16 %v2838_v60 }
 0x7f6   : > { %v2894_v3 = vpack.c.b16 %v2893_v31, %v2892_v49 }
 0x7f7   : > { %v2989_v45 = vpop.permute.xlu0 %2988 }
 0x7f8   : > { %5048 = vmatmul.msk.bf16.vlgmr.msra.gmra.mxu0 %vm2091_vm6, %v2894_v3 }
 0x800   : > { %v3015_v20 = vpop.permute.xlu1 %3014 }
 0x801   : > { %v3020_v29 = vsel %vm1948_vm10, %v3015_v20, 0 }
 0x802   : > { %3029 = vmatpush.bf16.xpose.msra.mxu1 %v3020_v29 }
 0x808   : > { %5052 = vmatmul.msk.bf16.vlgmr.msrb.gmra.mxu0 %vm1948_vm10, %v2989_v45 }
 0x814   : > { %v2815_v57 = vpop.xlane.xlu2 %2814 }
 0x815   : > { %5874 = vrcp.f32 %v2815_v57 }
 0x81b   : > { %v5875_v11 = vpop.eup %5874 }
 0x81c   : > { %v2831_v44 = vmul.f32 %v5875_v11, %v7863_v0  ;;  %v3013_v53 = vpop.permute.xlu2 %3012 }
 0x81e   : > { %v2839_v54 = vpack.c.bf16 %v2831_v44, %v2831_v44 }
 0x820   : > { %v2918_v12 = vunpack.c.l.b16 %v2839_v54 }
 0x822   : > { %v2919_v52 = vpack.c.b16 %v2918_v12, %v2917_v22 }
 0x824   : > { %5049 = vmatmul.msk.bf16.vlgmr.msrb.gmra.mxu1 %vm2091_vm6, %v2919_v52 }
 0x834   : > { %5053 = vmatmul.msk.bf16.vlgmr.msra.gmra.mxu1 %vm1948_vm10, %v3013_v53 }
 0x839   : > { %v7896_v35 = vpop.f32.mrf.mxu3 }
 0x841   : > { %v7898_v17 = vpop.f32.mrf.mxu3 }
 0x842   : > { %v3062_v43 = vpop.xlane.xlu1 %3061 }
 0x843   : > { %v3084_v18 = vsub.f32 %v3052_v28, %v3062_v43 }
 0x845   : > { %v3092_v59 = vmul.f32 1.442695, %v3084_v18 }
 0x847   : > { %5876 = vpow2.f32 %v3092_v59 }
 0x849   : > { %v2983_v21 = vpop.f32.mrf.mxu3 }
 0x84a   : > { %v3038_v9 = vmul.f32 0.17677669, %v2983_v21 }
 0x84c   : > { %v3046_v4 = vadd.f32 %v3038_v9, %v7724_v24 }
 0x84d   : > { %v7908_v24 = vpop.eup %5876 }
 0x84e   : > { %v3054_v0 = vsel %vm2730_vm14, -3.4028235e+38, %v3046_v4  ;;  %v3108_v63 = vsel %vm2091_vm6, %v7908_v24, 0.0 }
 0x84f   : > { %v3066_v14 = vsel %vm2091_vm6, %v3054_v0, -inf }
 0x850   : > { %3067 = vmax.xlane.f32.xlu0 %v3066_v14 }
 0x851   : > { %v2985_v36 = vpop.f32.mrf.mxu3 }
 0x852   : > { %v3039_v27 = vmul.f32 0.17677669, %v2985_v36 }
 0x854   : > { %v3047_v56 = vadd.f32 %v3039_v27, %v7734_v48 }
 0x855   : > { %v3065_v2 = vpop.xlane.xlu2 %3064 }
 0x856   : > { %v3055_v49 = vsel %vm2731_vm0, -3.4028235e+38, %v3047_v56  ;;  %v3085_v25 = vsub.f32 %v7884_v46, %v3065_v2 }
 0x857   : > { %v3069_v31 = vsel %vm2091_vm6, %v3055_v49, -inf }
 0x858   : > { %3070 = vmax.xlane.f32.xlu1 %v3069_v31  ;;  %v3094_v29 = vmul.f32 1.442695, %v3085_v25 }
 0x85a   : > { %5878 = vpow2.f32 %v3094_v29 }
 0x860   : > { %3109 = vadd.xlane.f32.xlu1 %v3108_v63  ;;  %v5879_v44 = vpop.eup %5878 }
 0x861   : > { %v3111_v22 = vsel %vm2091_vm6, %v5879_v44, 0.0 }
 0x875   : > { %v7912_v28 = vpop.f32.mrf.mxu0 }
 0x87d   : > { %v7914_v3 = vpop.f32.mrf.mxu0 }
 0x87e   : > { %v5728_v48 = vpack.i.bf16 %v7914_v3, %v7912_v28 }
 0x885   : > { %v3007_v20 = vpop.f32.mrf.mxu0 }
 0x886   : > { %v3040_v45 = vmul.f32 0.17677669, %v3007_v20 }
 0x888   : > { %v3048_v57 = vadd.f32 %v3040_v45, %v7777_v1 }
 0x88a   : > { %v3056_v33 = vsel %vm2732_vm1, -3.4028235e+38, %v3048_v57 }
 0x88b   : > { %v3072_v13 = vsel %vm2091_vm6, %v3056_v33, -inf }
 0x88c   : > { %3073 = vmax.xlane.f32.xlu2 %v3072_v13 }
 0x88d   : > { %v3009_v11 = vpop.f32.mrf.mxu0 }
 0x88e   : > { %v3041_v60 = vmul.f32 0.17677669, %v3009_v11 }
 0x890   : > { %v3049_v54 = vadd.f32 %v3041_v60, %v7798_v32 }
 0x892   : > { %v3057_v46 = vsel %vm2733_vm3, -3.4028235e+38, %v3049_v54 }
 0x893   : > { %v3075_v12 = vsel %vm2091_vm6, %v3057_v46, -inf }
 0x894   : > { %3112 = vadd.xlane.f32.xlu2 %v3111_v22  ;;  %3076 = vmax.xlane.f32.xlu0 %v3075_v12 }
 0x8a1   : > { %v7928_v1 = vpop.f32.mrf.mxu1 }
 0x8a9   : > { %v7930_v34 = vpop.f32.mrf.mxu1 }
 0x8aa   : > { %v5743_v52 = vpack.i.bf16 %v7930_v34, %v7928_v1 }
 0x8ac   : > { %3161 = vrot.lane.b32.xlu2 %v7178_v61, %s6436_s3 }
 0x8b1   : > { %v3031_v32 = vpop.f32.mrf.mxu1 }
 0x8b2   : > { %v3042_v53 = vmul.f32 0.17677669, %v3031_v32 }
 0x8b4   : > { %v3050_v62 = vadd.f32 %v3042_v53, %v7806_v6  ;;  %3211 = vrot.lane.b32.xlu2 %v7023_v58, %s6436_s3 }
 0x8b6   : > { %v3058_v21 = vsel %vm2734_vm8, -3.4028235e+38, %v3050_v62 }
 0x8b7   : > { %v3078_v9 = vsel %vm2091_vm6, %v3058_v21, -inf }
 0x8b8   : > { %3079 = vmax.xlane.f32.xlu0 %v3078_v9 }
 0x8b9   : > { %v3033_v43 = vpop.f32.mrf.mxu1 }
 0x8ba   : > { %v3043_v4 = vmul.f32 0.17677669, %v3033_v43 }
 0x8bc   : > { %v3051_v18 = vadd.f32 %v3043_v4, %v7817_v15 }
 0x8be   : > { %v3059_v61 = vsel %vm2735_vm9, -3.4028235e+38, %v3051_v18 }
 0x8bf   : > { %v3081_v14 = vsel %vm2091_vm6, %v3059_v61, -inf }
 0x8c0   : > { %3082 = vmax.xlane.f32.xlu1 %v3081_v14 }
 0x8c3   : > { %v3068_v6 = vpop.xlane.xlu0 %3067 }
 0x8c4   : > { %v3086_v36 = vsub.f32 %v3054_v0, %v3068_v6  ;;  %v5698_v0 = vpack.i.bf16 %v7873_v8, %v7868_v30 }
 0x8c6   : > { %v3096_v59 = vmul.f32 1.442695, %v3086_v36 }
 0x8c8   : > { %5880 = vpow2.f32 %v3096_v59 }
 0x8cb   : > { %v3071_v58 = vpop.xlane.xlu1 %3070 }
 0x8cc   : > { %v3087_v55 = vsub.f32 %v3055_v49, %v3071_v58 }
 0x8ce   : > { %v7946_v27 = vpop.eup %5880  ;;  %v3098_v56 = vmul.f32 1.442695, %v3087_v55 }
 0x8cf   : > { %v3114_v31 = vsel %vm2091_vm6, %v7946_v27, 0.0 }
 0x8d0   : > { %5882 = vpow2.f32 %v3098_v56  ;;  %3115 = vadd.xlane.f32.xlu0 %v3114_v31 }
 0x8d3   : > { %v3110_v49 = vpop.xlane.xlu1 %3109 }
 0x8d4   : > { %5884 = vrcp.f32 %v3110_v49 }
 0x8d6   : > { %v7950_v15 = vpop.eup %5882 }
 0x8d7   : > { %v3117_v23 = vsel %vm2091_vm6, %v7950_v15, 0.0 }
 0x8d8   : > { %3118 = vadd.xlane.f32.xlu1 %v3117_v23 }
 0x8da   : > { %v5885_v45 = vpop.eup %5884 }
 0x8e4   : > { %3186 = vrot.lane.b32.xlu0 %v7227_v41, %s6436_s3 }
 0x8ec   : > { %3236 = vrot.lane.b32.xlu0 %v7229_v7, %s6436_s3  ;;  %v3140_v7 = vmul.f32 %v5885_v45, %v7908_v24 }
 0x8f4   : > { %5699 = vrot.lane.b32.xlu0 %v5698_v0, %s6435_s8 }
 0x8ff   : > { %v3074_v63 = vpop.xlane.xlu2 %3073 }
 0x900   : > { %v3088_v2 = vsub.f32 %v3056_v33, %v3074_v63  ;;  %v3148_v33 = vpack.c.bf16 %v3140_v7, %v3140_v7 }
 0x902   : > { %v3100_v25 = vmul.f32 1.442695, %v3088_v2  ;;  %v3158_v12 = vunpack.c.l.b16 %v3148_v33  ;;  %v5713_v2 = vpack.i.bf16 %v7898_v17, %v7896_v35  ;;  %v5738_v35 = vpack.i.bf16 %v7774_v47, %v7762_v10 }
 0x904   : > { %5886 = vpow2.f32 %v3100_v25 }
 0x907   : > { %v3113_v20 = vpop.xlane.xlu2 %3112  ;;  %v3077_v29 = vpop.xlane.xlu0 %3076 }
 0x908   : > { %5888 = vrcp.f32 %v3113_v20  ;;  %v3089_v57 = vsub.f32 %v3057_v46, %v3077_v29 }
 0x90a   : > { %v7961_v41 = vpop.eup %5886  ;;  %v3102_v13 = vmul.f32 1.442695, %v3089_v57 }
 0x90b   : > { %v3120_v30 = vsel %vm2091_vm6, %v7961_v41, 0.0 }
 0x90c   : > { %5890 = vpow2.f32 %v3102_v13  ;;  %3121 = vadd.xlane.f32.xlu1 %v3120_v30  ;;  %v5708_v30 = vpack.i.bf16 %v7713_v42, %v7711_v19  ;;  %v5390_v19 = vld [vmem:[%s1383_s25 + $0x38] sm:$0xff]  ;;  %v5389_v42 = vld [vmem:[%s1383_s25 + $0x30] sm:$0xff] }
 0x90e   : > { %v5889_v8 = vpop.eup %5888 }
 0x90f   : > { %v3141_v11 = vmul.f32 %v5889_v8, %v5879_v44  ;;  %v3162_v60 = vpop.permute.xlu2 %3161 }
 0x910   : > { %3174 = vmatpush.bf16.msra.mxu2 %v3162_v60 }
 0x911   : > { %v3149_v54 = vpack.c.bf16 %v3141_v11, %v3141_v11 }
 0x912   : > { %v5891_v22 = vpop.eup %5890 }
 0x913   : > { %v3159_v32 = vunpack.c.l.b16 %v3149_v54  ;;  %v3123_v46 = vsel %vm2091_vm6, %v5891_v22, 0.0 }
 0x914   : > { %3124 = vadd.xlane.f32.xlu1 %v3123_v46  ;;  %3430 = vmatpush.bf16.msrb.mxu2 %v5390_v19 }
 0x915   : > { %v3160_v53 = vpack.c.b16 %v3159_v32, %v3158_v12 }
 0x917   : > { %5054 = vmatmul.msk.bf16.vlgmr.msra.gmra.mxu2 %vm2091_vm6, %v3160_v53  ;;  %v3212_v24 = vpop.permute.xlu2 %3211 }
 0x918   : > { %3224 = vmatpush.bf16.msra.mxu0 %v3212_v24  ;;  %3431 = vmatpush.bf16.msrb.mxu2 %v5389_v42  ;;  %v5388_v24 = vld [vmem:[%s1383_s25 + $0x28] sm:$0xff] }
 0x91c   : > { %3432 = vmatpush.bf16.msrb.mxu2 %v5388_v24 }
 0x92b   : > { %v3080_v62 = vpop.xlane.xlu0 %3079 }
 0x92c   : > { %v3090_v9 = vsub.f32 %v3058_v21, %v3080_v62  ;;  %v5693_v21 = vpack.i.bf16 %v7669_v38, %v7661_v50  ;;  %v5387_v62 = vld [vmem:[%s1383_s25 + $0x20] sm:$0xff] }
 0x92d   : > { %3433 = vmatpush.bf16.msrb.mxu2 %v5387_v62 }
 0x92e   : > { %v3104_v43 = vmul.f32 1.442695, %v3090_v9  ;;  %v5386_v9 = vld [vmem:[%s1383_s25 + $0x18] sm:$0xff] }
 0x930   : > { %5892 = vpow2.f32 %v3104_v43  ;;  %v5385_v43 = vld [vmem:[%s1383_s25 + $0x10] sm:$0xff] }
 0x931   : > { %3434 = vmatpush.bf16.msrb.mxu2 %v5386_v9 }
 0x933   : > { %v3083_v4 = vpop.xlane.xlu1 %3082 }
 0x934   : > { %v3091_v44 = vsub.f32 %v3059_v61, %v3083_v4 }
 0x935   : > { %3435 = vmatpush.bf16.msrb.mxu2 %v5385_v43 }
 0x936   : > { %v5893_v18 = vpop.eup %5892  ;;  %v3106_v14 = vmul.f32 1.442695, %v3091_v44 }
 0x937   : > { %v3126_v6 = vsel %vm2091_vm6, %v5893_v18, 0.0 }
 0x938   : > { %5894 = vpow2.f32 %v3106_v14  ;;  %3127 = vadd.xlane.f32.xlu1 %v3126_v6  ;;  %v5384_v14 = vld [vmem:[%s1383_s25 + $0x8] sm:$0xff]  ;;  %v5383_v6 = vld [vmem:[%s1383_s25] sm:$0xff]  ;;  %s8785_s25 = sld [smem:[#allocation92_spill]] (!%p5346_p4) }
 0x939   : > { %3436 = vmatpush.bf16.msrb.mxu2 %v5384_v14 }
 0x93d   : > { %3437 = vmatpush.bf16.msrb.mxu2 %v5383_v6 }
 0x93e   : > { %v5895_v36 = vpop.eup %5894 }
 0x93f   : > { %v3129_v59 = vsel %vm2091_vm6, %v5895_v36, 0.0 }
 0x940   : > { %3130 = vadd.xlane.f32.xlu2 %v3129_v59 }
 0x943   : > { %v3116_v58 = vpop.xlane.xlu0 %3115 }
 0x944   : > { %5896 = vrcp.f32 %v3116_v58 }
 0x94a   : > { %v5897_v56 = vpop.eup %5896 }
 0x94b   : > { %v3119_v55 = vpop.xlane.xlu1 %3118  ;;  %v3142_v61 = vmul.f32 %v5897_v56, %v7946_v27  ;;  %v5723_v27 = vpack.i.bf16 %v7764_v37, %v7760_v51 }
 0x94c   : > { %5898 = vrcp.f32 %v3119_v55 }
 0x94d   : > { %v3150_v23 = vpack.c.bf16 %v3142_v61, %v3142_v61 }
 0x94f   : > { %v3183_v25 = vunpack.c.l.b16 %v3150_v23 }
 0x951   : > { %5694 = vrot.lane.b32.xlu1 %v5693_v21, %s6436_s3 }
 0x952   : > { %v5899_v31 = vpop.eup %5898 }
 0x953   : > { %v3143_v0 = vmul.f32 %v5899_v31, %v7950_v15 }
 0x955   : > { %v3151_v49 = vpack.c.bf16 %v3143_v0, %v3143_v0 }
 0x956   : > { %v3187_v63 = vpop.permute.xlu0 %3186 }
 0x957   : > { %v3184_v20 = vunpack.c.l.b16 %v3151_v49  ;;  %3199 = vmatpush.bf16.msra.mxu3 %v3187_v63 }
 0x958   : > { %5729 = vrot.lane.b32.xlu2 %v5728_v48, %s6435_s8 }
 0x959   : > { %v3185_v50 = vpack.c.b16 %v3184_v20, %v3183_v25  ;;  %5714 = vrot.lane.b32.xlu1 %v5713_v2, %s6435_s8 }
 0x95b   : > { %5055 = vmatmul.msk.bf16.vlgmr.msra.gmra.mxu3 %vm2091_vm6, %v3185_v50 }
 0x95c   : > { %5457 = vmatpush.bf16.msrb.mxu3 %v5390_v19 }
 0x95e   : > { %v3237_v38 = vpop.permute.xlu0 %3236 }
 0x95f   : > { %3249 = vmatpush.bf16.msrb.mxu1 %v3237_v38 }
 0x960   : > { %5458 = vmatpush.bf16.msrb.mxu3 %v5389_v42 }
 0x961   : > { %5724 = vrot.lane.b32.xlu1 %v5723_v27, %s6436_s3 }
 0x964   : > { %5459 = vmatpush.bf16.msrb.mxu3 %v5388_v24 }
 0x968   : > { %5460 = vmatpush.bf16.msrb.mxu3 %v5387_v62 }
 0x969   : > { %5739 = vrot.lane.b32.xlu1 %v5738_v35, %s6436_s3 }
 0x96c   : > { %5461 = vmatpush.bf16.msrb.mxu3 %v5386_v9 }
 0x970   : > { %5462 = vmatpush.bf16.msrb.mxu3 %v5385_v43 }
 0x974   : > { %5463 = vmatpush.bf16.msrb.mxu3 %v5384_v14 }
 0x978   : > { %5464 = vmatpush.bf16.msrb.mxu3 %v5383_v6 }
 0x97f   : > { %v3122_v17 = vpop.xlane.xlu1 %3121 }
 0x980   : > { %5900 = vrcp.f32 %v3122_v17 }
 0x986   : > { %v5901_v3 = vpop.eup %5900 }
 0x987   : > { %v3125_v28 = vpop.xlane.xlu1 %3124  ;;  %v3144_v48 = vmul.f32 %v5901_v3, %v7961_v41 }
 0x988   : > { %5902 = vrcp.f32 %v3125_v28 }
 0x989   : > { %v3152_v29 = vpack.c.bf16 %v3144_v48, %v3144_v48 }
 0x98b   : > { %v3208_v51 = vunpack.c.l.b16 %v3152_v29 }
 0x98e   : > { %v5903_v15 = vpop.eup %5902 }
 0x98f   : > { %v3145_v45 = vmul.f32 %v5903_v15, %v5891_v22 }
 0x991   : > { %v3153_v57 = vpack.c.bf16 %v3145_v45, %v3145_v45 }
 0x993   : > { %v3209_v37 = vunpack.c.l.b16 %v3153_v57 }
 0x995   : > { %v3210_v13 = vpack.c.b16 %v3209_v37, %v3208_v51 }
 0x997   : > { %5056 = vmatmul.msk.bf16.vlgmr.msra.gmra.mxu0 %vm2091_vm6, %v3210_v13 }
 0x99a   : > { %v3176_v7 = vpop.f32.mrf.mxu2 }
 0x9a2   : > { %v3178_v10 = vpop.f32.mrf.mxu2 }
 0x9a3   : > { %v5703_v47 = vpack.i.bf16 %v3178_v10, %v3176_v7 }
 0x9a5   : > { %5704 = vrot.lane.b32.xlu0 %v5703_v47, %s6434_s7 }
 0x9ab   : > { %v3128_v8 = vpop.xlane.xlu1 %3127 }
 0x9ac   : > { %5904 = vrcp.f32 %v3128_v8 }
 0x9ad   : > { %5709 = vrot.lane.b32.xlu0 %v5708_v30, %s6436_s3 }
 0x9b2   : > { %v5905_v33 = vpop.eup %5904 }
 0x9b3   : > { %v3131_v41 = vpop.xlane.xlu2 %3130  ;;  %v3146_v11 = vmul.f32 %v5905_v33, %v5893_v18  ;;  %v8765_v33 = vld [vmem:[#allocation72_spill] sm:$0xff] }
 0x9b4   : > { %5906 = vrcp.f32 %v3131_v41 }
 0x9b5   : > { %v3154_v54 = vpack.c.bf16 %v3146_v11, %v3146_v11 }
 0x9b7   : > { %v3233_v32 = vunpack.c.l.b16 %v3154_v54 }
 0x9ba   : > { %v5907_v60 = vpop.eup %5906 }
 0x9bb   : > { %v3147_v22 = vmul.f32 %v5907_v60, %v5895_v36  ;;  %v5700_v36 = vpop.permute.xlu0 %5699  ;;  %v5730_v41 = vpop.permute.xlu2 %5729 }
 0x9bc   : > { %v5702_v31 = vunpack.i.h.bf16 %v5700_v36  ;;  %v5701_v23 = vunpack.i.l.bf16 %v5700_v36  ;;  %v5732_v60 = vunpack.i.h.bf16 %v5730_v41  ;;  %v5731_v54 = vunpack.i.l.bf16 %v5730_v41 }
 0x9bd   : > { %v3155_v12 = vpack.c.bf16 %v3147_v22, %v3147_v22 }
 0x9bf   : > { %v3234_v46 = vunpack.c.l.b16 %v3155_v12 }
 0x9c1   : > { %v3235_v53 = vpack.c.b16 %v3234_v46, %v3233_v32 }
 0x9c3   : > { %5057 = vmatmul.msk.bf16.vlgmr.msrb.gmra.mxu1 %vm2091_vm6, %v3235_v53  ;;  %v5695_v59 = vpop.permute.xlu1 %5694  ;;  %vm3360_vm6 = vcmask 523264  }
 0x9c4   : > { %v5697_v58 = vunpack.i.h.bf16 %v5695_v59  ;;  %v5696_v55 = vunpack.i.l.bf16 %v5695_v59 }
 0x9c6   : > { %v3353_v21 = vsel %vm1948_vm10, %v7578_v26, %v5697_v58  ;;  %v3352_v61 = vsel %vm1948_vm10, %v7576_v40, %v5696_v55 }
 0x9c7   : > { %v3361_v2 = vsel %vm3360_vm6, %v3352_v61, %v5701_v23  ;;  %v3362_v25 = vsel %vm3360_vm6, %v3353_v21, %v5702_v31  ;;  %v8769_v61 = vld [vmem:[#allocation73_spill] sm:$0xff] }
 0x9cb   : > { %v5715_v15 = vpop.permute.xlu1 %5714 }
 0x9cc   : > { %v5717_v57 = vunpack.i.h.bf16 %v5715_v15  ;;  %v5716_v51 = vunpack.i.l.bf16 %v5715_v15 }
 0x9d3   : > { %v5725_v30 = vpop.permute.xlu1 %5724 }
 0x9d4   : > { %v5726_v8 = vunpack.i.l.bf16 %v5725_v30 }
 0x9d6   : > { %v3356_v11 = vsel %vm1948_vm10, %v8765_v33, %v5726_v8  ;;  %v8777_v8 = vld [vmem:[#allocation47_spill] sm:$0xff] }
 0x9d7   : > { %v3365_v46 = vsel %vm3360_vm6, %v3356_v11, %v5731_v54 }
 0x9de   : > { %v3201_v4 = vpop.f32.mrf.mxu3 }
 0x9e6   : > { %v3203_v44 = vpop.f32.mrf.mxu3 }
 0x9e7   : > { %v5718_v18 = vpack.i.bf16 %v3203_v44, %v3201_v4  ;;  %v8767_v4 = vld [vmem:[#allocation41_spill] sm:$0xff] }
 0x9e9   : > { %5719 = vrot.lane.b32.xlu0 %v5718_v18, %s6434_s7  ;;  %v5740_v18 = vpop.permute.xlu1 %5739 }
 0x9ea   : > { %v5742_v6 = vunpack.i.h.bf16 %v5740_v18  ;;  %v5741_v36 = vunpack.i.l.bf16 %v5740_v18 }
 0x9ec   : > { %v3358_v31 = vsel %vm1948_vm10, %v8769_v61, %v5741_v36  ;;  %v5416_v36 = vld [vmem:[%s8084_s13 + $0xc4] sm:$0xf] }
 0xa14   : > { %v3226_v56 = vpop.f32.mrf.mxu0 }
 0xa17   : > { %v5705_v0 = vpop.permute.xlu0 %5704 }
 0xa18   : > { %v5707_v49 = vunpack.i.h.bf16 %v5705_v0  ;;  %v5706_v63 = vunpack.i.l.bf16 %v5705_v0 }
 0xa1a   : > { %v3370_v20 = vsel %vm3369_vm12, %v3361_v2, %v5706_v63  ;;  %v3371_v50 = vsel %vm3369_vm12, %v3362_v25, %v5707_v49 }
 0xa1b   : > { %v3378_v38 = vpack.c.bf16 %v3371_v50, %v3370_v20 }
 0xa1c   : > { %v3228_v26 = vpop.f32.mrf.mxu0 }
 0xa1d   : > { %v5733_v27 = vpack.i.bf16 %v3228_v26, %v3226_v56  ;;  %3438 = vmatmul.bf16.vlgmr.msrb.gmra.mxu2 %v3378_v38  ;;  %v8768_v56 = vld [vmem:[#allocation74_spill] sm:$0xff] }
 0xa1e   : > { %v3359_v21 = vsel %vm1948_vm10, %v8768_v56, %v5742_v6  ;;  %v8770_v38 = vld [vmem:[#allocation42_spill] sm:$0xff]  ;;  %v5418_v6 = vld [vmem:[%s8084_s13 + $0xcc] sm:$0xf0]  ;;  %v5419_v56 = vld [vmem:[%s8084_s13 + $0xd4] sm:$0xf0] }
 0xa1f   : > { %5734 = vrot.lane.b32.xlu0 %v5733_v27, %s6434_s7  ;;  %v5710_v28 = vpop.permute.xlu0 %5709 }
 0xa20   : > { %v5712_v3 = vunpack.i.h.bf16 %v5710_v28  ;;  %v5711_v48 = vunpack.i.l.bf16 %v5710_v28  ;;  %v8773_v28 = vld [vmem:[#allocation39_spill] sm:$0xff] }
 0xa22   : > { %v3355_v29 = vsel %vm1948_vm10, %v7582_v39, %v5712_v3  ;;  %v3354_v45 = vsel %vm1948_vm10, %v7580_v5, %v5711_v48  ;;  %v5727_v39 = vunpack.i.h.bf16 %v5725_v30 }
 0xa23   : > { %v3364_v13 = vsel %vm3360_vm6, %v3355_v29, %v5717_v57  ;;  %v8774_v29 = vld [vmem:[#allocation44_spill] sm:$0xff] }
 0xa24   : > { %v3357_v5 = vsel %vm1948_vm10, %v7592_v16, %v5727_v39  ;;  %v8766_v16 = vld [vmem:[#allocation40_spill] sm:$0xff] }
 0xa25   : > { %v3366_v53 = vsel %vm3360_vm6, %v3357_v5, %v5732_v60 }
 0xa27   : > { %5744 = vrot.lane.b32.xlu0 %v5743_v52, %s6435_s8  ;;  %v3363_v52 = vsel %vm3360_vm6, %v3354_v45, %v5716_v51  ;;  %s8784_s8 = sld [smem:[#allocation91_spill]] (!%p5346_p4) }
 0xa40   : > { %v3251_v40 = vpop.f32.mrf.mxu1 }
 0xa48   : > { %v3253_v35 = vpop.f32.mrf.mxu1 }
 0xa49   : > { %v5748_v17 = vpack.i.bf16 %v3253_v35, %v3251_v40  ;;  %v8771_v40 = vld [vmem:[#allocation43_spill] sm:$0xff] }
 0xa4b   : > { %5749 = vrot.lane.b32.xlu1 %v5748_v17, %s6434_s7 }
 0xa5b   : > { %v5720_v37 = vpop.permute.xlu0 %5719 }
 0xa5c   : > { %v5722_v1 = vunpack.i.h.bf16 %v5720_v37  ;;  %v5721_v34 = vunpack.i.l.bf16 %v5720_v37 }
 0xa5e   : > { %v3372_v7 = vsel %vm3369_vm12, %v3363_v52, %v5721_v34  ;;  %v3373_v10 = vsel %vm3369_vm12, %v3364_v13, %v5722_v1  ;;  %v8775_v52 = vld [vmem:[#allocation45_spill] sm:$0xff] }
 0xa5f   : > { %v3379_v47 = vpack.c.bf16 %v3373_v10, %v3372_v7 }
 0xa61   : > { %3443 = vmatmul.bf16.gmra.mxu2 %v3379_v47  ;;  %v8776_v47 = vld [vmem:[#allocation46_spill] sm:$0xff] }
 0xa91   : > { %v5735_v22 = vpop.permute.xlu0 %5734 }
 0xa92   : > { %v5737_v12 = vunpack.i.h.bf16 %v5735_v22  ;;  %v5736_v32 = vunpack.i.l.bf16 %v5735_v22 }
 0xa94   : > { %v3375_v19 = vsel %vm3369_vm12, %v3366_v53, %v5737_v12  ;;  %v3374_v42 = vsel %vm3369_vm12, %v3365_v46, %v5736_v32  ;;  %v5204_v46 = vld [vmem:[%s8084_s13 + $0xe0] sm:$0xf]  ;;  %v5422_v53 = vld [vmem:[%s8084_s13 + $0xec] sm:$0xf0] }
 0xa95   : > { %v3380_v24 = vpack.c.bf16 %v3375_v19, %v3374_v42  ;;  %v5420_v19 = vld [vmem:[%s8084_s13 + $0xe4] sm:$0xf]  ;;  %v5205_v42 = vor.u32 %v5422_v53, %v5204_v46 }
 0xa97   : > { %3448 = vmatmul.bf16.vlgmr.msrb.gmra.mxu3 %v3380_v24  ;;  %v5206_v24 = vld [vmem:[%s8084_s13 + $0xf0] sm:$0xf0] }
 0xa98   : > { %3822 = vmatpush.bf16.msra.mxu3 %v5205_v42  ;;  %v5150_v42 = vld [vmem:[%s8084_s13 + $0x78] sm:$0xf0] }
 0xa99   : > { %v5745_v14 = vpop.permute.xlu0 %5744 }
 0xa9a   : > { %v5747_v59 = vunpack.i.h.bf16 %v5745_v14  ;;  %v5746_v58 = vunpack.i.l.bf16 %v5745_v14  ;;  %v5188_v14 = vld [vmem:[%s8084_s13 + $0xc0] sm:$0xf] }
 0xa9c   : > { %v3368_v49 = vsel %vm3360_vm6, %v3359_v21, %v5747_v59  ;;  %v3367_v63 = vsel %vm3360_vm6, %v3358_v31, %v5746_v58  ;;  %v5189_v59 = vor.u32 %v5418_v6, %v5188_v14  ;;  %v5190_v58 = vld [vmem:[%s8084_s13 + $0xd0] sm:$0xf0]  ;;  %v5417_v31 = vld [vmem:[%s8084_s13 + $0xcc] sm:$0xf] }
 0xa9d   : > { %v5193_v21 = vor.u32 %v5416_v36, %v5190_v58  ;;  %v5401_v36 = vld [vmem:[%s8084_s13 + $0x4c] sm:$0xf] }
 0xa9e   : > { %3823 = vmatpush.bf16.msra.mxu3 %v5189_v59  ;;  %v5134_v59 = vld [vmem:[%s8084_s13 + $0x58] sm:$0xf0] }
 0xa9f   : > { %v5137_v58 = vor.u32 %v5401_v36, %v5134_v59  ;;  %v4297_v36 = vld [vmem:[%s6772_s14] sm:$0xff] }
 0xaa0   : > { %v3439_v62 = vpop.f32.mrf.mxu2  ;;  %v8175_v59 = vld [vmem:[%s1344_s17] ss:$0 sm:$0xff]  ;;  %vm4305_vm7 = vcmp.gt.f32.partialorder %v4297_v36, 0.5 }
 0xaa1   : > { %v3459_v9 = vadd.f32 %v3439_v62, %v8766_v16  ;;  %v5212_v62 = vld [vmem:[%s8084_s13 + $0xe8] sm:$0xf]  ;;  %v5423_v16 = vld [vmem:[%s8084_s13 + $0xf4] sm:$0xf0] }
 0xaa3   : > { %3467 = vadd.xlane.f32.xlu0 %v3459_v9 }
 0xaa8   : > { %v3441_v43 = vpop.f32.mrf.mxu2 }
 0xaa9   : > { %v3460_v44 = vadd.f32 %v3441_v43, %v8767_v4  ;;  %v5213_v43 = vor.u32 %v5423_v16, %v5212_v62  ;;  %v5421_v4 = vld [vmem:[%s8084_s13 + $0xec] sm:$0xf]  ;;  %v5124_v62 = vld [vmem:[%s8084_s13 + $0x40] sm:$0xf]  ;;  %v5402_v16 = vld [vmem:[%s8084_s13 + $0x4c] sm:$0xf0] }
 0xaab   : > { %3469 = vadd.xlane.f32.xlu1 %v3460_v44  ;;  %3880 = vmatpush.bf16.msra.mxu1 %v5213_v43  ;;  %v5125_v43 = vor.u32 %v5402_v16, %v5124_v62 }
 0xabd   : > { %v5750_v55 = vpop.permute.xlu1 %5749 }
 0xabe   : > { %v5752_v23 = vunpack.i.h.bf16 %v5750_v55  ;;  %v5751_v0 = vunpack.i.l.bf16 %v5750_v55  ;;  %v5196_v55 = vld [vmem:[%s8084_s13 + $0xc8] sm:$0xf] }
 0xabf   : > { %v5197_v61 = vor.u32 %v5419_v56, %v5196_v55  ;;  %v5108_v55 = vld [vmem:[%s8084_s13 + $0x20] sm:$0xf]  ;;  %v5398_v56 = vld [vmem:[%s8084_s13 + $0x2c] sm:$0xf0] }
 0xac0   : > { %v3376_v2 = vsel %vm3369_vm12, %v3367_v63, %v5751_v0  ;;  %v3377_v25 = vsel %vm3369_vm12, %v3368_v49, %v5752_v23  ;;  %v5198_v23 = vld [vmem:[%s8084_s13 + $0xd8] sm:$0xf0]  ;;  %v5172_v49 = vld [vmem:[%s8084_s13 + $0xa0] sm:$0xf]  ;;  %v5414_v63 = vld [vmem:[%s8084_s13 + $0xac] sm:$0xf0] }
 0xac1   : > { %v3381_v20 = vpack.c.bf16 %v3377_v25, %v3376_v2  ;;  %v5201_v0 = vor.u32 %v5417_v31, %v5198_v23  ;;  %3881 = vmatpush.bf16.msra.mxu1 %v5197_v61  ;;  %v5412_v2 = vld [vmem:[%s8084_s13 + $0xa4] sm:$0xf]  ;;  %v5173_v25 = vor.u32 %v5414_v63, %v5172_v49  ;;  %v5109_v23 = vor.u32 %v5398_v56, %v5108_v55  ;;  %v5116_v49 = vld [vmem:[%s8084_s13 + $0x28] sm:$0xf]  ;;  %v5399_v63 = vld [vmem:[%s8084_s13 + $0x34] sm:$0xf0] }
 0xac3   : > { %3453 = vmatmul.bf16.gmra.mxu3 %v3381_v20  ;;  %v5174_v20 = vld [vmem:[%s8084_s13 + $0xb0] sm:$0xf0] }
 0xac4   : > { %3824 = vmatpush.bf16.msra.mxu3 %v5173_v25 }
 0xae4   : > { %v3444_v50 = vpop.f32.mrf.mxu2 }
 0xae5   : > { %v3461_v26 = vadd.f32 %v3444_v50, %v8770_v38  ;;  %v5180_v50 = vld [vmem:[%s8084_s13 + $0xa8] sm:$0xf]  ;;  %v5415_v38 = vld [vmem:[%s8084_s13 + $0xb4] sm:$0xf0] }
 0xae7   : > { %3471 = vadd.xlane.f32.xlu2 %v3461_v26 }
 0xaec   : > { %v3446_v27 = vpop.f32.mrf.mxu2 }
 0xaed   : > { %v3462_v35 = vadd.f32 %v3446_v27, %v8771_v40  ;;  %v5181_v27 = vor.u32 %v5415_v38, %v5180_v50  ;;  %v5413_v40 = vld [vmem:[%s8084_s13 + $0xac] sm:$0xf]  ;;  %v5117_v50 = vor.u32 %v5399_v63, %v5116_v49 }
 0xaee   : > { %v5397_v38 = vld [vmem:[%s8084_s13 + $0x2c] sm:$0xf] }
 0xaef   : > { %3473 = vadd.xlane.f32.xlu0 %v3462_v35  ;;  %3882 = vmatpush.bf16.msra.mxu1 %v5181_v27 }
 0xb16   : > { %v3468_v17 = vpop.xlane.xlu0 %3467 }
 0xb17   : > { %v3483_v3 = vmul.f32 %v3468_v17, %v8773_v28 }
 0xb19   : > { %v8046_v48 = vsub.f32 %v3459_v9, %v3483_v3  ;;  %v5209_v9 = vor.u32 %v5420_v19, %v5206_v24  ;;  %v5156_v3 = vld [vmem:[%s8084_s13 + $0x80] sm:$0xf]  ;;  %v5405_v19 = vld [vmem:[%s8084_s13 + $0x6c] sm:$0xf] }
 0xb1a   : > { %v3449_v15 = vpop.f32.mrf.mxu3  ;;  %v5153_v24 = vor.u32 %v5405_v19, %v5150_v42 }
 0xb1b   : > { %v8049_v45 = vadd.f32 %v3449_v15, %v8774_v29  ;;  %v3499_v57 = vmul.f32 %v8046_v48, %v8046_v48  ;;  %3851 = vmatpush.bf16.msrb.mxu0 %v5209_v9  ;;  %v5410_v15 = vld [vmem:[%s8084_s13 + $0x8c] sm:$0xf0]  ;;  %v5408_v29 = vld [vmem:[%s8084_s13 + $0x84] sm:$0xf] }
 0xb1c   : > { %v5400_v9 = vld [vmem:[%s8084_s13 + $0x44] sm:$0xf] }
 0xb1d   : > { %3475 = vadd.xlane.f32.xlu2 %v8049_v45  ;;  %3507 = vadd.xlane.f32.xlu0 %v3499_v57  ;;  %v5157_v57 = vor.u32 %v5410_v15, %v5156_v3  ;;  %v5394_v3 = vld [vmem:[%s8084_s13 + $0xc] sm:$0xf0] }
 0xb1e   : > { %v3470_v51 = vpop.xlane.xlu1 %3469 }
 0xb1f   : > { %v3484_v37 = vmul.f32 %v3470_v51, %v8773_v28  ;;  %3852 = vmatpush.bf16.msrb.mxu0 %v5193_v21  ;;  %v5158_v51 = vld [vmem:[%s8084_s13 + $0x90] sm:$0xf0]  ;;  %3825 = vmatpush.bf16.msra.mxu3 %v5157_v57  ;;  %v5396_v21 = vld [vmem:[%s8084_s13 + $0x24] sm:$0xf] }
 0xb20   : > { %v5094_v57 = vld [vmem:[%s8084_s13 + $0x10] sm:$0xf0] }
 0xb21   : > { %v8055_v1 = vsub.f32 %v3460_v44, %v3484_v37  ;;  %v5214_v44 = vld [vmem:[%s8084_s13 + $0xf8] sm:$0xf0]  ;;  %v5164_v37 = vld [vmem:[%s8084_s13 + $0x88] sm:$0xf] }
 0xb22   : > { %v3451_v34 = vpop.f32.mrf.mxu3  ;;  %v5217_v18 = vor.u32 %v5421_v4, %v5214_v44  ;;  %v5126_v4 = vld [vmem:[%s8084_s13 + $0x50] sm:$0xf0]  ;;  %v5132_v44 = vld [vmem:[%s8084_s13 + $0x48] sm:$0xf] }
 0xb23   : > { %v8058_v13 = vadd.f32 %v3451_v34, %v8775_v52  ;;  %v3500_v7 = vmul.f32 %v8055_v1, %v8055_v1  ;;  %v5411_v34 = vld [vmem:[%s8084_s13 + $0x94] sm:$0xf0]  ;;  %v5161_v52 = vor.u32 %v5408_v29, %v5158_v51  ;;  %v5129_v14 = vor.u32 %v5400_v9, %v5126_v4  ;;  %v5392_v29 = vld [vmem:[%s8084_s13 + $0x4] sm:$0xf]  ;;  %v5100_v51 = vld [vmem:[%s8084_s13 + $0x8] sm:$0xf] }
 0xb24   : > { %3909 = vmatpush.bf16.msra.mxu2 %v5217_v18  ;;  %v5403_v18 = vld [vmem:[%s8084_s13 + $0x54] sm:$0xf0] }
 0xb25   : > { %3477 = vadd.xlane.f32.xlu1 %v8058_v13  ;;  %3509 = vadd.xlane.f32.xlu2 %v3500_v7  ;;  %v5165_v7 = vor.u32 %v5411_v34, %v5164_v37  ;;  %v5133_v6 = vor.u32 %v5403_v18, %v5132_v44  ;;  %v5097_v34 = vor.u32 %v5392_v29, %v5094_v57  ;;  %v8169_v44 = vld [vmem:[%s1342_s10] ss:$0 sm:$0xff] }
 0xb27   : > { %3883 = vmatpush.bf16.msra.mxu1 %v5165_v7  ;;  %v5393_v7 = vld [vmem:[%s8084_s13 + $0xc] sm:$0xf] }
 0xb28   : > { %3910 = vmatpush.bf16.msra.mxu2 %v5201_v0  ;;  %v5110_v0 = vld [vmem:[%s8084_s13 + $0x30] sm:$0xf0] }
 0xb46   : > { %v3454_v10 = vpop.f32.mrf.mxu3 }
 0xb47   : > { %v8064_v30 = vadd.f32 %v3454_v10, %v8776_v47  ;;  %v5409_v10 = vld [vmem:[%s8084_s13 + $0x8c] sm:$0xf]  ;;  %v5166_v47 = vld [vmem:[%s8084_s13 + $0x98] sm:$0xf0] }
 0xb49   : > { %3479 = vadd.xlane.f32.xlu1 %v8064_v30 }
 0xb4e   : > { %v3456_v39 = vpop.f32.mrf.mxu3 }
 0xb4f   : > { %v8068_v41 = vadd.f32 %v3456_v39, %v8777_v8  ;;  %v5169_v39 = vor.u32 %v5409_v10, %v5166_v47  ;;  %v5140_v8 = vld [vmem:[%s8084_s13 + $0x60] sm:$0xf] }
 0xb51   : > { %3481 = vadd.xlane.f32.xlu0 %v8068_v41 }
 0xb5a   : > { %v3472_v5 = vpop.xlane.xlu2 %3471 }
 0xb5b   : > { %v3485_v33 = vmul.f32 %v3472_v5, %v8773_v28  ;;  %v5406_v5 = vld [vmem:[%s8084_s13 + $0x6c] sm:$0xf0] }
 0xb5d   : > { %v8072_v11 = vsub.f32 %v3461_v26, %v3485_v33  ;;  %v5177_v26 = vor.u32 %v5412_v2, %v5174_v20  ;;  %v5404_v33 = vld [vmem:[%s8084_s13 + $0x64] sm:$0xf]  ;;  %v5113_v20 = vor.u32 %v5396_v21, %v5110_v0 }
 0xb5e   : > { %v4301_v0 = vld [vmem:[%s6772_s14 + $0x20] sm:$0xff] }
 0xb5f   : > { %v3501_v60 = vmul.f32 %v8072_v11, %v8072_v11  ;;  %3853 = vmatpush.bf16.msrb.mxu0 %v5177_v26  ;;  %v5118_v26 = vld [vmem:[%s8084_s13 + $0x38] sm:$0xf0]  ;;  %vm4309_vm11 = vcmp.gt.f32.partialorder %v4301_v0, 0.5 }
 0xb60   : > { %v5121_v27 = vor.u32 %v5397_v38, %v5118_v26 }
 0xb61   : > { %3511 = vadd.xlane.f32.xlu2 %v3501_v60  ;;  %v5141_v60 = vor.u32 %v5406_v5, %v5140_v8 }
 0xb62   : > { %v3474_v54 = vpop.xlane.xlu0 %3473 }
 0xb63   : > { %v3486_v22 = vmul.f32 %v3474_v54, %v8773_v28  ;;  %3854 = vmatpush.bf16.msrb.mxu0 %v5161_v52  ;;  %v5142_v54 = vld [vmem:[%s8084_s13 + $0x70] sm:$0xf0]  ;;  %3826 = vmatpush.bf16.msra.mxu3 %v5141_v60  ;;  %v5395_v52 = vld [vmem:[%s8084_s13 + $0x14] sm:$0xf0] }
 0xb64   : > { %v5145_v46 = vor.u32 %v5404_v33, %v5142_v54  ;;  %v5101_v10 = vor.u32 %v5395_v52, %v5100_v51  ;;  %v4302_v51 = vld [vmem:[%s6772_s14 + $0x28] sm:$0xff]  ;;  %v4300_v52 = vld [vmem:[%s6772_s14 + $0x18] sm:$0xff] }
 0xb65   : > { %v8077_v12 = vsub.f32 %v3462_v35, %v3486_v22  ;;  %v5182_v35 = vld [vmem:[%s8084_s13 + $0xb8] sm:$0xf0]  ;;  %v5148_v22 = vld [vmem:[%s8084_s13 + $0x68] sm:$0xf]  ;;  %vm4310_vm3 = vcmp.gt.f32.partialorder %v4302_v51, 0.5  ;;  %vm4308_vm8 = vcmp.gt.f32.partialorder %v4300_v52, 0.5 }
 0xb66   : > { %v5185_v17 = vor.u32 %v5413_v40, %v5182_v35 }
 0xb67   : > { %v3502_v32 = vmul.f32 %v8077_v12, %v8077_v12  ;;  %3855 = vmatpush.bf16.msrb.mxu0 %v5145_v46  ;;  %3827 = vmatpush.bf16.msra.mxu3 %v5125_v43 }
 0xb68   : > { %3911 = vmatpush.bf16.msra.mxu2 %v5185_v17  ;;  %v5092_v17 = vld [vmem:[%s8084_s13] sm:$0xf] }
 0xb69   : > { %3513 = vadd.xlane.f32.xlu1 %v3502_v32  ;;  %v5407_v32 = vld [vmem:[%s8084_s13 + $0x74] sm:$0xf0]  ;;  %v5093_v15 = vor.u32 %v5394_v3, %v5092_v17 }
 0xb6a   : > { %v5149_v53 = vor.u32 %v5407_v32, %v5148_v22 }
 0xb6b   : > { %3856 = vmatpush.bf16.msrb.mxu0 %v5129_v14  ;;  %3828 = vmatpush.bf16.msra.mxu3 %v5109_v23 }
 0xb6c   : > { %3912 = vmatpush.bf16.msra.mxu2 %v5169_v39  ;;  %3884 = vmatpush.bf16.msra.mxu1 %v5149_v53 }
 0xb6f   : > { %3857 = vmatpush.bf16.msrb.mxu0 %v5113_v20  ;;  %3829 = vmatpush.bf16.msra.mxu3 %v5093_v15  ;;  %v4299_v15 = vld [vmem:[%s6772_s14 + $0x10] sm:$0xff] }
 0xb70   : > { %3913 = vmatpush.bf16.msra.mxu2 %v5153_v24  ;;  %3885 = vmatpush.bf16.msra.mxu1 %v5133_v6  ;;  %vm4307_vm1 = vcmp.gt.f32.partialorder %v4299_v15, 0.5 }
 0xb73   : > { %3858 = vmatpush.bf16.msrb.mxu0 %v5097_v34 }
 0xb74   : > { %3914 = vmatpush.bf16.msra.mxu2 %v5137_v58  ;;  %3886 = vmatpush.bf16.msra.mxu1 %v5117_v50 }
 0xb78   : > { %3915 = vmatpush.bf16.msra.mxu2 %v5121_v27  ;;  %3887 = vmatpush.bf16.msra.mxu1 %v5101_v10 }
 0xb90   : > { %v3476_v61 = vpop.xlane.xlu2 %3475  ;;  %v3508_v31 = vpop.xlane.xlu0 %3507 }
 0xb91   : > { %v3487_v2 = vmul.f32 %v3476_v61, %v8773_v28  ;;  %v3523_v25 = vmul.f32 %v3508_v31, %v8773_v28  ;;  %v8778_v61 = vmov 0  }
 0xb92   : > { %v4313_v31 = vsel %vm4305_vm7, 1, %v8778_v61  ;;  %v4317_v49 = vsel %vm4309_vm11, 1, %v8778_v61 }
 0xb93   : > { %v8145_v40 = vsub.f32 %v8049_v45, %v3487_v2  ;;  %v3531_v35 = vadd.f32 1e-05, %v3523_v25  ;;  %v5102_v45 = vld [vmem:[%s8084_s13 + $0x18] sm:$0xf0] }
 0xb94   : > { %v5105_v47 = vor.u32 %v5393_v7, %v5102_v45  ;;  %v4304_v2 = vld [vmem:[%s6772_s14 + $0x38] sm:$0xff] }
 0xb95   : > { %5908 = vrsqrt.f32 %v3531_v35  ;;  %v3503_v37 = vmul.f32 %v8145_v40, %v8145_v40  ;;  %vm3545_vm13 = vweird.f32 %v3531_v35  ;;  %vm4312_vm14 = vcmp.gt.f32.partialorder %v4304_v2, 0.5 }
 0xb96   : > { %3916 = vmatpush.bf16.msra.mxu2 %v5105_v47  ;;  %v4320_v38 = vsel %vm4312_vm14, 1, %v8778_v61  ;;  %v4318_v47 = vsel %vm4310_vm3, 1, %v8778_v61 }
 0xb97   : > { %3515 = vadd.xlane.f32.xlu0 %v3503_v37  ;;  %v4315_v37 = vsel %vm4307_vm1, 1, %v8778_v61 }
 0xb98   : > { %v3478_v39 = vpop.xlane.xlu1 %3477  ;;  %v3510_v8 = vpop.xlane.xlu2 %3509 }
 0xb99   : > { %v3488_v5 = vmul.f32 %v3478_v39, %v8773_v28  ;;  %v3524_v33 = vmul.f32 %v3510_v8, %v8773_v28 }
 0xb9b   : > { %v5909_v60 = vpop.eup %5908  ;;  %v8160_v54 = vsub.f32 %v8058_v13, %v3488_v5  ;;  %v3532_v22 = vadd.f32 1e-05, %v3524_v33  ;;  %v4316_v5 = vsel %vm4308_vm8, 1, %v8778_v61 }
 0xb9c   : > { %v3540_v32 = vmul.f32 %v5909_v60, %v3531_v35  ;;  %vm3546_vm10 = vweird.f32 %v5909_v60  ;;  %v4298_v35 = vld [vmem:[%s6772_s14 + $0x8] sm:$0xff] }
 0xb9d   : > { %5910 = vrsqrt.f32 %v3532_v22  ;;  %v3504_v46 = vmul.f32 %v8160_v54, %v8160_v54  ;;  %vm3547_vm15 = vmor %vm3545_vm13, %vm3546_vm10  ;;  %vm3555_vm4 = vweird.f32 %v3532_v22  ;;  %vm4306_vm0 = vcmp.gt.f32.partialorder %v4298_v35, 0.5 }
 0xb9e   : > { %v3541_v53 = vmul.f32 %v5909_v60, %v3540_v32  ;;  %v4314_v57 = vsel %vm4306_vm0, 1, %v8778_v61 }
 0xb9f   : > { %3517 = vadd.xlane.f32.xlu2 %v3504_v46 }
 0xba0   : > { %v3542_v19 = vmul.f32 0.5, %v3541_v53 }
 0xba2   : > { %v3543_v42 = vsub.f32 1.5, %v3542_v19 }
 0xba3   : > { %v5911_v24 = vpop.eup %5910 }
 0xba4   : > { %v3544_v62 = vmul.f32 %v5909_v60, %v3543_v42  ;;  %v3550_v16 = vmul.f32 %v5911_v24, %v3532_v22  ;;  %vm3556_vm2 = vweird.f32 %v5911_v24 }
 0xba5   : > { %vm3557_vm5 = vmor %vm3555_vm4, %vm3556_vm2 }
 0xba6   : > { %v3551_v13 = vmul.f32 %v5911_v24, %v3550_v16  ;;  %v3548_v9 = vsel %vm3547_vm15, %v5909_v60, %v3544_v62  ;;  %v4303_v60 = vld [vmem:[%s6772_s14 + $0x30] sm:$0xff]  ;;  %s8243_s14 = scalar_lea.vmem [#allocation22], %s5391_s6 }
 0xba7   : > { %v3619_v18 = vmul.f32 %v3548_v9, %v8046_v48  ;;  %vm4311_vm6 = vcmp.gt.f32.partialorder %v4303_v60, 0.5  ;;  %v5456_v52 = vld [vmem:[%s8243_s14 + $0xf8] sm:$0xff]  ;;  %v5446_v60 = vld [vmem:[%s8243_s14 + $0xa8] sm:$0xff] }
 0xba8   : > { %v3552_v43 = vmul.f32 0.5, %v3551_v13  ;;  %4268 = vmatpush.bf16.msrb.mxu2 %v5456_v52 }
 0xba9   : > { %v3630_v58 = vmul.f32 %v8169_v44, %v3619_v18 }
 0xbaa   : > { %v3553_v4 = vsub.f32 1.5, %v3552_v43 }
 0xbab   : > { %v8181_v21 = vadd.f32 %v8175_v59, %v3630_v58 }
 0xbac   : > { %v3554_v14 = vmul.f32 %v5911_v24, %v3553_v4 }
 0xbae   : > { %v3558_v6 = vsel %vm3557_vm5, %v5911_v24, %v3554_v14  ;;  %v4319_v24 = vsel %vm4311_vm6, 1, %v8778_v61 }
 0xbaf   : > { %v3620_v55 = vmul.f32 %v3558_v6, %v8055_v1 }
 0xbb1   : > { %v3631_v56 = vmul.f32 %v8169_v44, %v3620_v55 }
 0xbb3   : > { %v8184_v48 = vadd.f32 %v8175_v59, %v3631_v56 }
 0xbb5   : > { %v3649_v23 = vpack.c.bf16 %v8184_v48, %v8181_v21 }
 0xbb7   : > { %4322 = vperm.xlu2 %5691, %v4313_v31   ;;  %3830 = vmatmul.bf16.vlgmr.msra.gmra.mxu3 %v3649_v23 }
 0xbb8   : > { %3859 = vmatmul.bf16.vlgmr.msrb.gmra.mxu0 %v3649_v23  ;;  %3888 = vmatmul.bf16.vlgmr.msra.gmra.mxu1 %v3649_v23 }
 0xbb9   : > { %3917 = vmatmul.bf16.vlgmr.msra.gmra.mxu2 %v3649_v23 }
 0xbbc   : > { %v3480_v1 = vpop.xlane.xlu1 %3479 }
 0xbbd   : > { %v3489_v63 = vmul.f32 %v3480_v1, %v8773_v28 }
 0xbbf   : > { %v8194_v25 = vsub.f32 %v8064_v30, %v3489_v63  ;;  %4334 = vperm.xlu2 %5691, %v4317_v49  }
 0xbc1   : > { %v3505_v20 = vmul.f32 %v8194_v25, %v8194_v25 }
 0xbc3   : > { %3519 = vadd.xlane.f32.xlu1 %v3505_v20 }
 0xbc4   : > { %v3482_v50 = vpop.xlane.xlu0 %3481 }
 0xbc5   : > { %v3490_v26 = vmul.f32 %v3482_v50, %v8773_v28 }
 0xbc7   : > { %v8201_v27 = vsub.f32 %v8068_v41, %v3490_v26  ;;  %4343 = vperm.xlu2 %5691, %v4320_v38  }
 0xbc9   : > { %v3506_v30 = vmul.f32 %v8201_v27, %v8201_v27 }
 0xbcb   : > { %3521 = vadd.xlane.f32.xlu0 %v3506_v30 }
 0xbd4   : > { %v3512_v17 = vpop.xlane.xlu2 %3511 }
 0xbd5   : > { %v3525_v3 = vmul.f32 %v3512_v17, %v8773_v28 }
 0xbd7   : > { %v3533_v29 = vadd.f32 1e-05, %v3525_v3 }
 0xbd9   : > { %5912 = vrsqrt.f32 %v3533_v29  ;;  %vm3565_vm12 = vweird.f32 %v3533_v29 }
 0xbdc   : > { %v3514_v41 = vpop.xlane.xlu1 %3513  ;;  %4325 = vperm.xlu1 %5690, %v4314_v57  }
 0xbdd   : > { %v3526_v34 = vmul.f32 %v3514_v41, %v8773_v28 }
 0xbdf   : > { %v5913_v7 = vpop.eup %5912  ;;  %v3534_v45 = vadd.f32 1e-05, %v3526_v34  ;;  %4328 = vperm.xlu0 %5692, %v4315_v37   ;;  %v5448_v34 = vld [vmem:[%s8243_s14 + $0xb8] sm:$0xff] }
 0xbe0   : > { %v3560_v10 = vmul.f32 %v5913_v7, %v3533_v29  ;;  %vm3566_vm9 = vweird.f32 %v5913_v7  ;;  %4239 = vmatpush.bf16.msrb.mxu1 %v5448_v34 }
 0xbe1   : > { %5914 = vrsqrt.f32 %v3534_v45  ;;  %vm3567_vm10 = vmor %vm3565_vm12, %vm3566_vm9  ;;  %vm3575_vm15 = vweird.f32 %v3534_v45 }
 0xbe2   : > { %v3561_v39 = vmul.f32 %v5913_v7, %v3560_v10  ;;  %v5447_v10 = vld [vmem:[%s8243_s14 + $0xb0] sm:$0xff] }
 0xbe4   : > { %v3562_v8 = vmul.f32 0.5, %v3561_v39  ;;  %4337 = vperm.xlu1 %5690, %v4318_v47   ;;  %v5455_v47 = vld [vmem:[%s8243_s14 + $0xf0] sm:$0xff]  ;;  %v5430_v39 = vld [vmem:[%s8243_s14 + $0x28] sm:$0xff]  ;;  %4240 = vmatpush.bf16.msrb.mxu1 %v5447_v10 }
 0xbe5   : > { %4269 = vmatpush.bf16.msrb.mxu2 %v5455_v47 }
 0xbe6   : > { %v3563_v33 = vsub.f32 1.5, %v3562_v8  ;;  %v5438_v8 = vld [vmem:[%s8243_s14 + $0x68] sm:$0xff] }
 0xbe7   : > { %v5915_v22 = vpop.eup %5914  ;;  %4331 = vperm.xlu0 %5692, %v4316_v5  }
 0xbe8   : > { %v3564_v32 = vmul.f32 %v5913_v7, %v3563_v33  ;;  %v3570_v46 = vmul.f32 %v5915_v22, %v3534_v45  ;;  %vm3576_vm13 = vweird.f32 %v5915_v22  ;;  %v5439_v45 = vld [vmem:[%s8243_s14 + $0x70] sm:$0xff]  ;;  %4241 = vmatpush.bf16.msrb.mxu1 %v5446_v60 }
 0xbe9   : > { %vm3577_vm2 = vmor %vm3575_vm15, %vm3576_vm13 }
 0xbea   : > { %v3571_v53 = vmul.f32 %v5915_v22, %v3570_v46  ;;  %v3568_v19 = vsel %vm3567_vm10, %v5913_v7, %v3564_v32  ;;  %v5431_v7 = vld [vmem:[%s8243_s14 + $0x30] sm:$0xff]  ;;  %v5429_v46 = vld [vmem:[%s8243_s14 + $0x20] sm:$0xff] }
 0xbeb   : > { %v3621_v16 = vmul.f32 %v3568_v19, %v8072_v11  ;;  %v5445_v19 = vld [vmem:[%s8243_s14 + $0xa0] sm:$0xff] }
 0xbec   : > { %v3572_v42 = vmul.f32 0.5, %v3571_v53  ;;  %v5437_v53 = vld [vmem:[%s8243_s14 + $0x60] sm:$0xff]  ;;  %4242 = vmatpush.bf16.msrb.mxu1 %v5445_v19 }
 0xbed   : > { %v3632_v4 = vmul.f32 %v8169_v44, %v3621_v16  ;;  %v5436_v16 = vld [vmem:[%s8243_s14 + $0x58] sm:$0xff] }
 0xbee   : > { %v3573_v62 = vsub.f32 1.5, %v3572_v42  ;;  %v5453_v42 = vld [vmem:[%s8243_s14 + $0xe0] sm:$0xff] }
 0xbef   : > { %4340 = vperm.xlu0 %5692, %v4319_v24   ;;  %v8222_v14 = vadd.f32 %v8175_v59, %v3632_v4 }
 0xbf0   : > { %v3574_v13 = vmul.f32 %v5915_v22, %v3573_v62  ;;  %v5428_v62 = vld [vmem:[%s8243_s14 + $0x18] sm:$0xff] }
 0xbf2   : > { %v3578_v9 = vsel %vm3577_vm2, %v5915_v22, %v3574_v13  ;;  %v5454_v22 = vld [vmem:[%s8243_s14 + $0xe8] sm:$0xff] }
 0xbf3   : > { %v3622_v43 = vmul.f32 %v3578_v9, %v8077_v12  ;;  %4270 = vmatpush.bf16.msrb.mxu2 %v5454_v22  ;;  %v5444_v9 = vld [vmem:[%s8243_s14 + $0x98] sm:$0xff] }
 0xbf4   : > { %4243 = vmatpush.bf16.msrb.mxu1 %v5444_v9 }
 0xbf5   : > { %v3633_v18 = vmul.f32 %v8169_v44, %v3622_v43  ;;  %v5452_v43 = vld [vmem:[%s8243_s14 + $0xd8] sm:$0xff] }
 0xbf7   : > { %v8225_v6 = vadd.f32 %v8175_v59, %v3633_v18  ;;  %4271 = vmatpush.bf16.msrb.mxu2 %v5453_v42 }
 0xbf9   : > { %v3650_v11 = vpack.c.bf16 %v8225_v6, %v8222_v14 }
 0xbfb   : > { %3835 = vmatmul.bf16.gmra.mxu3 %v3650_v11  ;;  %3864 = vmatmul.bf16.gmra.mxu0 %v3650_v11 }
 0xbfc   : > { %3893 = vmatmul.bf16.gmra.mxu1 %v3650_v11  ;;  %3922 = vmatmul.bf16.gmra.mxu2 %v3650_v11 }
 0xbfd   : > { %4272 = vmatpush.bf16.msrb.mxu2 %v5452_v43 }
 0xc0a   : > { %v3516_v36 = vpop.xlane.xlu0 %3515 }
 0xc0b   : > { %v3527_v12 = vmul.f32 %v3516_v36, %v8773_v28  ;;  %v5427_v36 = vld [vmem:[%s8243_s14 + $0x10] sm:$0xff] }
 0xc0d   : > { %v3535_v58 = vadd.f32 1e-05, %v3527_v12  ;;  %v5435_v12 = vld [vmem:[%s8243_s14 + $0x50] sm:$0xff] }
 0xc0f   : > { %5916 = vrsqrt.f32 %v3535_v58  ;;  %vm3585_vm5 = vweird.f32 %v3535_v58 }
 0xc12   : > { %v3518_v55 = vpop.xlane.xlu2 %3517 }
 0xc13   : > { %v3528_v56 = vmul.f32 %v3518_v55, %v8773_v28 }
 0xc15   : > { %v5917_v61 = vpop.eup %5916  ;;  %v3536_v31 = vadd.f32 1e-05, %v3528_v56  ;;  %v5426_v56 = vld [vmem:[%s8243_s14 + $0x8] sm:$0xff] }
 0xc16   : > { %v3580_v23 = vmul.f32 %v5917_v61, %v3535_v58  ;;  %vm3586_vm4 = vweird.f32 %v5917_v61  ;;  %v5451_v58 = vld [vmem:[%s8243_s14 + $0xd0] sm:$0xff] }
 0xc17   : > { %5918 = vrsqrt.f32 %v3536_v31  ;;  %vm3587_vm7 = vmor %vm3585_vm5, %vm3586_vm4  ;;  %vm3595_vm14 = vweird.f32 %v3536_v31  ;;  %4273 = vmatpush.bf16.msrb.mxu2 %v5451_v58 }
 0xc18   : > { %v3581_v0 = vmul.f32 %v5917_v61, %v3580_v23  ;;  %v5442_v23 = vld [vmem:[%s8243_s14 + $0x88] sm:$0xff] }
 0xc1a   : > { %v3582_v1 = vmul.f32 0.5, %v3581_v0  ;;  %v5450_v0 = vld [vmem:[%s8243_s14 + $0xc8] sm:$0xff] }
 0xc1b   : > { %4274 = vmatpush.bf16.msrb.mxu2 %v5450_v0 }
 0xc1c   : > { %v3583_v49 = vsub.f32 1.5, %v3582_v1 }
 0xc1d   : > { %v5919_v63 = vpop.eup %5918 }
 0xc1e   : > { %v3584_v2 = vmul.f32 %v5917_v61, %v3583_v49  ;;  %v3590_v20 = vmul.f32 %v5919_v63, %v3536_v31  ;;  %vm3596_vm11 = vweird.f32 %v5919_v63  ;;  %v5425_v49 = vld [vmem:[%s8243_s14] sm:$0xff] }
 0xc1f   : > { %vm3597_vm0 = vmor %vm3595_vm14, %vm3596_vm11 }
 0xc20   : > { %v3591_v50 = vmul.f32 %v5919_v63, %v3590_v20  ;;  %v3588_v38 = vsel %vm3587_vm7, %v5917_v61, %v3584_v2  ;;  %v5434_v61 = vld [vmem:[%s8243_s14 + $0x48] sm:$0xff] }
 0xc21   : > { %v3623_v35 = vmul.f32 %v3588_v38, %v8145_v40  ;;  %v5432_v40 = vld [vmem:[%s8243_s14 + $0x38] sm:$0xff]  ;;  %v5441_v38 = vld [vmem:[%s8243_s14 + $0x80] sm:$0xff] }
 0xc22   : > { %v3592_v26 = vmul.f32 0.5, %v3591_v50  ;;  %4181 = vmatpush.bf16.msrb.mxu3 %v5432_v40 }
 0xc23   : > { %v3634_v29 = vmul.f32 %v8169_v44, %v3623_v35 }
 0xc24   : > { %v3593_v30 = vsub.f32 1.5, %v3592_v26  ;;  %v5449_v26 = vld [vmem:[%s8243_s14 + $0xc0] sm:$0xff] }
 0xc25   : > { %v8236_v51 = vadd.f32 %v8175_v59, %v3634_v29  ;;  %4275 = vmatpush.bf16.msrb.mxu2 %v5449_v26 }
 0xc26   : > { %v3594_v17 = vmul.f32 %v5919_v63, %v3593_v30  ;;  %4182 = vmatpush.bf16.msrb.mxu3 %v5431_v7 }
 0xc28   : > { %v3598_v3 = vsel %vm3597_vm0, %v5919_v63, %v3594_v17  ;;  %v5433_v63 = vld [vmem:[%s8243_s14 + $0x40] sm:$0xff] }
 0xc29   : > { %v3624_v15 = vmul.f32 %v3598_v3, %v8160_v54  ;;  %v5440_v54 = vld [vmem:[%s8243_s14 + $0x78] sm:$0xff] }
 0xc2a   : > { %4210 = vmatpush.bf16.msra.mxu0 %v5440_v54  ;;  %4183 = vmatpush.bf16.msrb.mxu3 %v5430_v39 }
 0xc2b   : > { %v3635_v57 = vmul.f32 %v8169_v44, %v3624_v15 }
 0xc2d   : > { %v8239_v41 = vadd.f32 %v8175_v59, %v3635_v57 }
 0xc2e   : > { %4211 = vmatpush.bf16.msra.mxu0 %v5439_v45  ;;  %4184 = vmatpush.bf16.msrb.mxu3 %v5429_v46 }
 0xc2f   : > { %v3651_v37 = vpack.c.bf16 %v8239_v41, %v8236_v51 }
 0xc31   : > { %3840 = vmatmul.bf16.gmra.mxu3 %v3651_v37  ;;  %3869 = vmatmul.bf16.gmra.mxu0 %v3651_v37 }
 0xc32   : > { %3898 = vmatmul.bf16.gmra.mxu1 %v3651_v37  ;;  %3927 = vmatmul.bf16.gmra.mxu2 %v3651_v37 }
 0xc33   : > { %4212 = vmatpush.bf16.msra.mxu0 %v5438_v8  ;;  %4185 = vmatpush.bf16.msrb.mxu3 %v5428_v62 }
 0xc35   : > { %v3860_v37 = vpop.f32.mrf.mxu0  ;;  %v3889_v52 = vpop.f32.mrf.mxu1 }
 0xc36   : > { %v3520_v5 = vpop.xlane.xlu1 %3519 }
 0xc37   : > { %v3529_v33 = vmul.f32 %v3520_v5, %v8773_v28  ;;  %4213 = vmatpush.bf16.msra.mxu0 %v5437_v53  ;;  %4186 = vmatpush.bf16.msrb.mxu3 %v5427_v36 }
 0xc39   : > { %v3537_v32 = vadd.f32 1e-05, %v3529_v33 }
 0xc3a   : > { %v3831_v34 = vpop.f32.mrf.mxu3 }
 0xc3b   : > { %5920 = vrsqrt.f32 %v3537_v32  ;;  %4214 = vmatpush.bf16.msra.mxu0 %v5436_v16  ;;  %4187 = vmatpush.bf16.msrb.mxu3 %v5426_v56  ;;  %vm3605_vm3 = vweird.f32 %v3537_v32 }
 0xc3c   : > { %v3918_v7 = vpop.f32.mrf.mxu2 }
 0xc3d   : > { %v3862_v39 = vpop.f32.mrf.mxu0  ;;  %v3891_v33 = vpop.f32.mrf.mxu1 }
 0xc3e   : > { %v3522_v24 = vpop.xlane.xlu0 %3521 }
 0xc3f   : > { %v3530_v13 = vmul.f32 %v3522_v24, %v8773_v28  ;;  %v5443_v28 = vld [vmem:[%s8243_s14 + $0x90] sm:$0xff]  ;;  %4215 = vmatpush.bf16.msra.mxu0 %v5435_v12  ;;  %4188 = vmatpush.bf16.msrb.mxu3 %v5425_v49 }
 0xc40   : > { %4244 = vmatpush.bf16.msrb.mxu1 %v5443_v28 }
 0xc41   : > { %v5921_v4 = vpop.eup %5920  ;;  %v3538_v18 = vadd.f32 1e-05, %v3530_v13 }
 0xc42   : > { %v3600_v11 = vmul.f32 %v5921_v4, %v3537_v32  ;;  %vm3606_vm1 = vweird.f32 %v5921_v4  ;;  %v3833_v8 = vpop.f32.mrf.mxu3 }
 0xc43   : > { %5922 = vrsqrt.f32 %v3538_v18  ;;  %4216 = vmatpush.bf16.msra.mxu0 %v5434_v61  ;;  %vm3607_vm8 = vmor %vm3605_vm3, %vm3606_vm1  ;;  %vm3615_vm6 = vweird.f32 %v3538_v18 }
 0xc44   : > { %v3601_v55 = vmul.f32 %v5921_v4, %v3600_v11  ;;  %4245 = vmatpush.bf16.msrb.mxu1 %v5442_v23  ;;  %v3920_v60 = vpop.f32.mrf.mxu2 }
 0xc46   : > { %v3602_v31 = vmul.f32 0.5, %v3601_v55 }
 0xc47   : > { %4217 = vmatpush.bf16.msra.mxu0 %v5433_v63 }
 0xc48   : > { %v3603_v1 = vsub.f32 1.5, %v3602_v31  ;;  %4246 = vmatpush.bf16.msrb.mxu1 %v5441_v38 }
 0xc49   : > { %v5923_v2 = vpop.eup %5922 }
 0xc4a   : > { %v3604_v20 = vmul.f32 %v5921_v4, %v3603_v1  ;;  %v3610_v50 = vmul.f32 %v5923_v2, %v3538_v18  ;;  %vm3616_vm9 = vweird.f32 %v5923_v2 }
 0xc4b   : > { %vm3617_vm12 = vmor %vm3615_vm6, %vm3616_vm9 }
 0xc4c   : > { %v3611_v30 = vmul.f32 %v5923_v2, %v3610_v50  ;;  %v3608_v35 = vsel %vm3607_vm8, %v5921_v4, %v3604_v20 }
 0xc4d   : > { %v3625_v15 = vmul.f32 %v3608_v35, %v8194_v25 }
 0xc4e   : > { %v3612_v17 = vmul.f32 0.5, %v3611_v30 }
 0xc4f   : > { %v3636_v54 = vmul.f32 %v8169_v44, %v3625_v15 }
 0xc50   : > { %v3613_v3 = vsub.f32 1.5, %v3612_v17 }
 0xc51   : > { %v8287_v10 = vadd.f32 %v8175_v59, %v3636_v54 }
 0xc52   : > { %v3614_v29 = vmul.f32 %v5923_v2, %v3613_v3 }
 0xc54   : > { %v3618_v57 = vsel %vm3617_vm12, %v5923_v2, %v3614_v29 }
 0xc55   : > { %v3626_v40 = vmul.f32 %v3618_v57, %v8201_v27  ;;  %v1437_v27 = vld [vmem:[%s1436_s24] sm:$0xf] }
 0xc56   : > { %v8294_v5 = vperm.slane %v1437_v27, 1  ;;  %v8298_v22 = vperm.slane %v1437_v27, 2 }
 0xc57   : > { %v3637_v45 = vmul.f32 %v8169_v44, %v3626_v40  ;;  %v8296_v44 = vperm.slane %v1437_v27, 0 }
 0xc58   : > { %v3863_v32 = vadd.f32 %v3862_v39, %v8294_v5  ;;  %v3892_v53 = vadd.f32 %v3891_v33, %v8298_v22  ;;  %v3861_v42 = vadd.f32 %v3860_v37, %v8294_v5  ;;  %v3890_v62 = vadd.f32 %v3889_v52, %v8298_v22 }
 0xc59   : > { %v8290_v25 = vadd.f32 %v8175_v59, %v3637_v45  ;;  %v8300_v59 = vperm.slane %v1437_v27, 3  ;;  %v3834_v46 = vadd.f32 %v3833_v8, %v8296_v44  ;;  %v3832_v24 = vadd.f32 %v3831_v34, %v8296_v44 }
 0xc5a   : > { %v3943_v13 = vmax.f32 %v3863_v32, 0.0  ;;  %v3944_v43 = vmax.f32 %v3892_v53, 0.0  ;;  %v3939_v18 = vmax.f32 %v3861_v42, 0.0  ;;  %v3940_v36 = vmax.f32 %v3890_v62, 0.0 }
 0xc5b   : > { %v3652_v47 = vpack.c.bf16 %v8290_v25, %v8287_v10  ;;  %v3921_v19 = vadd.f32 %v3920_v60, %v8300_v59  ;;  %v3919_v16 = vadd.f32 %v3918_v7, %v8300_v59  ;;  %v3942_v9 = vmax.f32 %v3834_v46, 0.0 }
 0xc5c   : > { %v3938_v11 = vmax.f32 %v3832_v24, 0.0  ;;  %v3971_v28 = vpack.c.bf16 %v3943_v13, %v3939_v18  ;;  %v3972_v55 = vpack.c.bf16 %v3944_v43, %v3940_v36 }
 0xc5d   : > { %3845 = vmatmul.bf16.gmra.mxu3 %v3652_v47  ;;  %3874 = vmatmul.bf16.gmra.mxu0 %v3652_v47  ;;  %v3945_v4 = vmax.f32 %v3921_v19, 0.0  ;;  %v3941_v12 = vmax.f32 %v3919_v16, 0.0 }
 0xc5e   : > { %3903 = vmatmul.bf16.gmra.mxu1 %v3652_v47  ;;  %3932 = vmatmul.bf16.gmra.mxu2 %v3652_v47  ;;  %v3970_v58 = vpack.c.bf16 %v3942_v9, %v3938_v11 }
 0xc5f   : > { %v3973_v56 = vpack.c.bf16 %v3945_v4, %v3941_v12 }
 0xc6d   : > { %4189 = vmatmul.bf16.vlgmr.msrb.gmra.mxu3 %v3970_v58  ;;  %4218 = vmatmul.bf16.vlgmr.msra.gmra.mxu0 %v3971_v28 }
 0xc6e   : > { %4247 = vmatmul.bf16.vlgmr.msrb.gmra.mxu1 %v3972_v55  ;;  %4276 = vmatmul.bf16.vlgmr.msrb.gmra.mxu2 %v3973_v56 }
 0xc78   : > { %v3865_v61 = vpop.f32.mrf.mxu0 }
 0xc79   : > { %v3894_v31 = vpop.f32.mrf.mxu1  ;;  %v3866_v0 = vadd.f32 %v3865_v61, %v8294_v5 }
 0xc7a   : > { %v3895_v49 = vadd.f32 %v3894_v31, %v8298_v22 }
 0xc7b   : > { %v3947_v38 = vmax.f32 %v3866_v0, 0.0 }
 0xc7c   : > { %v3948_v30 = vmax.f32 %v3895_v49, 0.0 }
 0xc7e   : > { %v3836_v23 = vpop.f32.mrf.mxu3 }
 0xc7f   : > { %v3923_v1 = vpop.f32.mrf.mxu2  ;;  %v3837_v17 = vadd.f32 %v3836_v23, %v8296_v44 }
 0xc80   : > { %v3867_v63 = vpop.f32.mrf.mxu0  ;;  %v3924_v15 = vadd.f32 %v3923_v1, %v8300_v59 }
 0xc81   : > { %v3868_v2 = vadd.f32 %v3867_v63, %v8294_v5  ;;  %v3896_v20 = vpop.f32.mrf.mxu1  ;;  %v3946_v34 = vmax.f32 %v3837_v17, 0.0 }
 0xc82   : > { %v3897_v50 = vadd.f32 %v3896_v20, %v8298_v22  ;;  %v3949_v7 = vmax.f32 %v3924_v15, 0.0 }
 0xc83   : > { %v3951_v26 = vmax.f32 %v3868_v2, 0.0 }
 0xc84   : > { %v3952_v35 = vmax.f32 %v3897_v50, 0.0 }
 0xc85   : > { %v3975_v3 = vpack.c.bf16 %v3951_v26, %v3947_v38 }
 0xc86   : > { %v3976_v29 = vpack.c.bf16 %v3952_v35, %v3948_v30  ;;  %v3838_v57 = vpop.f32.mrf.mxu3 }
 0xc87   : > { %v3839_v40 = vadd.f32 %v3838_v57, %v8296_v44  ;;  %v3925_v54 = vpop.f32.mrf.mxu2  ;;  %4223 = vmatmul.bf16.gmra.mxu0 %v3975_v3 }
 0xc88   : > { %v3926_v37 = vadd.f32 %v3925_v54, %v8300_v59  ;;  %4252 = vmatmul.bf16.gmra.mxu1 %v3976_v29 }
 0xc89   : > { %v3950_v52 = vmax.f32 %v3839_v40, 0.0 }
 0xc8a   : > { %v3953_v45 = vmax.f32 %v3926_v37, 0.0 }
 0xc8b   : > { %v3974_v47 = vpack.c.bf16 %v3950_v52, %v3946_v34 }
 0xc8c   : > { %v3977_v27 = vpack.c.bf16 %v3953_v45, %v3949_v7 }
 0xc8d   : > { %4194 = vmatmul.bf16.gmra.mxu3 %v3974_v47 }
 0xc8e   : > { %4281 = vmatmul.bf16.gmra.mxu2 %v3977_v27 }
 0xcae   : > { %v3870_v39 = vpop.f32.mrf.mxu0 }
 0xcaf   : > { %v3899_v8 = vpop.f32.mrf.mxu1  ;;  %v3871_v60 = vadd.f32 %v3870_v39, %v8294_v5 }
 0xcb0   : > { %v3900_v46 = vadd.f32 %v3899_v8, %v8298_v22  ;;  %v8337_v8 = vld [vmem:[%s1504_s11] ss:$0 sm:$0xff] }
 0xcb1   : > { %v3955_v62 = vmax.f32 %v3871_v60, 0.0 }
 0xcb2   : > { %v3956_v13 = vmax.f32 %v3900_v46, 0.0 }
 0xcb4   : > { %v3841_v33 = vpop.f32.mrf.mxu3 }
 0xcb5   : > { %v3928_v32 = vpop.f32.mrf.mxu2  ;;  %v3842_v43 = vadd.f32 %v3841_v33, %v8296_v44 }
 0xcb6   : > { %v3872_v53 = vpop.f32.mrf.mxu0  ;;  %v3929_v18 = vadd.f32 %v3928_v32, %v8300_v59 }
 0xcb7   : > { %v3873_v19 = vadd.f32 %v3872_v53, %v8294_v5  ;;  %v3901_v42 = vpop.f32.mrf.mxu1  ;;  %v3954_v55 = vmax.f32 %v3842_v43, 0.0 }
 0xcb8   : > { %v3902_v24 = vadd.f32 %v3901_v42, %v8298_v22  ;;  %v3957_v61 = vmax.f32 %v3929_v18, 0.0 }
 0xcb9   : > { %v3959_v16 = vmax.f32 %v3873_v19, 0.0 }
 0xcba   : > { %v3960_v9 = vmax.f32 %v3902_v24, 0.0 }
 0xcbb   : > { %v3979_v4 = vpack.c.bf16 %v3959_v16, %v3955_v62 }
 0xcbc   : > { %v3980_v11 = vpack.c.bf16 %v3960_v9, %v3956_v13  ;;  %v3843_v36 = vpop.f32.mrf.mxu3 }
 0xcbd   : > { %v3844_v12 = vadd.f32 %v3843_v36, %v8296_v44  ;;  %v3930_v28 = vpop.f32.mrf.mxu2  ;;  %4228 = vmatmul.bf16.gmra.mxu0 %v3979_v4 }
 0xcbe   : > { %v3931_v58 = vadd.f32 %v3930_v28, %v8300_v59  ;;  %4257 = vmatmul.bf16.gmra.mxu1 %v3980_v11  ;;  %v4326_v11 = vpop.permute.xlu1 %4325 }
 0xcbf   : > { %v3958_v56 = vmax.f32 %v3844_v12, 0.0  ;;  %vm4346_vm13 = vcmp.eq.s32.totalorder %v4326_v11, 1 }
 0xcc0   : > { %v3961_v31 = vmax.f32 %v3931_v58, 0.0 }
 0xcc1   : > { %v3978_v23 = vpack.c.bf16 %v3958_v56, %v3954_v55 }
 0xcc2   : > { %v3981_v0 = vpack.c.bf16 %v3961_v31, %v3957_v61 }
 0xcc3   : > { %4199 = vmatmul.bf16.gmra.mxu3 %v3978_v23  ;;  %v4329_v23 = vpop.permute.xlu0 %4328 }
 0xcc4   : > { %4286 = vmatmul.bf16.gmra.mxu2 %v3981_v0  ;;  %vm4347_vm15 = vcmp.eq.s32.totalorder %v4329_v23, 1 }
 0xcda   : > { %v3875_v1 = vpop.f32.mrf.mxu0 }
 0xcdb   : > { %v3904_v49 = vpop.f32.mrf.mxu1  ;;  %v3876_v2 = vadd.f32 %v3875_v1, %v8294_v5 }
 0xcdc   : > { %v3905_v50 = vadd.f32 %v3904_v49, %v8298_v22 }
 0xcdd   : > { %v3963_v17 = vmax.f32 %v3876_v2, 0.0 }
 0xcde   : > { %v3964_v15 = vmax.f32 %v3905_v50, 0.0 }
 0xce0   : > { %v3846_v63 = vpop.f32.mrf.mxu3 }
 0xce1   : > { %v3933_v20 = vpop.f32.mrf.mxu2  ;;  %v3847_v57 = vadd.f32 %v3846_v63, %v8296_v44 }
 0xce2   : > { %v3877_v38 = vpop.f32.mrf.mxu0  ;;  %v3934_v54 = vadd.f32 %v3933_v20, %v8300_v59 }
 0xce3   : > { %v3878_v26 = vadd.f32 %v3877_v38, %v8294_v5  ;;  %v3906_v30 = vpop.f32.mrf.mxu1 }
 0xce4   : > { %v3907_v35 = vadd.f32 %v3906_v30, %v8298_v22  ;;  %v3962_v22 = vmax.f32 %v3847_v57, 0.0  ;;  %v3965_v47 = vmax.f32 %v3934_v54, 0.0 }
 0xce5   : > { %v3967_v3 = vmax.f32 %v3878_v26, 0.0 }
 0xce6   : > { %v3968_v29 = vmax.f32 %v3907_v35, 0.0  ;;  %v4332_v35 = vpop.permute.xlu0 %4331 }
 0xce7   : > { %v3983_v40 = vpack.c.bf16 %v3967_v3, %v3963_v17  ;;  %vm4348_vm2 = vcmp.eq.s32.totalorder %v4332_v35, 1 }
 0xce8   : > { %v3984_v37 = vpack.c.bf16 %v3968_v29, %v3964_v15  ;;  %v3848_v34 = vpop.f32.mrf.mxu3 }
 0xce9   : > { %v3849_v52 = vadd.f32 %v3848_v34, %v8296_v44  ;;  %v3935_v7 = vpop.f32.mrf.mxu2  ;;  %4233 = vmatmul.bf16.gmra.mxu0 %v3983_v40 }
 0xcea   : > { %v3936_v5 = vadd.f32 %v3935_v7, %v8300_v59  ;;  %4262 = vmatmul.bf16.gmra.mxu1 %v3984_v37  ;;  %v4219_v60 = vpop.f32.mrf.mxu0  ;;  %v4323_v59 = vpop.permute.xlu2 %4322 }
 0xceb   : > { %v3966_v45 = vmax.f32 %v3849_v52, 0.0  ;;  %v4248_v46 = vpop.f32.mrf.mxu1  ;;  %vm4345_vm10 = vcmp.eq.s32.totalorder %v4323_v59, 1 }
 0xcec   : > { %v3969_v27 = vmax.f32 %v3936_v5, 0.0 }
 0xced   : > { %v3982_v39 = vpack.c.bf16 %v3966_v45, %v3962_v22 }
 0xcee   : > { %v3985_v33 = vpack.c.bf16 %v3969_v27, %v3965_v47 }
 0xcef   : > { %4204 = vmatmul.bf16.gmra.mxu3 %v3982_v39 }
 0xcf0   : > { %4291 = vmatmul.bf16.gmra.mxu2 %v3985_v33  ;;  %v4190_v32 = vpop.f32.mrf.mxu3 }
 0xcf1   : > { %v4191_v44 = vadd.f32 %v8337_v8, %v4190_v32  ;;  %v4277_v19 = vpop.f32.mrf.mxu2  ;;  %v4338_v32 = vpop.permute.xlu1 %4337 }
 0xcf2   : > { %v4221_v43 = vpop.f32.mrf.mxu0  ;;  %v4335_v7 = vpop.permute.xlu2 %4334  ;;  %vm4350_vm5 = vcmp.eq.s32.totalorder %v4338_v32, 1 }
 0xcf3   : > { %v4220_v53 = vadd.f32 %v4219_v60, %v4191_v44  ;;  %v4250_v18 = vpop.f32.mrf.mxu1  ;;  %vm4349_vm4 = vcmp.eq.s32.totalorder %v4335_v7, 1 }
 0xcf5   : > { %v4249_v42 = vadd.f32 %v4248_v46, %v4220_v53 }
 0xcf7   : > { %v4278_v24 = vadd.f32 %v4277_v19, %v4249_v42 }
 0xcf8   : > { %v4192_v62 = vpop.f32.mrf.mxu3 }
 0xcf9   : > { %v4353_v16 = vsel %vm4345_vm10, 0.0, %v4278_v24  ;;  %v4193_v13 = vadd.f32 %v8337_v8, %v4192_v62  ;;  %v4279_v12 = vpop.f32.mrf.mxu2 }
 0xcfa   : > { %v8342_v9 = vadd.f32 %v4353_v16, %v8181_v21 }
 0xcfb   : > { %v4222_v4 = vadd.f32 %v4221_v43, %v4193_v13  ;;  %v4341_v43 = vpop.permute.xlu0 %4340 }
 0xcfc   : > { %4369 = vst [vmem:[#allocation2 + $0x30] sm:$0xff] %v8342_v9  ;;  %vm4351_vm7 = vcmp.eq.s32.totalorder %v4341_v43, 1 }
 0xcfd   : > { %v4251_v36 = vadd.f32 %v4250_v18, %v4222_v4 }
 0xcff   : > { %v4280_v28 = vadd.f32 %v4279_v12, %v4251_v36 }
 0xd01   : > { %v4354_v58 = vsel %vm4346_vm13, 0.0, %v4280_v28 }
 0xd02   : > { %v8346_v55 = vadd.f32 %v4354_v58, %v8184_v48 }
 0xd04   : > { %4370 = vst [vmem:[#allocation2] sm:$0xff] %v8346_v55  ;;  %v4224_v56 = vpop.f32.mrf.mxu0 }
 0xd05   : > { %v4253_v31 = vpop.f32.mrf.mxu1 }
 0xd0c   : > { %v4226_v38 = vpop.f32.mrf.mxu0 }
 0xd0d   : > { %v4255_v30 = vpop.f32.mrf.mxu1 }
 0xd10   : > { %v4195_v61 = vpop.f32.mrf.mxu3 }
 0xd11   : > { %v4196_v21 = vadd.f32 %v8337_v8, %v4195_v61  ;;  %v4282_v1 = vpop.f32.mrf.mxu2  ;;  %v4344_v61 = vpop.permute.xlu2 %4343 }
 0xd12   : > { %vm4352_vm11 = vcmp.eq.s32.totalorder %v4344_v61, 1 }
 0xd13   : > { %v4225_v0 = vadd.f32 %v4224_v56, %v4196_v21 }
 0xd15   : > { %v4254_v49 = vadd.f32 %v4253_v31, %v4225_v0 }
 0xd17   : > { %v4283_v63 = vadd.f32 %v4282_v1, %v4254_v49 }
 0xd18   : > { %v4197_v2 = vpop.f32.mrf.mxu3 }
 0xd19   : > { %v4355_v20 = vsel %vm4347_vm15, 0.0, %v4283_v63  ;;  %v4198_v50 = vadd.f32 %v8337_v8, %v4197_v2  ;;  %v4284_v3 = vpop.f32.mrf.mxu2 }
 0xd1a   : > { %v8352_v48 = vadd.f32 %v4355_v20, %v8222_v14 }
 0xd1b   : > { %v4227_v26 = vadd.f32 %v4226_v38, %v4198_v50 }
 0xd1c   : > { %4371 = vst [vmem:[#allocation2 + $0x18] sm:$0xff] %v8352_v48 }
 0xd1d   : > { %v4256_v17 = vadd.f32 %v4255_v30, %v4227_v26 }
 0xd1f   : > { %v4285_v15 = vadd.f32 %v4284_v3, %v4256_v17 }
 0xd21   : > { %v4356_v29 = vsel %vm4348_vm2, 0.0, %v4285_v15 }
 0xd22   : > { %v8356_v57 = vadd.f32 %v4356_v29, %v8225_v6 }
 0xd24   : > { %4372 = vst [vmem:[#allocation2 + $0x10] sm:$0xff] %v8356_v57 }
 0xd3a   : > { %v4229_v40 = vpop.f32.mrf.mxu0 }
 0xd3b   : > { %v4258_v37 = vpop.f32.mrf.mxu1 }
 0xd42   : > { %v4231_v39 = vpop.f32.mrf.mxu0 }
 0xd43   : > { %v4260_v60 = vpop.f32.mrf.mxu1 }
 0xd46   : > { %v4200_v54 = vpop.f32.mrf.mxu3 }
 0xd47   : > { %v4201_v14 = vadd.f32 %v8337_v8, %v4200_v54  ;;  %v4287_v52 = vpop.f32.mrf.mxu2 }
 0xd49   : > { %v4230_v34 = vadd.f32 %v4229_v40, %v4201_v14 }
 0xd4b   : > { %v4259_v5 = vadd.f32 %v4258_v37, %v4230_v34 }
 0xd4d   : > { %v4288_v22 = vadd.f32 %v4287_v52, %v4259_v5 }
 0xd4e   : > { %v4202_v45 = vpop.f32.mrf.mxu3 }
 0xd4f   : > { %v4357_v47 = vsel %vm4349_vm4, 0.0, %v4288_v22  ;;  %v4203_v27 = vadd.f32 %v8337_v8, %v4202_v45  ;;  %v4289_v46 = vpop.f32.mrf.mxu2 }
 0xd50   : > { %v8362_v6 = vadd.f32 %v4357_v47, %v8236_v51 }
 0xd51   : > { %v4232_v33 = vadd.f32 %v4231_v39, %v4203_v27 }
 0xd52   : > { %4373 = vst [vmem:[#allocation2 + $0x8] sm:$0xff] %v8362_v6 }
 0xd53   : > { %v4261_v44 = vadd.f32 %v4260_v60, %v4232_v33 }
 0xd55   : > { %v4290_v53 = vadd.f32 %v4289_v46, %v4261_v44 }
 0xd57   : > { %v4358_v19 = vsel %vm4350_vm5, 0.0, %v4290_v53 }
 0xd58   : > { %v4366_v59 = vadd.f32 %v4358_v19, %v8239_v41 }
 0xd5a   : > { %4374 = vst [vmem:[#allocation2 + $0x20] sm:$0xff] %v4366_v59 }
 0xd66   : > { %v4234_v42 = vpop.f32.mrf.mxu0 }
 0xd67   : > { %v4263_v16 = vpop.f32.mrf.mxu1 }
 0xd6e   : > { %v4236_v28 = vpop.f32.mrf.mxu0 }
 0xd6f   : > { %v4265_v56 = vpop.f32.mrf.mxu1 }
 0xd72   : > { %v4205_v24 = vpop.f32.mrf.mxu3 }
 0xd73   : > { %v4206_v62 = vadd.f32 %v8337_v8, %v4205_v24  ;;  %v4292_v13 = vpop.f32.mrf.mxu2 }
 0xd75   : > { %v4235_v51 = vadd.f32 %v4234_v42, %v4206_v62 }
 0xd77   : > { %v4264_v4 = vadd.f32 %v4263_v16, %v4235_v51 }
 0xd79   : > { %v4293_v18 = vadd.f32 %v4292_v13, %v4264_v4 }
 0xd7a   : > { %v4207_v11 = vpop.f32.mrf.mxu3 }
 0xd7b   : > { %v4359_v36 = vsel %vm4351_vm7, 0.0, %v4293_v18  ;;  %v4208_v12 = vadd.f32 %v8337_v8, %v4207_v11  ;;  %v4294_v31 = vpop.f32.mrf.mxu2 }
 0xd7c   : > { %v4367_v58 = vadd.f32 %v4359_v36, %v8287_v10 }
 0xd7d   : > { %v4237_v41 = vadd.f32 %v4236_v28, %v4208_v12 }
 0xd7e   : > { %4375 = vst [vmem:[#allocation2 + $0x28] sm:$0xff] %v4367_v58 }
 0xd7f   : > { %v4266_v21 = vadd.f32 %v4265_v56, %v4237_v41 }
 0xd81   : > { %v4295_v23 = vadd.f32 %v4294_v31, %v4266_v21 }
 0xd82   : > { %4380 = sbr.rel (%p5346_p4) target bundleno = 3771 (0xebb), region = 140 }
 0xd83   : > { %v4360_v0 = vsel %vm4352_vm11, 0.0, %v4295_v23 }
 0xd84   : > { %v4368_v1 = vadd.f32 %v4360_v0, %v8290_v25 }
 0xd86   : > { %4376 = vst [vmem:[#allocation2 + $0x38] sm:$0xff] %v4368_v1 }
 0xd87   : > { %4391 = vadd.xlane.f32.xlu2 %v8362_v6  ;;  %4387 = vadd.xlane.f32.xlu1 %v8352_v48  ;;  %v8779_v25 = vld [vmem:[#allocation39_spill] sm:$0xff] }
 0xd88   : > { %4383 = vadd.xlane.f32.xlu0 %v8342_v9 }
 0xd8f   : > { %4393 = vadd.xlane.f32.xlu2 %v4366_v59  ;;  %4389 = vadd.xlane.f32.xlu1 %v8356_v57 }
 0xd90   : > { %4385 = vadd.xlane.f32.xlu0 %v8346_v55 }
 0xd97   : > { %4397 = vadd.xlane.f32.xlu1 %v4368_v1 }
 0xd98   : > { %4395 = vadd.xlane.f32.xlu0 %v4367_v58 }
 0xdfa   : > { %v4392_v10 = vpop.xlane.xlu2 %4391  ;;  %v4388_v8 = vpop.xlane.xlu1 %4387 }
 0xdfb   : > { %v4401_v49 = vmul.f32 %v4388_v8, %v8779_v25  ;;  %v4384_v63 = vpop.xlane.xlu0 %4383  ;;  %v4403_v40 = vmul.f32 %v4392_v10, %v8779_v25 }
 0xdfc   : > { %v4399_v2 = vmul.f32 %v4384_v63, %v8779_v25  ;;  %v6437_v63 = vmov 16.0  }
 0xdfd   : > { %v8379_v20 = vsub.f32 %v8352_v48, %v4401_v49  ;;  %v8407_v52 = vsub.f32 %v8362_v6, %v4403_v40 }
 0xdfe   : > { %v8382_v50 = vsub.f32 %v8342_v9, %v4399_v2 }
 0xdff   : > { %v4417_v38 = vmul.f32 %v8379_v20, %v8379_v20  ;;  %v4419_v22 = vmul.f32 %v8407_v52, %v8407_v52 }
 0xe00   : > { %v4415_v26 = vmul.f32 %v8382_v50, %v8382_v50 }
 0xe01   : > { %4427 = vadd.xlane.f32.xlu1 %v4417_v38 }
 0xe02   : > { %4423 = vadd.xlane.f32.xlu2 %v4415_v26  ;;  %v4394_v30 = vpop.xlane.xlu2 %4393  ;;  %v4390_v35 = vpop.xlane.xlu1 %4389 }
 0xe03   : > { %v4404_v17 = vmul.f32 %v4394_v30, %v8779_v25  ;;  %v4402_v3 = vmul.f32 %v4390_v35, %v8779_v25  ;;  %v4386_v15 = vpop.xlane.xlu0 %4385 }
 0xe04   : > { %v4400_v48 = vmul.f32 %v4386_v15, %v8779_v25 }
 0xe05   : > { %v8391_v29 = vsub.f32 %v4366_v59, %v4404_v17  ;;  %v8394_v9 = vsub.f32 %v8356_v57, %v4402_v3 }
 0xe06   : > { %v8398_v54 = vsub.f32 %v8346_v55, %v4400_v48 }
 0xe07   : > { %v4420_v14 = vmul.f32 %v8391_v29, %v8391_v29  ;;  %v4418_v37 = vmul.f32 %v8394_v9, %v8394_v9 }
 0xe08   : > { %v4416_v34 = vmul.f32 %v8398_v54, %v8398_v54 }
 0xe09   : > { %4433 = vadd.xlane.f32.xlu1 %v4420_v14 }
 0xe0a   : > { %4429 = vadd.xlane.f32.xlu2 %v4418_v37  ;;  %4425 = vadd.xlane.f32.xlu0 %v4416_v34  ;;  %v4398_v7 = vpop.xlane.xlu1 %4397 }
 0xe0b   : > { %v4396_v57 = vpop.xlane.xlu0 %4395  ;;  %v4406_v45 = vmul.f32 %v4398_v7, %v8779_v25 }
 0xe0c   : > { %v4405_v55 = vmul.f32 %v4396_v57, %v8779_v25 }
 0xe0d   : > { %v8417_v27 = vsub.f32 %v4368_v1, %v4406_v45 }
 0xe0e   : > { %v8410_v5 = vsub.f32 %v4367_v58, %v4405_v55 }
 0xe0f   : > { %v4422_v39 = vmul.f32 %v8417_v27, %v8417_v27 }
 0xe10   : > { %v4421_v47 = vmul.f32 %v8410_v5, %v8410_v5 }
 0xe12   : > { %4431 = vadd.xlane.f32.xlu0 %v4419_v22  ;;  %4435 = vadd.xlane.f32.xlu2 %v4421_v47 }
 0xe1a   : > { %4437 = vadd.xlane.f32.xlu0 %v4422_v39  ;;  %v8464_v39 = vld [vmem:[%s8784_s8] ss:$0 sm:$0xff] }
 0xe74   : > { %v4428_v6 = vpop.xlane.xlu1 %4427 }
 0xe75   : > { %v4441_v33 = vmul.f32 %v4428_v6, %v8779_v25  ;;  %v4424_v60 = vpop.xlane.xlu2 %4423 }
 0xe76   : > { %v4439_v32 = vmul.f32 %v4424_v60, %v8779_v25 }
 0xe77   : > { %v4449_v44 = vadd.f32 1e-05, %v4441_v33 }
 0xe78   : > { %v4447_v46 = vadd.f32 1e-05, %v4439_v32 }
 0xe79   : > { %5926 = vrsqrt.f32 %v4449_v44  ;;  %vm4481_vm14 = vweird.f32 %v4449_v44 }
 0xe7a   : > { %5928 = vrsqrt.f32 %v4447_v46  ;;  %vm4461_vm8 = vweird.f32 %v4447_v46 }
 0xe7c   : > { %v4434_v53 = vpop.xlane.xlu1 %4433 }
 0xe7d   : > { %v4444_v19 = vmul.f32 %v4434_v53, %v8779_v25  ;;  %v4430_v59 = vpop.xlane.xlu2 %4429  ;;  %v4426_v42 = vpop.xlane.xlu0 %4425 }
 0xe7e   : > { %v4442_v24 = vmul.f32 %v4430_v59, %v8779_v25  ;;  %v4440_v62 = vmul.f32 %v4426_v42, %v8779_v25  ;;  %v8482_v59 = vld [vmem:[%s8785_s25] ss:$0 sm:$0xff] }
 0xe7f   : > { %v5927_v16 = vpop.eup %5926  ;;  %v8426_v51 = vadd.f32 1e-05, %v4444_v19 }
 0xe80   : > { %v5929_v13 = vpop.eup %5928  ;;  %v4476_v43 = vmul.f32 %v5927_v16, %v4449_v44  ;;  %v4450_v4 = vadd.f32 1e-05, %v4442_v24  ;;  %v8428_v18 = vadd.f32 1e-05, %v4440_v62  ;;  %vm4482_vm0 = vweird.f32 %v5927_v16 }
 0xe81   : > { %v4456_v11 = vmul.f32 %v5929_v13, %v4447_v46  ;;  %5930 = vrsqrt.f32 %v8426_v51  ;;  %vm4462_vm1 = vweird.f32 %v5929_v13  ;;  %vm8442_vm3 = vmor %vm4481_vm14, %vm4482_vm0  ;;  %vm4511_vm13 = vweird.f32 %v8426_v51 }
 0xe82   : > { %v4477_v36 = vmul.f32 %v5927_v16, %v4476_v43  ;;  %5932 = vrsqrt.f32 %v4450_v4  ;;  %vm8449_vm9 = vmor %vm4461_vm8, %vm4462_vm1  ;;  %vm4491_vm6 = vweird.f32 %v4450_v4  ;;  %vm4471_vm4 = vweird.f32 %v8428_v18 }
 0xe83   : > { %v4457_v12 = vmul.f32 %v5929_v13, %v4456_v11  ;;  %5934 = vrsqrt.f32 %v8428_v18 }
 0xe84   : > { %v4478_v28 = vmul.f32 0.5, %v4477_v36  ;;  %5936 = vrcp.f32 %v6437_v63 }
 0xe85   : > { %v4458_v58 = vmul.f32 0.5, %v4457_v12  ;;  %v4436_v41 = vpop.xlane.xlu2 %4435  ;;  %v4432_v56 = vpop.xlane.xlu0 %4431 }
 0xe86   : > { %v4479_v61 = vsub.f32 1.5, %v4478_v28  ;;  %v4445_v21 = vmul.f32 %v4436_v41, %v8779_v25  ;;  %v4443_v38 = vmul.f32 %v4432_v56, %v8779_v25 }
 0xe87   : > { %v8433_v31 = vpop.eup %5930  ;;  %v4459_v23 = vsub.f32 1.5, %v4458_v58 }
 0xe88   : > { %v5933_v0 = vpop.eup %5932  ;;  %v4480_v1 = vmul.f32 %v5927_v16, %v4479_v61  ;;  %v4506_v10 = vmul.f32 %v8433_v31, %v8426_v51  ;;  %v8437_v2 = vadd.f32 1e-05, %v4445_v21  ;;  %v8453_v34 = vadd.f32 1e-05, %v4443_v38 }
 0xe89   : > { %v5935_v8 = vpop.eup %5934  ;;  %v4486_v49 = vmul.f32 %v5933_v0, %v4450_v4  ;;  %v4460_v26 = vmul.f32 %v5929_v13, %v4459_v23  ;;  %vm4492_vm12 = vweird.f32 %v5933_v0  ;;  %vm4512_vm15 = vweird.f32 %v8433_v31 }
 0xe8a   : > { %v4507_v30 = vmul.f32 %v8433_v31, %v4506_v10  ;;  %v4466_v35 = vmul.f32 %v5935_v8, %v8428_v18  ;;  %5938 = vrsqrt.f32 %v8437_v2  ;;  %v4484_v15 = vsel %vm8442_vm3, %v5927_v16, %v4480_v1  ;;  %v8458_v45 = vpop.eup %5936  ;;  %vm4493_vm2 = vmor %vm4491_vm6, %vm4492_vm12 }
 0xe8b   : > { %v4487_v3 = vmul.f32 %v5933_v0, %v4486_v49  ;;  %v4464_v7 = vsel %vm8449_vm9, %v5929_v13, %v4460_v26  ;;  %v4537_v47 = vmul.f32 %v4484_v15, %v8379_v20  ;;  %5940 = vrsqrt.f32 %v8453_v34  ;;  %vm8495_vm7 = vmor %vm4511_vm13, %vm4512_vm15 }
 0xe8c   : > { %v4508_v48 = vmul.f32 0.5, %v4507_v30  ;;  %v4467_v40 = vmul.f32 %v5935_v8, %v4466_v35  ;;  %vm4472_vm10 = vweird.f32 %v5935_v8  ;;  %v4594_v42 = vmul.f32 16.0, %v8458_v45 }
 0xe8d   : > { %v4488_v37 = vmul.f32 0.5, %v4487_v3  ;;  %v4438_v57 = vpop.xlane.xlu0 %4437  ;;  %v4548_v19 = vmul.f32 %v8464_v39, %v4537_v47  ;;  %vm4473_vm5 = vmor %vm4471_vm4, %vm4472_vm10  ;;  %vm4521_vm11 = vweird.f32 %v8437_v2  ;;  %vm4501_vm3 = vweird.f32 %v8453_v34 }
 0xe8e   : > { %v4468_v55 = vmul.f32 0.5, %v4467_v40  ;;  %v4446_v22 = vmul.f32 %v4438_v57, %v8779_v25  ;;  %v4509_v33 = vsub.f32 1.5, %v4508_v48  ;;  %v4535_v25 = vmul.f32 %v4464_v7, %v8382_v50 }
 0xe8f   : > { %v4489_v6 = vsub.f32 1.5, %v4488_v37  ;;  %v4559_v28 = vadd.f32 %v8482_v59, %v4548_v19  ;;  %v4595_v58 = vsub.f32 1.0, %v4594_v42  ;;  %vm4598_vm6 = vweird.f32 %v8458_v45 }
 0xe90   : > { %v4469_v60 = vsub.f32 1.5, %v4468_v55  ;;  %v8467_v32 = vadd.f32 1e-05, %v4446_v22  ;;  %v8469_v44 = vpop.eup %5938  ;;  %v4510_v24 = vmul.f32 %v8433_v31, %v4509_v33  ;;  %v4546_v4 = vmul.f32 %v8464_v39, %v4535_v25 }
 0xe91   : > { %v4490_v20 = vmul.f32 %v5933_v0, %v4489_v6  ;;  %v4516_v53 = vmul.f32 %v8469_v44, %v8437_v2  ;;  %v5941_v43 = vpop.eup %5940  ;;  %vm4522_vm14 = vweird.f32 %v8469_v44  ;;  %v4596_v63 = vmul.f32 %v8458_v45, %v4595_v58 }
 0xe92   : > { %v4470_v46 = vmul.f32 %v5935_v8, %v4469_v60  ;;  %5942 = vrsqrt.f32 %v8467_v32  ;;  %v4514_v51 = vsel %vm8495_vm7, %v8433_v31, %v4510_v24  ;;  %vm4502_vm0 = vweird.f32 %v5941_v43  ;;  %vm8516_vm1 = vmor %vm4521_vm11, %vm4522_vm14 }
 0xe93   : > { %v4494_v50 = vsel %vm4493_vm2, %v5933_v0, %v4490_v20  ;;  %v4517_v13 = vmul.f32 %v8469_v44, %v4516_v53  ;;  %v4540_v31 = vmul.f32 %v4514_v51, %v8391_v29  ;;  %v4597_v14 = vadd.f32 %v8458_v45, %v4596_v63  ;;  %vm4503_vm8 = vmor %vm4501_vm3, %vm4502_vm0 }
 0xe94   : > { %v4538_v62 = vmul.f32 %v4494_v50, %v8394_v9  ;;  %v4474_v16 = vsel %vm4473_vm5, %v5935_v8, %v4470_v46  ;;  %v4496_v9 = vmul.f32 %v5941_v43, %v8453_v34  ;;  %vm4531_vm12 = vweird.f32 %v8467_v32 }
 0xe95   : > { %v4536_v11 = vmul.f32 %v4474_v16, %v8398_v54  ;;  %v4518_v12 = vmul.f32 0.5, %v4517_v13  ;;  %v4557_v54 = vadd.f32 %v8482_v59, %v4546_v4  ;;  %v4551_v40 = vmul.f32 %v8464_v39, %v4540_v31 }
 0xe96   : > { %v4549_v36 = vmul.f32 %v8464_v39, %v4538_v62  ;;  %v4497_v21 = vmul.f32 %v5941_v43, %v4496_v9  ;;  %v4599_v46 = vsel %vm4598_vm6, %v8458_v45, %v4597_v14 }
 0xe97   : > { %v4547_v41 = vmul.f32 %v8464_v39, %v4536_v11  ;;  %v4519_v61 = vsub.f32 1.5, %v4518_v12  ;;  %v4562_v25 = vadd.f32 %v8482_v59, %v4551_v40 }
 0xe98   : > { %v4560_v56 = vadd.f32 %v8482_v59, %v4549_v36  ;;  %v5943_v23 = vpop.eup %5942  ;;  %v4498_v8 = vmul.f32 0.5, %v4497_v21 }
 0xe99   : > { %v4558_v0 = vadd.f32 %v8482_v59, %v4547_v41  ;;  %v4520_v10 = vmul.f32 %v8469_v44, %v4519_v61  ;;  %v4526_v49 = vmul.f32 %v5943_v23, %v8467_v32  ;;  %vm4532_vm9 = vweird.f32 %v5943_v23 }
 0xe9a   : > { %v4572_v1 = vadd.f32 %v4560_v56, %v4559_v28  ;;  %v4499_v30 = vsub.f32 1.5, %v4498_v8  ;;  %vm4533_vm10 = vmor %vm4531_vm12, %vm4532_vm9 }
 0xe9b   : > { %v4565_v38 = vadd.f32 %v4558_v0, %v4557_v54  ;;  %v4527_v35 = vmul.f32 %v5943_v23, %v4526_v49  ;;  %v4524_v15 = vsel %vm8516_vm1, %v8469_v44, %v4520_v10 }
 0xe9c   : > { %v4573_v26 = vrot.slane %v4572_v1, 4  ;;  %v4500_v29 = vmul.f32 %v5941_v43, %v4499_v30  ;;  %v4541_v22 = vmul.f32 %v4524_v15, %v8410_v5 }
 0xe9d   : > { %v4566_v17 = vrot.slane %v4565_v38, 4  ;;  %v4528_v48 = vmul.f32 0.5, %v4527_v35 }
 0xe9e   : > { %v4574_v3 = vadd.f32 %v4573_v26, %v4572_v1  ;;  %v4504_v7 = vsel %vm4503_vm8, %v5941_v43, %v4500_v29  ;;  %v4552_v5 = vmul.f32 %v8464_v39, %v4541_v22 }
 0xe9f   : > { %v4567_v37 = vadd.f32 %v4566_v17, %v4565_v38  ;;  %v4529_v55 = vsub.f32 1.5, %v4528_v48  ;;  %v4539_v47 = vmul.f32 %v4504_v7, %v8407_v52 }
 0xea0   : > { %v4575_v57 = vrot.slane %v4574_v3, 2  ;;  %v4563_v43 = vadd.f32 %v8482_v59, %v4552_v5 }
 0xea1   : > { %v4568_v34 = vrot.slane %v4567_v37, 2  ;;  %v4530_v33 = vmul.f32 %v5943_v23, %v4529_v55  ;;  %v4550_v44 = vmul.f32 %v8464_v39, %v4539_v47 }
 0xea2   : > { %v4576_v6 = vadd.f32 %v4575_v57, %v4574_v3 }
 0xea3   : > { %v4569_v60 = vadd.f32 %v4568_v34, %v4567_v37  ;;  %v4534_v53 = vsel %vm4533_vm10, %v5943_v23, %v4530_v33  ;;  %v4561_v52 = vadd.f32 %v8482_v59, %v4550_v44 }
 0xea4   : > { %v4577_v20 = vrot.slane %v4576_v6, 1  ;;  %v4542_v50 = vmul.f32 %v4534_v53, %v8417_v27 }
 0xea5   : > { %v4570_v19 = vrot.slane %v4569_v60, 1  ;;  %v4579_v24 = vadd.f32 %v4562_v25, %v4561_v52 }
 0xea6   : > { %v4578_v32 = vadd.f32 %v4577_v20, %v4576_v6  ;;  %v4553_v62 = vmul.f32 %v8464_v39, %v4542_v50 }
 0xea7   : > { %v4571_v42 = vadd.f32 %v4570_v19, %v4569_v60  ;;  %v4580_v4 = vrot.slane %v4579_v24, 4 }
 0xea8   : > { %v4601_v16 = vmul.f32 %v4599_v46, %v4578_v32  ;;  %v4564_v45 = vadd.f32 %v8482_v59, %v4553_v62 }
 0xea9   : > { %v4600_v13 = vmul.f32 %v4599_v46, %v4571_v42  ;;  %v4581_v18 = vadd.f32 %v4580_v4, %v4579_v24 }
 0xeaa   : > { %4605 = vst [vmem:[%s6774_s15 + $0x1] sm:$0x1] %v4601_v16  ;;  %v4586_v11 = vadd.f32 %v4564_v45, %v4563_v43 }
 0xeab   : > { %4604 = vst [vmem:[%s6774_s15] sm:$0x1] %v4600_v13  ;;  %v4582_v36 = vrot.slane %v4581_v18, 2 }
 0xeac   : > { %v4587_v27 = vrot.slane %v4586_v11, 4 }
 0xead   : > { %v4583_v12 = vadd.f32 %v4582_v36, %v4581_v18 }
 0xeae   : > { %v4588_v9 = vadd.f32 %v4587_v27, %v4586_v11 }
 0xeaf   : > { %v4584_v28 = vrot.slane %v4583_v12, 1 }
 0xeb0   : > { %v4589_v58 = vrot.slane %v4588_v9, 2 }
 0xeb1   : > { %v4585_v39 = vadd.f32 %v4584_v28, %v4583_v12 }
 0xeb2   : > { %v4590_v41 = vadd.f32 %v4589_v58, %v4588_v9 }
 0xeb3   : > { %v4602_v51 = vmul.f32 %v4599_v46, %v4585_v39 }
 0xeb4   : > { %v4591_v56 = vrot.slane %v4590_v41, 1 }
 0xeb5   : > { %4606 = vst [vmem:[%s6774_s15 + $0x2] sm:$0x1] %v4602_v51 }
 0xeb6   : > { %v4592_v61 = vadd.f32 %v4591_v56, %v4590_v41 }
 0xeb8   : > { %v4603_v21 = vmul.f32 %v4599_v46, %v4592_v61 }
 0xeba   : > { %4607 = vst [vmem:[%s6774_s15 + $0x3] sm:$0x1] %v4603_v21 }
 0xebb PF: > { %s8790_s10 = sld [smem:[#allocation93_spill]]  ;;  %s4620_s13 = sshll.u32 %s6774_s15, 4  ;;  %s4621_s13 = int_to_ptr.vmem [resolvable:$true] %s4620_s13 }
 0xebc   : > { %s4609_s26 = scalar_lea.sflag [#allocation9], %s6718_s30 }
 0xec1   : > { %s8791_s17 = smov %s8790_s10  ;;  %s4619_s6 = scalar_lea.hbm %s8790_s10, %s6757_s29 }
 0xec2   : > { %s4622_s9 = sshll.u32 %s4619_s6, 4  ;;  %s6306_s12 = scalar_lea.hbm %s8791_s17, 8  ;;  %s4623_s9 = int_to_ptr.hbm [resolvable:$true] %s4622_s9 }
 0xec3   : > { %s6300_s14 = sshra.s32 %s4623_s9, 4  ;;  %s6301_s14 = int_to_ptr.hbm [resolvable:$true] %s6300_s14 }
 0xec4   : > { %s6302_s5 = scalar_lea.hbm %s6301_s14, 4  ;;  %p6307_p1 = scmp.lt.s32.totalorder %s6301_s14, %s8791_s17 }
 0xec5   : > { %p6303_p5 = scmp.ne.s32.totalorder %s6301_s14, %s6302_s5  ;;  %p6308_p8 = scmp.lt.s32.totalorder %s6306_s12, %s6302_s5 }
 0xec7   : > { %p6304_p7 = pnand %p6303_p5, %p6688_p0  ;;  %p6309_p9 = por %p6308_p8, %p6307_p1 }
 0xec9   : > { %p6305_p3 = pneg %p6304_p7 }
 0xecb   : > { %p6310_p10 = pnand %p6309_p9, %p6305_p3 }
 0xecd   : > { %6313 = shalt.err (!%p6310_p10)
}
 0xece   : > { %s6438_s30 = smov 16   ;;  %s6439_s29 = smov 1  }
 0xecf   : > { %5505 = dma.vmem_to_hbm [thread:$0]  (%p6688_p0), %s4621_s13, 64, %s4623_s9, %s4609_s26, %s6438_s30, %s6438_s30, %s6439_s29  }
 0xed0 PF: > { %p5565_p11 = scmp.ge.s32.totalorder %s6410_s2, 2  ;;  %s4637_s15 = sand.u32 1, %s6382_s0  }
 0xed1   : > { %s4638_s3 = scalar_lea.sflag [#allocation9], %s4637_s15 }
 0xed2   : > { %p5543_p12 = pnand %p5565_p11, %p6695_p6 }
 0xed4   : > { %p5544_p13 = pneg %p5543_p12 }
 0xed6   : > { %6377 = dma.done.wait (%p5544_p13), %s4638_s3, 64  }
 0xed7   : > { %6379 = vsyncadd (%p5544_p13), %s4638_s3, 4294967232  ;;  %s49_s2 = sadd.s32 1, %s6410_s2   ;;  %s8792_s28 = sld [smem:[#allocation37_spill]] }
 0xed8   : > { %p46_p2 = scmp.ge.s32.totalorder %s49_s2, 16   ;;  %s8793_s27 = sld [smem:[#allocation38_spill]] }
 0xed9   : > { %s8794_s0 = smov %s6386_s19  ;;  %s8795_s19 = smov %s6390_s1 }
 0xeda   : > { %s8796_s1 = smov %s6702_s4  ;;  %s8797_s10 = smov %s6402_s21 }
 0xedb   : > { %s8798_s20 = smov %s6406_s22  ;;  %48 = sbr.rel (!%p46_p2) target bundleno = 44 (0x2c), region = 209 }
 0xedd   : > { %s8799_s21 = smov %s8792_s28 }
 0xede   : > { %s8800_s22 = smov %s8793_s27 }
 0xee0   :  { %4644 = vsyncpa [#allocation8], 1 }
 0xee1   :  { %4646 = vsyncpa [#allocation8 + $0x1], 1 }
 0xee2   :  { %4647 = vsyncpa [#allocation11], 1 }
 0xee3   :  { %4649 = vsyncpa [#allocation11 + $0x1], 1 }
 0xee4   :  { %4650 = vsyncpa [#allocation14], 1 }
 0xee5   :  { %4651 = vsyncpa [#allocation17], 1 }
 0xee6   :  { %4652 = vsyncpa [#allocation20], 1 }
 0xee7   :  { %4653 = vsyncpa [#allocation23], 1 }
 0xee8   :  { %4654 = vsyncpa [#allocation9], 1 }
 0xee9   :  { %4656 = vsyncpa [#allocation9 + $0x1], 1 }

</bundles_post_ra>
